<compile_context>
chip_gen: v7x
topology: tpu7x:2x2x1
jax: 0.10.0
libtpu: 0.0.40
codegen_flags: <defaults>
</compile_context>

<pallas_src>
import jax
import jax.numpy as jnp
from jax import lax
from jax.experimental import pallas as pl
from jax.experimental.pallas import tpu as pltpu


# --------------------------- in-kernel pooling helpers -----------------------

def _pool_rows(v, outer, n, m):
    """MaxPool(k=3,s=2,p=1, clipped windows) over the `n`-sized middle factor
    of the row index of a 2-D value: rows = outer*n*m -> outer*(n//2)*m."""
    pieces = []
    for oi in range(outer):
        base = oi * n * m
        for o in range(n // 2):
            lo = max(2 * o - 1, 0)
            hi = min(2 * o + 2, n)
            blk = v[base + lo * m: base + (lo + 1) * m, :]
            for a in range(lo + 1, hi):
                blk = jnp.maximum(blk, v[base + a * m: base + (a + 1) * m, :])
            pieces.append(blk)
    return jnp.concatenate(pieces, axis=0)


def _pool_cols(v, n, m):
    """Same clipped-window max over the `n`-sized leading factor of the
    column index: cols = n*m -> (n//2)*m."""
    pieces = []
    for o in range(n // 2):
        lo = max(2 * o - 1, 0)
        hi = min(2 * o + 2, n)
        blk = v[:, lo * m:(lo + 1) * m]
        for a in range(lo + 1, hi):
            blk = jnp.maximum(blk, v[:, a * m:(a + 1) * m])
        pieces.append(blk)
    return jnp.concatenate(pieces, axis=1)


# ------------------------------- fused kernel --------------------------------

def _make_kernel(bb, cin, c1, c2, c3):
    kc = 20 * cin

    def kernel(x_ref, a1_ref, b1_ref, w2_ref, b2_ref, w3_ref, b3_ref,
               fcw_ref, fcb_ref, o_ref):
        x3_rows = []
        for b in range(bb):
            # ---- conv1 (5x5x5, stride 2, pad 2) + folded BN + ReLU ---------
            # x_ref rows are the (D,H)-phase-split padded volume; each (kd,kh)
            # tap is a contiguous [8,8,20*cin] window -> [64, 20*cin] slab.
            acc1 = jnp.zeros((64, 8 * c1), jnp.float32)
            for kd in range(5):
                for kh in range(5):
                    t = kd * 5 + kh
                    s0 = (kd % 2) * 20 + (kh % 2) * 10 + kd // 2
                    h0 = kh // 2
                    slab = x_ref[b, s0:s0 + 8, h0:h0 + 8, :]
                    slab = slab.reshape(64, kc).astype(jnp.bfloat16)
                    acc1 = acc1 + jnp.dot(slab, a1_ref[t],
                                          preferred_element_type=jnp.float32)
            act1 = jnp.maximum(acc1 + b1_ref[...], 0.0)     # [64, 8*c1]

            # ---- MaxPool3d(3,2,1): 8^3 -> 4^3 (flat, separable) ------------
            p = _pool_rows(act1, 1, 8, 8)                   # D  -> [32, 8*c1]
            p = _pool_rows(p, 4, 8, 1)                      # H  -> [16, 8*c1]
            y1 = _pool_cols(p, 8, c1)                       # W  -> [16, 4*c1]

            # ---- conv2 (3x3x3, pad 1) + folded BN + ReLU -------------------
            zpad = jnp.zeros((5, 4 * c1), jnp.float32)
            ypad = jnp.concatenate([zpad, y1, zpad], axis=0)  # [26, 4*c1]
            hh = lax.broadcasted_iota(jnp.int32, (16, 1), 0) % 4
            acc2 = jnp.zeros((16, 4 * c2), jnp.float32)
            for kd in range(3):
                for kh in range(3):
                    t = kd * 3 + kh
                    off = (kd - 1) * 4 + (kh - 1)
                    slab = ypad[5 + off:21 + off, :]          # [16, 4*c1]
                    if kh != 1:   # mask rows whose H neighbour is out of range
                        ok = (hh + (kh - 1) >= 0) & (hh + (kh - 1) <= 3)
                        slab = jnp.where(ok, slab, jnp.zeros_like(slab))
                    acc2 = acc2 + jnp.dot(slab.astype(jnp.bfloat16), w2_ref[t],
                                          preferred_element_type=jnp.float32)
            act2 = jnp.maximum(acc2 + b2_ref[...], 0.0)       # [16, 4*c2]

            # ---- MaxPool3d(3,2,1): 4^3 -> 2^3 ------------------------------
            p = _pool_rows(act2, 1, 4, 4)                     # D -> [8, 4*c2]
            p = _pool_rows(p, 2, 4, 1)                        # H -> [4, 4*c2]
            p = _pool_cols(p, 4, c2)                          # W -> [4, 2*c2]
            x3_rows.append(p.reshape(1, 8 * c2).astype(jnp.bfloat16))

        x3 = jnp.concatenate(x3_rows, axis=0) if bb > 1 else x3_rows[0]

        # ---- conv3 as one dense "all-pairs" matmul + BN + ReLU (batched) ---
        h3 = jnp.dot(x3, w3_ref[...], preferred_element_type=jnp.float32)
        h3 = jnp.maximum(h3 + b3_ref[...], 0.0)               # [bb, 8*c3]

        # ---- pool3 on 2^3 == global max; AdaptiveAvgPool3d(1) == identity --
        red = h3[:, 0:c3]
        for o in range(1, 8):
            red = jnp.maximum(red, h3[:, o * c3:(o + 1) * c3])  # [bb, c3]

        # ---- fc (lane-padded to 128 output columns) ------------------------
        logits = jnp.dot(red.astype(jnp.bfloat16), fcw_ref[...],
                         preferred_element_type=jnp.float32) + fcb_ref[...]
        o_ref[0] = logits

    return kernel


# ---------------------------------- JAX glue ---------------------------------

def discriminator_3d_2_forward(x, params):
    """x: [N, Cin, 16, 16, 16] (PyTorch NCDHW). Returns logits [N, num_classes]."""
    n, cin, d, h, w = x.shape
    assert (d, h, w) == (16, 16, 16), "kernel specialised to 16^3 inputs"
    a1, b1 = params["a1"], params["b1"]
    w2, b2 = params["w2"], params["b2"]
    w3, b3 = params["w3"], params["b3"]
    c1 = b1.shape[1] // 8
    c2 = b2.shape[1] // 4
    c3 = b3.shape[1] // 8
    assert a1.shape == (25, 20 * cin, 8 * c1)

    num_classes = params["fc_w"].shape[1]
    ncp = max(128, pl.cdiv(num_classes, 128) * 128)
    fcw = jnp.zeros((c3, ncp), jnp.bfloat16).at[:, :num_classes].set(
        params["fc_w"].astype(jnp.bfloat16))
    fcb = jnp.zeros((1, ncp), jnp.float32).at[:, :num_classes].set(params["fc_b"])

    # --- input prep: zero-pad + (D,H) phase split (no im2col expansion) -----
    xpad = jnp.pad(x, ((0, 0), (0, 0), (2, 2), (2, 2), (2, 2)))
    xpad = jnp.transpose(xpad, (0, 2, 3, 4, 1))                     # NDHWC
    xps = xpad.reshape(n, 10, 2, 10, 2, 20, cin).transpose(0, 2, 4, 1, 3, 5, 6)
    xv = xps.reshape(n, 40, 10, 20 * cin).astype(jnp.float32)

    # --- batch blocking: fold batch into matmul M, keep >=2 parallel blocks -
    bb = max(1, min(pl.cdiv(n, 2), 8))
    nblk = pl.cdiv(n, bb)
    npad = nblk * bb
    if npad != n:
        xv = jnp.pad(xv, ((0, npad - n), (0, 0), (0, 0), (0, 0)))

    kernel = _make_kernel(bb, cin, c1, c2, c3)

    flops = npad * (25 * 2 * 64 * (20 * cin) * (8 * c1)
                    + 9 * 2 * 16 * (4 * c1) * (4 * c2)
                    + 2 * (8 * c2) * (8 * c3)
                    + 2 * c3 * ncp)
    bytes_accessed = (xv.size * 4 + a1.size * 2 + w2.size * 2 + w3.size * 2
                      + fcw.size * 2
                      + (b1.size + b2.size + b3.size + fcb.size) * 4
                      + npad * ncp * 4)

    out = pl.pallas_call(
        kernel,
        out_shape=jax.ShapeDtypeStruct((nblk, bb, ncp), jnp.float32),
        grid=(nblk,),
        in_specs=[
            pl.BlockSpec((bb, 40, 10, 20 * cin), lambda i: (i, 0, 0, 0)),
            pl.BlockSpec(a1.shape, lambda i: (0, 0, 0)),
            pl.BlockSpec(b1.shape, lambda i: (0, 0)),
            pl.BlockSpec(w2.shape, lambda i: (0, 0, 0)),
            pl.BlockSpec(b2.shape, lambda i: (0, 0)),
            pl.BlockSpec(w3.shape, lambda i: (0, 0)),
            pl.BlockSpec(b3.shape, lambda i: (0, 0)),
            pl.BlockSpec(fcw.shape, lambda i: (0, 0)),
            pl.BlockSpec(fcb.shape, lambda i: (0, 0)),
        ],
        out_specs=pl.BlockSpec((1, bb, ncp), lambda i: (i, 0, 0)),
        compiler_params=pltpu.CompilerParams(
            dimension_semantics=("parallel",)),
        cost_estimate=pl.CostEstimate(flops=flops, transcendentals=0,
                                      bytes_accessed=bytes_accessed),
    )(xv, a1, b1, w2, b2, w3, b3, fcw, fcb)

    return out.reshape(npad, ncp)[:n, :num_classes]


# ------------------------------ parameter prep -------------------------------

def init_params(key, num_classes=2, init_width=32, input_channels=1):
    """Raw parameters mirroring the PyTorch module (eval-mode BN stats)."""
    c1, c2, c3 = init_width, init_width * 2, init_width * 4
    ks = jax.random.split(key, 5)
    w1 = jax.random.normal(ks[0], (c1, input_channels, 5, 5, 5), jnp.float32) * 0.05
    w2 = jax.random.normal(ks[1], (c2, c1, 3, 3, 3), jnp.float32) * 0.05
    w3 = jax.random.normal(ks[2], (c3, c2, 3, 3, 3), jnp.float32) * 0.05

    def bn(c):
        return dict(gamma=jnp.ones((c,), jnp.float32),
                    beta=jnp.zeros((c,), jnp.float32),
                    mean=jnp.zeros((c,), jnp.float32),
                    var=jnp.ones((c,), jnp.float32))

    fc_w = jax.random.normal(ks[3], (c3, num_classes), jnp.float32) * 0.05
    fc_b = jax.random.normal(ks[4], (1, num_classes), jnp.float32) * 0.05
    return dict(w1=w1, bn1=bn(c1), w2=w2, bn2=bn(c2), w3=w3, bn3=bn(c3),
                fc_w=fc_w, fc_b=fc_b)


def prepare_params(p, eps=1e-5):
    """Fold eval-mode BatchNorm into the conv weights and lay everything out
    for the fused kernel (runs once, outside the forward pass)."""

    def fold(wconv, bn):
        scale = bn["gamma"] / jnp.sqrt(bn["var"] + eps)
        return (wconv * scale[:, None, None, None, None],
                bn["beta"] - bn["mean"] * scale)

    w1f, b1 = fold(p["w1"], p["bn1"])      # [c1,cin,5,5,5], [c1]
    w2f, b2 = fold(p["w2"], p["bn2"])      # [c2,c1,3,3,3], [c2]
    w3f, b3 = fold(p["w3"], p["bn3"])      # [c3,c2,3,3,3], [c3]
    c1, cin = w1f.shape[0], w1f.shape[1]
    c2, c3 = w2f.shape[0], w3f.shape[0]

    # conv1: fold the kw taps into the weight columns.
    # a1[t=(kd*5+kh), j*cin+ci, ow*c1+co] = w1f[co,ci,kd,kh, j-2*ow] (valid).
    wt1 = jnp.transpose(w1f, (2, 3, 4, 1, 0))                   # [5,5,5,cin,c1]
    j = jnp.arange(20)[:, None]
    ow = jnp.arange(8)[None, :]
    kw1 = j - 2 * ow
    ok1 = (kw1 >= 0) & (kw1 <= 4)
    g1 = wt1[:, :, jnp.clip(kw1, 0, 4)]                         # [5,5,20,8,cin,c1]
    g1 = g1 * ok1[None, None, :, :, None, None]
    a1 = (g1.transpose(0, 1, 2, 4, 3, 5)
            .reshape(25, 20 * cin, 8 * c1).astype(jnp.bfloat16))

    # conv2: same W-fold on the 4-wide pooled activation.
    # w2m[t=(kd*3+kh), wi*c1+ci, w*c2+co] = w2f[co,ci,kd,kh, wi-w+1] (valid).
    wt2 = jnp.transpose(w2f, (2, 3, 4, 1, 0))                   # [3,3,3,c1,c2]
    wi = jnp.arange(4)[:, None]
    wo = jnp.arange(4)[None, :]
    kw2 = wi - wo + 1
    ok2 = (kw2 >= 0) & (kw2 <= 2)
    g2 = wt2[:, :, jnp.clip(kw2, 0, 2)]                         # [3,3,4,4,c1,c2]
    g2 = g2 * ok2[None, None, :, :, None, None]
    w2m = (g2.transpose(0, 1, 2, 4, 3, 5)
             .reshape(9, 4 * c1, 4 * c2).astype(jnp.bfloat16))

    # conv3 on the 2x2x2 pooled activation with pad 1: every (input voxel v,
    # output voxel o) pair hits exactly one tap k = v-o+1, so conv3 is a single
    # dense [8*c2, 8*c3] "all-pairs" matmul.
    wt3 = jnp.transpose(w3f, (2, 3, 4, 1, 0))                   # [3,3,3,c2,c3]
    kidx = jnp.arange(2)[:, None] - jnp.arange(2)[None, :] + 1
    g3 = wt3[kidx[:, None, None, :, None, None],
             kidx[None, :, None, None, :, None],
             kidx[None, None, :, None, None, :]]   # [vd,vh,vw,od,oh,ow,c2,c3]
    w3m = (g3.transpose(0, 1, 2, 6, 3, 4, 5, 7)
             .reshape(8 * c2, 8 * c3).astype(jnp.bfloat16))

    return dict(
        a1=a1, b1=jnp.tile(b1, 8).reshape(1, 8 * c1),
        w2=w2m, b2=jnp.tile(b2, 4).reshape(1, 4 * c2),
        w3=w3m, b3=jnp.tile(b3, 8).reshape(1, 8 * c3),
        fc_w=p["fc_w"], fc_b=p["fc_b"])


# ------------------------------------ main -----------------------------------

if __name__ == "__main__":
    key = jax.random.PRNGKey(0)
    kx, kp = jax.random.split(key)
    # NCDHW input matching nn.Conv3d: batch=2, channels=1, 16^3 volume.
    x = jax.random.normal(kx, (2, 1, 16, 16, 16), jnp.float32)
    params = prepare_params(init_params(kp))
    fwd = jax.jit(discriminator_3d_2_forward)
    out = jax.block_until_ready(fwd(x, params))
    assert out.shape == (2, 2)
    print("KERNEL_OK")
</pallas_src>

<mosaic_0001>
module attributes {stable_mosaic.version = 11 : i64} {
  func.func @kernel(%arg0: i32, %arg1: memref<1x40x10x20xf32, #tpu.memory_space<vmem>>, %arg2: memref<25x20x256xbf16, #tpu.memory_space<vmem>>, %arg3: memref<1x256xf32, #tpu.memory_space<vmem>>, %arg4: memref<9x128x256xbf16, #tpu.memory_space<vmem>>, %arg5: memref<1x256xf32, #tpu.memory_space<vmem>>, %arg6: memref<512x1024xbf16, #tpu.memory_space<vmem>>, %arg7: memref<1x1024xf32, #tpu.memory_space<vmem>>, %arg8: memref<128x128xbf16, #tpu.memory_space<vmem>>, %arg9: memref<1x128xf32, #tpu.memory_space<vmem>>, %arg10: memref<1x1x128xf32, #tpu.memory_space<vmem>>) attributes {dimension_semantics = [#tpu.dimension_semantics<parallel>], iteration_bounds = array<i64: 2>, scalar_prefetch = 0 : i64, scratch_operands = 0 : i64, tpu.core_type = #tpu.core_type<tc>, window_params = [{transform_indices = @transform_0, window_bounds = array<i64: 1, 40, 10, 20>}, {pipeline_mode = #tpu.pipeline_mode<synchronous>, transform_indices = @transform_1, window_bounds = array<i64: 25, 20, 256>}, {pipeline_mode = #tpu.pipeline_mode<synchronous>, transform_indices = @transform_2, window_bounds = array<i64: 1, 256>}, {pipeline_mode = #tpu.pipeline_mode<synchronous>, transform_indices = @transform_3, window_bounds = array<i64: 9, 128, 256>}, {pipeline_mode = #tpu.pipeline_mode<synchronous>, transform_indices = @transform_4, window_bounds = array<i64: 1, 256>}, {pipeline_mode = #tpu.pipeline_mode<synchronous>, transform_indices = @transform_5, window_bounds = array<i64: 512, 1024>}, {pipeline_mode = #tpu.pipeline_mode<synchronous>, transform_indices = @transform_6, window_bounds = array<i64: 1, 1024>}, {pipeline_mode = #tpu.pipeline_mode<synchronous>, transform_indices = @transform_7, window_bounds = array<i64: 128, 128>}, {pipeline_mode = #tpu.pipeline_mode<synchronous>, transform_indices = @transform_8, window_bounds = array<i64: 1, 128>}, {transform_indices = @transform_9, window_bounds = array<i64: 1, 1, 128>}]} {
    %cst = arith.constant 0.000000e+00 : f32
    %0 = vector.broadcast %cst : f32 to vector<64x256xf32>
    %c0 = arith.constant 0 : index
    %c0_0 = arith.constant 0 : index
    %c0_1 = arith.constant 0 : index
    %c0_2 = arith.constant 0 : index
    %1 = vector.load %arg1[%c0, %c0_0, %c0_1, %c0_2] : memref<1x40x10x20xf32, #tpu.memory_space<vmem>>, vector<1x8x8x20xf32>
    %2 = vector.shape_cast %1 : vector<1x8x8x20xf32> to vector<8x8x20xf32>
    %3 = vector.shape_cast %2 : vector<8x8x20xf32> to vector<64x20xf32>
    %4 = arith.truncf %3 : vector<64x20xf32> to vector<64x20xbf16>
    %c0_3 = arith.constant 0 : index
    %c0_4 = arith.constant 0 : index
    %c0_5 = arith.constant 0 : index
    %5 = vector.load %arg2[%c0_3, %c0_4, %c0_5] : memref<25x20x256xbf16, #tpu.memory_space<vmem>>, vector<1x20x256xbf16>
    %6 = vector.shape_cast %5 : vector<1x20x256xbf16> to vector<20x256xbf16>
    %cst_6 = arith.constant dense<0.000000e+00> : vector<64x256xf32>
    %7 = tpu.matmul %4, %6, %cst_6 {dimension_numbers = #tpu.dot_dimension_numbers<[1], [0], [0], [1], [0, 0, 1, 1], [], []>} : vector<64x20xbf16>, vector<20x256xbf16>, vector<64x256xf32> -> vector<64x256xf32>
    %8 = arith.addf %0, %7 : vector<64x256xf32>
    %c0_7 = arith.constant 0 : index
    %c10 = arith.constant 10 : index
    %c0_8 = arith.constant 0 : index
    %c0_9 = arith.constant 0 : index
    %9 = vector.load %arg1[%c0_7, %c10, %c0_8, %c0_9] : memref<1x40x10x20xf32, #tpu.memory_space<vmem>>, vector<1x8x8x20xf32>
    %10 = vector.shape_cast %9 : vector<1x8x8x20xf32> to vector<8x8x20xf32>
    %11 = vector.shape_cast %10 : vector<8x8x20xf32> to vector<64x20xf32>
    %12 = arith.truncf %11 : vector<64x20xf32> to vector<64x20xbf16>
    %c1 = arith.constant 1 : index
    %c0_10 = arith.constant 0 : index
    %c0_11 = arith.constant 0 : index
    %13 = vector.load %arg2[%c1, %c0_10, %c0_11] : memref<25x20x256xbf16, #tpu.memory_space<vmem>>, vector<1x20x256xbf16>
    %14 = vector.shape_cast %13 : vector<1x20x256xbf16> to vector<20x256xbf16>
    %cst_12 = arith.constant dense<0.000000e+00> : vector<64x256xf32>
    %15 = tpu.matmul %12, %14, %cst_12 {dimension_numbers = #tpu.dot_dimension_numbers<[1], [0], [0], [1], [0, 0, 1, 1], [], []>} : vector<64x20xbf16>, vector<20x256xbf16>, vector<64x256xf32> -> vector<64x256xf32>
    %16 = arith.addf %8, %15 : vector<64x256xf32>
    %c0_13 = arith.constant 0 : index
    %c0_14 = arith.constant 0 : index
    %c1_15 = arith.constant 1 : index
    %c0_16 = arith.constant 0 : index
    %17 = vector.load %arg1[%c0_13, %c0_14, %c1_15, %c0_16] : memref<1x40x10x20xf32, #tpu.memory_space<vmem>>, vector<1x8x8x20xf32>
    %18 = vector.shape_cast %17 : vector<1x8x8x20xf32> to vector<8x8x20xf32>
    %19 = vector.shape_cast %18 : vector<8x8x20xf32> to vector<64x20xf32>
    %20 = arith.truncf %19 : vector<64x20xf32> to vector<64x20xbf16>
    %c2 = arith.constant 2 : index
    %c0_17 = arith.constant 0 : index
    %c0_18 = arith.constant 0 : index
    %21 = vector.load %arg2[%c2, %c0_17, %c0_18] : memref<25x20x256xbf16, #tpu.memory_space<vmem>>, vector<1x20x256xbf16>
    %22 = vector.shape_cast %21 : vector<1x20x256xbf16> to vector<20x256xbf16>
    %cst_19 = arith.constant dense<0.000000e+00> : vector<64x256xf32>
    %23 = tpu.matmul %20, %22, %cst_19 {dimension_numbers = #tpu.dot_dimension_numbers<[1], [0], [0], [1], [0, 0, 1, 1], [], []>} : vector<64x20xbf16>, vector<20x256xbf16>, vector<64x256xf32> -> vector<64x256xf32>
    %24 = arith.addf %16, %23 : vector<64x256xf32>
    %c0_20 = arith.constant 0 : index
    %c10_21 = arith.constant 10 : index
    %c1_22 = arith.constant 1 : index
    %c0_23 = arith.constant 0 : index
    %25 = vector.load %arg1[%c0_20, %c10_21, %c1_22, %c0_23] : memref<1x40x10x20xf32, #tpu.memory_space<vmem>>, vector<1x8x8x20xf32>
    %26 = vector.shape_cast %25 : vector<1x8x8x20xf32> to vector<8x8x20xf32>
    %27 = vector.shape_cast %26 : vector<8x8x20xf32> to vector<64x20xf32>
    %28 = arith.truncf %27 : vector<64x20xf32> to vector<64x20xbf16>
    %c3 = arith.constant 3 : index
    %c0_24 = arith.constant 0 : index
    %c0_25 = arith.constant 0 : index
    %29 = vector.load %arg2[%c3, %c0_24, %c0_25] : memref<25x20x256xbf16, #tpu.memory_space<vmem>>, vector<1x20x256xbf16>
    %30 = vector.shape_cast %29 : vector<1x20x256xbf16> to vector<20x256xbf16>
    %cst_26 = arith.constant dense<0.000000e+00> : vector<64x256xf32>
    %31 = tpu.matmul %28, %30, %cst_26 {dimension_numbers = #tpu.dot_dimension_numbers<[1], [0], [0], [1], [0, 0, 1, 1], [], []>} : vector<64x20xbf16>, vector<20x256xbf16>, vector<64x256xf32> -> vector<64x256xf32>
    %32 = arith.addf %24, %31 : vector<64x256xf32>
    %c0_27 = arith.constant 0 : index
    %c0_28 = arith.constant 0 : index
    %c2_29 = arith.constant 2 : index
    %c0_30 = arith.constant 0 : index
    %33 = vector.load %arg1[%c0_27, %c0_28, %c2_29, %c0_30] : memref<1x40x10x20xf32, #tpu.memory_space<vmem>>, vector<1x8x8x20xf32>
    %34 = vector.shape_cast %33 : vector<1x8x8x20xf32> to vector<8x8x20xf32>
    %35 = vector.shape_cast %34 : vector<8x8x20xf32> to vector<64x20xf32>
    %36 = arith.truncf %35 : vector<64x20xf32> to vector<64x20xbf16>
    %c4 = arith.constant 4 : index
    %c0_31 = arith.constant 0 : index
    %c0_32 = arith.constant 0 : index
    %37 = vector.load %arg2[%c4, %c0_31, %c0_32] : memref<25x20x256xbf16, #tpu.memory_space<vmem>>, vector<1x20x256xbf16>
    %38 = vector.shape_cast %37 : vector<1x20x256xbf16> to vector<20x256xbf16>
    %cst_33 = arith.constant dense<0.000000e+00> : vector<64x256xf32>
    %39 = tpu.matmul %36, %38, %cst_33 {dimension_numbers = #tpu.dot_dimension_numbers<[1], [0], [0], [1], [0, 0, 1, 1], [], []>} : vector<64x20xbf16>, vector<20x256xbf16>, vector<64x256xf32> -> vector<64x256xf32>
    %40 = arith.addf %32, %39 : vector<64x256xf32>
    %c0_34 = arith.constant 0 : index
    %c20 = arith.constant 20 : index
    %c0_35 = arith.constant 0 : index
    %c0_36 = arith.constant 0 : index
    %41 = vector.load %arg1[%c0_34, %c20, %c0_35, %c0_36] : memref<1x40x10x20xf32, #tpu.memory_space<vmem>>, vector<1x8x8x20xf32>
    %42 = vector.shape_cast %41 : vector<1x8x8x20xf32> to vector<8x8x20xf32>
    %43 = vector.shape_cast %42 : vector<8x8x20xf32> to vector<64x20xf32>
    %44 = arith.truncf %43 : vector<64x20xf32> to vector<64x20xbf16>
    %c5 = arith.constant 5 : index
    %c0_37 = arith.constant 0 : index
    %c0_38 = arith.constant 0 : index
    %45 = vector.load %arg2[%c5, %c0_37, %c0_38] : memref<25x20x256xbf16, #tpu.memory_space<vmem>>, vector<1x20x256xbf16>
    %46 = vector.shape_cast %45 : vector<1x20x256xbf16> to vector<20x256xbf16>
    %cst_39 = arith.constant dense<0.000000e+00> : vector<64x256xf32>
    %47 = tpu.matmul %44, %46, %cst_39 {dimension_numbers = #tpu.dot_dimension_numbers<[1], [0], [0], [1], [0, 0, 1, 1], [], []>} : vector<64x20xbf16>, vector<20x256xbf16>, vector<64x256xf32> -> vector<64x256xf32>
    %48 = arith.addf %40, %47 : vector<64x256xf32>
    %c0_40 = arith.constant 0 : index
    %c30 = arith.constant 30 : index
    %c0_41 = arith.constant 0 : index
    %c0_42 = arith.constant 0 : index
    %49 = vector.load %arg1[%c0_40, %c30, %c0_41, %c0_42] : memref<1x40x10x20xf32, #tpu.memory_space<vmem>>, vector<1x8x8x20xf32>
    %50 = vector.shape_cast %49 : vector<1x8x8x20xf32> to vector<8x8x20xf32>
    %51 = vector.shape_cast %50 : vector<8x8x20xf32> to vector<64x20xf32>
    %52 = arith.truncf %51 : vector<64x20xf32> to vector<64x20xbf16>
    %c6 = arith.constant 6 : index
    %c0_43 = arith.constant 0 : index
    %c0_44 = arith.constant 0 : index
    %53 = vector.load %arg2[%c6, %c0_43, %c0_44] : memref<25x20x256xbf16, #tpu.memory_space<vmem>>, vector<1x20x256xbf16>
    %54 = vector.shape_cast %53 : vector<1x20x256xbf16> to vector<20x256xbf16>
    %cst_45 = arith.constant dense<0.000000e+00> : vector<64x256xf32>
    %55 = tpu.matmul %52, %54, %cst_45 {dimension_numbers = #tpu.dot_dimension_numbers<[1], [0], [0], [1], [0, 0, 1, 1], [], []>} : vector<64x20xbf16>, vector<20x256xbf16>, vector<64x256xf32> -> vector<64x256xf32>
    %56 = arith.addf %48, %55 : vector<64x256xf32>
    %c0_46 = arith.constant 0 : index
    %c20_47 = arith.constant 20 : index
    %c1_48 = arith.constant 1 : index
    %c0_49 = arith.constant 0 : index
    %57 = vector.load %arg1[%c0_46, %c20_47, %c1_48, %c0_49] : memref<1x40x10x20xf32, #tpu.memory_space<vmem>>, vector<1x8x8x20xf32>
    %58 = vector.shape_cast %57 : vector<1x8x8x20xf32> to vector<8x8x20xf32>
    %59 = vector.shape_cast %58 : vector<8x8x20xf32> to vector<64x20xf32>
    %60 = arith.truncf %59 : vector<64x20xf32> to vector<64x20xbf16>
    %c7 = arith.constant 7 : index
    %c0_50 = arith.constant 0 : index
    %c0_51 = arith.constant 0 : index
    %61 = vector.load %arg2[%c7, %c0_50, %c0_51] : memref<25x20x256xbf16, #tpu.memory_space<vmem>>, vector<1x20x256xbf16>
    %62 = vector.shape_cast %61 : vector<1x20x256xbf16> to vector<20x256xbf16>
    %cst_52 = arith.constant dense<0.000000e+00> : vector<64x256xf32>
    %63 = tpu.matmul %60, %62, %cst_52 {dimension_numbers = #tpu.dot_dimension_numbers<[1], [0], [0], [1], [0, 0, 1, 1], [], []>} : vector<64x20xbf16>, vector<20x256xbf16>, vector<64x256xf32> -> vector<64x256xf32>
    %64 = arith.addf %56, %63 : vector<64x256xf32>
    %c0_53 = arith.constant 0 : index
    %c30_54 = arith.constant 30 : index
    %c1_55 = arith.constant 1 : index
    %c0_56 = arith.constant 0 : index
    %65 = vector.load %arg1[%c0_53, %c30_54, %c1_55, %c0_56] : memref<1x40x10x20xf32, #tpu.memory_space<vmem>>, vector<1x8x8x20xf32>
    %66 = vector.shape_cast %65 : vector<1x8x8x20xf32> to vector<8x8x20xf32>
    %67 = vector.shape_cast %66 : vector<8x8x20xf32> to vector<64x20xf32>
    %68 = arith.truncf %67 : vector<64x20xf32> to vector<64x20xbf16>
    %c8 = arith.constant 8 : index
    %c0_57 = arith.constant 0 : index
    %c0_58 = arith.constant 0 : index
    %69 = vector.load %arg2[%c8, %c0_57, %c0_58] : memref<25x20x256xbf16, #tpu.memory_space<vmem>>, vector<1x20x256xbf16>
    %70 = vector.shape_cast %69 : vector<1x20x256xbf16> to vector<20x256xbf16>
    %cst_59 = arith.constant dense<0.000000e+00> : vector<64x256xf32>
    %71 = tpu.matmul %68, %70, %cst_59 {dimension_numbers = #tpu.dot_dimension_numbers<[1], [0], [0], [1], [0, 0, 1, 1], [], []>} : vector<64x20xbf16>, vector<20x256xbf16>, vector<64x256xf32> -> vector<64x256xf32>
    %72 = arith.addf %64, %71 : vector<64x256xf32>
    %c0_60 = arith.constant 0 : index
    %c20_61 = arith.constant 20 : index
    %c2_62 = arith.constant 2 : index
    %c0_63 = arith.constant 0 : index
    %73 = vector.load %arg1[%c0_60, %c20_61, %c2_62, %c0_63] : memref<1x40x10x20xf32, #tpu.memory_space<vmem>>, vector<1x8x8x20xf32>
    %74 = vector.shape_cast %73 : vector<1x8x8x20xf32> to vector<8x8x20xf32>
    %75 = vector.shape_cast %74 : vector<8x8x20xf32> to vector<64x20xf32>
    %76 = arith.truncf %75 : vector<64x20xf32> to vector<64x20xbf16>
    %c9 = arith.constant 9 : index
    %c0_64 = arith.constant 0 : index
    %c0_65 = arith.constant 0 : index
    %77 = vector.load %arg2[%c9, %c0_64, %c0_65] : memref<25x20x256xbf16, #tpu.memory_space<vmem>>, vector<1x20x256xbf16>
    %78 = vector.shape_cast %77 : vector<1x20x256xbf16> to vector<20x256xbf16>
    %cst_66 = arith.constant dense<0.000000e+00> : vector<64x256xf32>
    %79 = tpu.matmul %76, %78, %cst_66 {dimension_numbers = #tpu.dot_dimension_numbers<[1], [0], [0], [1], [0, 0, 1, 1], [], []>} : vector<64x20xbf16>, vector<20x256xbf16>, vector<64x256xf32> -> vector<64x256xf32>
    %80 = arith.addf %72, %79 : vector<64x256xf32>
    %c0_67 = arith.constant 0 : index
    %c1_68 = arith.constant 1 : index
    %c0_69 = arith.constant 0 : index
    %c0_70 = arith.constant 0 : index
    %81 = vector.load %arg1[%c0_67, %c1_68, %c0_69, %c0_70] : memref<1x40x10x20xf32, #tpu.memory_space<vmem>>, vector<1x8x8x20xf32>
    %82 = vector.shape_cast %81 : vector<1x8x8x20xf32> to vector<8x8x20xf32>
    %83 = vector.shape_cast %82 : vector<8x8x20xf32> to vector<64x20xf32>
    %84 = arith.truncf %83 : vector<64x20xf32> to vector<64x20xbf16>
    %c10_71 = arith.constant 10 : index
    %c0_72 = arith.constant 0 : index
    %c0_73 = arith.constant 0 : index
    %85 = vector.load %arg2[%c10_71, %c0_72, %c0_73] : memref<25x20x256xbf16, #tpu.memory_space<vmem>>, vector<1x20x256xbf16>
    %86 = vector.shape_cast %85 : vector<1x20x256xbf16> to vector<20x256xbf16>
    %cst_74 = arith.constant dense<0.000000e+00> : vector<64x256xf32>
    %87 = tpu.matmul %84, %86, %cst_74 {dimension_numbers = #tpu.dot_dimension_numbers<[1], [0], [0], [1], [0, 0, 1, 1], [], []>} : vector<64x20xbf16>, vector<20x256xbf16>, vector<64x256xf32> -> vector<64x256xf32>
    %88 = arith.addf %80, %87 : vector<64x256xf32>
    %c0_75 = arith.constant 0 : index
    %c11 = arith.constant 11 : index
    %c0_76 = arith.constant 0 : index
    %c0_77 = arith.constant 0 : index
    %89 = vector.load %arg1[%c0_75, %c11, %c0_76, %c0_77] : memref<1x40x10x20xf32, #tpu.memory_space<vmem>>, vector<1x8x8x20xf32>
    %90 = vector.shape_cast %89 : vector<1x8x8x20xf32> to vector<8x8x20xf32>
    %91 = vector.shape_cast %90 : vector<8x8x20xf32> to vector<64x20xf32>
    %92 = arith.truncf %91 : vector<64x20xf32> to vector<64x20xbf16>
    %c11_78 = arith.constant 11 : index
    %c0_79 = arith.constant 0 : index
    %c0_80 = arith.constant 0 : index
    %93 = vector.load %arg2[%c11_78, %c0_79, %c0_80] : memref<25x20x256xbf16, #tpu.memory_space<vmem>>, vector<1x20x256xbf16>
    %94 = vector.shape_cast %93 : vector<1x20x256xbf16> to vector<20x256xbf16>
    %cst_81 = arith.constant dense<0.000000e+00> : vector<64x256xf32>
    %95 = tpu.matmul %92, %94, %cst_81 {dimension_numbers = #tpu.dot_dimension_numbers<[1], [0], [0], [1], [0, 0, 1, 1], [], []>} : vector<64x20xbf16>, vector<20x256xbf16>, vector<64x256xf32> -> vector<64x256xf32>
    %96 = arith.addf %88, %95 : vector<64x256xf32>
    %c0_82 = arith.constant 0 : index
    %c1_83 = arith.constant 1 : index
    %c1_84 = arith.constant 1 : index
    %c0_85 = arith.constant 0 : index
    %97 = vector.load %arg1[%c0_82, %c1_83, %c1_84, %c0_85] : memref<1x40x10x20xf32, #tpu.memory_space<vmem>>, vector<1x8x8x20xf32>
    %98 = vector.shape_cast %97 : vector<1x8x8x20xf32> to vector<8x8x20xf32>
    %99 = vector.shape_cast %98 : vector<8x8x20xf32> to vector<64x20xf32>
    %100 = arith.truncf %99 : vector<64x20xf32> to vector<64x20xbf16>
    %c12 = arith.constant 12 : index
    %c0_86 = arith.constant 0 : index
    %c0_87 = arith.constant 0 : index
    %101 = vector.load %arg2[%c12, %c0_86, %c0_87] : memref<25x20x256xbf16, #tpu.memory_space<vmem>>, vector<1x20x256xbf16>
    %102 = vector.shape_cast %101 : vector<1x20x256xbf16> to vector<20x256xbf16>
    %cst_88 = arith.constant dense<0.000000e+00> : vector<64x256xf32>
    %103 = tpu.matmul %100, %102, %cst_88 {dimension_numbers = #tpu.dot_dimension_numbers<[1], [0], [0], [1], [0, 0, 1, 1], [], []>} : vector<64x20xbf16>, vector<20x256xbf16>, vector<64x256xf32> -> vector<64x256xf32>
    %104 = arith.addf %96, %103 : vector<64x256xf32>
    %c0_89 = arith.constant 0 : index
    %c11_90 = arith.constant 11 : index
    %c1_91 = arith.constant 1 : index
    %c0_92 = arith.constant 0 : index
    %105 = vector.load %arg1[%c0_89, %c11_90, %c1_91, %c0_92] : memref<1x40x10x20xf32, #tpu.memory_space<vmem>>, vector<1x8x8x20xf32>
    %106 = vector.shape_cast %105 : vector<1x8x8x20xf32> to vector<8x8x20xf32>
    %107 = vector.shape_cast %106 : vector<8x8x20xf32> to vector<64x20xf32>
    %108 = arith.truncf %107 : vector<64x20xf32> to vector<64x20xbf16>
    %c13 = arith.constant 13 : index
    %c0_93 = arith.constant 0 : index
    %c0_94 = arith.constant 0 : index
    %109 = vector.load %arg2[%c13, %c0_93, %c0_94] : memref<25x20x256xbf16, #tpu.memory_space<vmem>>, vector<1x20x256xbf16>
    %110 = vector.shape_cast %109 : vector<1x20x256xbf16> to vector<20x256xbf16>
    %cst_95 = arith.constant dense<0.000000e+00> : vector<64x256xf32>
    %111 = tpu.matmul %108, %110, %cst_95 {dimension_numbers = #tpu.dot_dimension_numbers<[1], [0], [0], [1], [0, 0, 1, 1], [], []>} : vector<64x20xbf16>, vector<20x256xbf16>, vector<64x256xf32> -> vector<64x256xf32>
    %112 = arith.addf %104, %111 : vector<64x256xf32>
    %c0_96 = arith.constant 0 : index
    %c1_97 = arith.constant 1 : index
    %c2_98 = arith.constant 2 : index
    %c0_99 = arith.constant 0 : index
    %113 = vector.load %arg1[%c0_96, %c1_97, %c2_98, %c0_99] : memref<1x40x10x20xf32, #tpu.memory_space<vmem>>, vector<1x8x8x20xf32>
    %114 = vector.shape_cast %113 : vector<1x8x8x20xf32> to vector<8x8x20xf32>
    %115 = vector.shape_cast %114 : vector<8x8x20xf32> to vector<64x20xf32>
    %116 = arith.truncf %115 : vector<64x20xf32> to vector<64x20xbf16>
    %c14 = arith.constant 14 : index
    %c0_100 = arith.constant 0 : index
    %c0_101 = arith.constant 0 : index
    %117 = vector.load %arg2[%c14, %c0_100, %c0_101] : memref<25x20x256xbf16, #tpu.memory_space<vmem>>, vector<1x20x256xbf16>
    %118 = vector.shape_cast %117 : vector<1x20x256xbf16> to vector<20x256xbf16>
    %cst_102 = arith.constant dense<0.000000e+00> : vector<64x256xf32>
    %119 = tpu.matmul %116, %118, %cst_102 {dimension_numbers = #tpu.dot_dimension_numbers<[1], [0], [0], [1], [0, 0, 1, 1], [], []>} : vector<64x20xbf16>, vector<20x256xbf16>, vector<64x256xf32> -> vector<64x256xf32>
    %120 = arith.addf %112, %119 : vector<64x256xf32>
    %c0_103 = arith.constant 0 : index
    %c21 = arith.constant 21 : index
    %c0_104 = arith.constant 0 : index
    %c0_105 = arith.constant 0 : index
    %121 = vector.load %arg1[%c0_103, %c21, %c0_104, %c0_105] : memref<1x40x10x20xf32, #tpu.memory_space<vmem>>, vector<1x8x8x20xf32>
    %122 = vector.shape_cast %121 : vector<1x8x8x20xf32> to vector<8x8x20xf32>
    %123 = vector.shape_cast %122 : vector<8x8x20xf32> to vector<64x20xf32>
    %124 = arith.truncf %123 : vector<64x20xf32> to vector<64x20xbf16>
    %c15 = arith.constant 15 : index
    %c0_106 = arith.constant 0 : index
    %c0_107 = arith.constant 0 : index
    %125 = vector.load %arg2[%c15, %c0_106, %c0_107] : memref<25x20x256xbf16, #tpu.memory_space<vmem>>, vector<1x20x256xbf16>
    %126 = vector.shape_cast %125 : vector<1x20x256xbf16> to vector<20x256xbf16>
    %cst_108 = arith.constant dense<0.000000e+00> : vector<64x256xf32>
    %127 = tpu.matmul %124, %126, %cst_108 {dimension_numbers = #tpu.dot_dimension_numbers<[1], [0], [0], [1], [0, 0, 1, 1], [], []>} : vector<64x20xbf16>, vector<20x256xbf16>, vector<64x256xf32> -> vector<64x256xf32>
    %128 = arith.addf %120, %127 : vector<64x256xf32>
    %c0_109 = arith.constant 0 : index
    %c31 = arith.constant 31 : index
    %c0_110 = arith.constant 0 : index
    %c0_111 = arith.constant 0 : index
    %129 = vector.load %arg1[%c0_109, %c31, %c0_110, %c0_111] : memref<1x40x10x20xf32, #tpu.memory_space<vmem>>, vector<1x8x8x20xf32>
    %130 = vector.shape_cast %129 : vector<1x8x8x20xf32> to vector<8x8x20xf32>
    %131 = vector.shape_cast %130 : vector<8x8x20xf32> to vector<64x20xf32>
    %132 = arith.truncf %131 : vector<64x20xf32> to vector<64x20xbf16>
    %c16 = arith.constant 16 : index
    %c0_112 = arith.constant 0 : index
    %c0_113 = arith.constant 0 : index
    %133 = vector.load %arg2[%c16, %c0_112, %c0_113] : memref<25x20x256xbf16, #tpu.memory_space<vmem>>, vector<1x20x256xbf16>
    %134 = vector.shape_cast %133 : vector<1x20x256xbf16> to vector<20x256xbf16>
    %cst_114 = arith.constant dense<0.000000e+00> : vector<64x256xf32>
    %135 = tpu.matmul %132, %134, %cst_114 {dimension_numbers = #tpu.dot_dimension_numbers<[1], [0], [0], [1], [0, 0, 1, 1], [], []>} : vector<64x20xbf16>, vector<20x256xbf16>, vector<64x256xf32> -> vector<64x256xf32>
    %136 = arith.addf %128, %135 : vector<64x256xf32>
    %c0_115 = arith.constant 0 : index
    %c21_116 = arith.constant 21 : index
    %c1_117 = arith.constant 1 : index
    %c0_118 = arith.constant 0 : index
    %137 = vector.load %arg1[%c0_115, %c21_116, %c1_117, %c0_118] : memref<1x40x10x20xf32, #tpu.memory_space<vmem>>, vector<1x8x8x20xf32>
    %138 = vector.shape_cast %137 : vector<1x8x8x20xf32> to vector<8x8x20xf32>
    %139 = vector.shape_cast %138 : vector<8x8x20xf32> to vector<64x20xf32>
    %140 = arith.truncf %139 : vector<64x20xf32> to vector<64x20xbf16>
    %c17 = arith.constant 17 : index
    %c0_119 = arith.constant 0 : index
    %c0_120 = arith.constant 0 : index
    %141 = vector.load %arg2[%c17, %c0_119, %c0_120] : memref<25x20x256xbf16, #tpu.memory_space<vmem>>, vector<1x20x256xbf16>
    %142 = vector.shape_cast %141 : vector<1x20x256xbf16> to vector<20x256xbf16>
    %cst_121 = arith.constant dense<0.000000e+00> : vector<64x256xf32>
    %143 = tpu.matmul %140, %142, %cst_121 {dimension_numbers = #tpu.dot_dimension_numbers<[1], [0], [0], [1], [0, 0, 1, 1], [], []>} : vector<64x20xbf16>, vector<20x256xbf16>, vector<64x256xf32> -> vector<64x256xf32>
    %144 = arith.addf %136, %143 : vector<64x256xf32>
    %c0_122 = arith.constant 0 : index
    %c31_123 = arith.constant 31 : index
    %c1_124 = arith.constant 1 : index
    %c0_125 = arith.constant 0 : index
    %145 = vector.load %arg1[%c0_122, %c31_123, %c1_124, %c0_125] : memref<1x40x10x20xf32, #tpu.memory_space<vmem>>, vector<1x8x8x20xf32>
    %146 = vector.shape_cast %145 : vector<1x8x8x20xf32> to vector<8x8x20xf32>
    %147 = vector.shape_cast %146 : vector<8x8x20xf32> to vector<64x20xf32>
    %148 = arith.truncf %147 : vector<64x20xf32> to vector<64x20xbf16>
    %c18 = arith.constant 18 : index
    %c0_126 = arith.constant 0 : index
    %c0_127 = arith.constant 0 : index
    %149 = vector.load %arg2[%c18, %c0_126, %c0_127] : memref<25x20x256xbf16, #tpu.memory_space<vmem>>, vector<1x20x256xbf16>
    %150 = vector.shape_cast %149 : vector<1x20x256xbf16> to vector<20x256xbf16>
    %cst_128 = arith.constant dense<0.000000e+00> : vector<64x256xf32>
    %151 = tpu.matmul %148, %150, %cst_128 {dimension_numbers = #tpu.dot_dimension_numbers<[1], [0], [0], [1], [0, 0, 1, 1], [], []>} : vector<64x20xbf16>, vector<20x256xbf16>, vector<64x256xf32> -> vector<64x256xf32>
    %152 = arith.addf %144, %151 : vector<64x256xf32>
    %c0_129 = arith.constant 0 : index
    %c21_130 = arith.constant 21 : index
    %c2_131 = arith.constant 2 : index
    %c0_132 = arith.constant 0 : index
    %153 = vector.load %arg1[%c0_129, %c21_130, %c2_131, %c0_132] : memref<1x40x10x20xf32, #tpu.memory_space<vmem>>, vector<1x8x8x20xf32>
    %154 = vector.shape_cast %153 : vector<1x8x8x20xf32> to vector<8x8x20xf32>
    %155 = vector.shape_cast %154 : vector<8x8x20xf32> to vector<64x20xf32>
    %156 = arith.truncf %155 : vector<64x20xf32> to vector<64x20xbf16>
    %c19 = arith.constant 19 : index
    %c0_133 = arith.constant 0 : index
    %c0_134 = arith.constant 0 : index
    %157 = vector.load %arg2[%c19, %c0_133, %c0_134] : memref<25x20x256xbf16, #tpu.memory_space<vmem>>, vector<1x20x256xbf16>
    %158 = vector.shape_cast %157 : vector<1x20x256xbf16> to vector<20x256xbf16>
    %cst_135 = arith.constant dense<0.000000e+00> : vector<64x256xf32>
    %159 = tpu.matmul %156, %158, %cst_135 {dimension_numbers = #tpu.dot_dimension_numbers<[1], [0], [0], [1], [0, 0, 1, 1], [], []>} : vector<64x20xbf16>, vector<20x256xbf16>, vector<64x256xf32> -> vector<64x256xf32>
    %160 = arith.addf %152, %159 : vector<64x256xf32>
    %c0_136 = arith.constant 0 : index
    %c2_137 = arith.constant 2 : index
    %c0_138 = arith.constant 0 : index
    %c0_139 = arith.constant 0 : index
    %161 = vector.load %arg1[%c0_136, %c2_137, %c0_138, %c0_139] : memref<1x40x10x20xf32, #tpu.memory_space<vmem>>, vector<1x8x8x20xf32>
    %162 = vector.shape_cast %161 : vector<1x8x8x20xf32> to vector<8x8x20xf32>
    %163 = vector.shape_cast %162 : vector<8x8x20xf32> to vector<64x20xf32>
    %164 = arith.truncf %163 : vector<64x20xf32> to vector<64x20xbf16>
    %c20_140 = arith.constant 20 : index
    %c0_141 = arith.constant 0 : index
    %c0_142 = arith.constant 0 : index
    %165 = vector.load %arg2[%c20_140, %c0_141, %c0_142] : memref<25x20x256xbf16, #tpu.memory_space<vmem>>, vector<1x20x256xbf16>
    %166 = vector.shape_cast %165 : vector<1x20x256xbf16> to vector<20x256xbf16>
    %cst_143 = arith.constant dense<0.000000e+00> : vector<64x256xf32>
    %167 = tpu.matmul %164, %166, %cst_143 {dimension_numbers = #tpu.dot_dimension_numbers<[1], [0], [0], [1], [0, 0, 1, 1], [], []>} : vector<64x20xbf16>, vector<20x256xbf16>, vector<64x256xf32> -> vector<64x256xf32>
    %168 = arith.addf %160, %167 : vector<64x256xf32>
    %c0_144 = arith.constant 0 : index
    %c12_145 = arith.constant 12 : index
    %c0_146 = arith.constant 0 : index
    %c0_147 = arith.constant 0 : index
    %169 = vector.load %arg1[%c0_144, %c12_145, %c0_146, %c0_147] : memref<1x40x10x20xf32, #tpu.memory_space<vmem>>, vector<1x8x8x20xf32>
    %170 = vector.shape_cast %169 : vector<1x8x8x20xf32> to vector<8x8x20xf32>
    %171 = vector.shape_cast %170 : vector<8x8x20xf32> to vector<64x20xf32>
    %172 = arith.truncf %171 : vector<64x20xf32> to vector<64x20xbf16>
    %c21_148 = arith.constant 21 : index
    %c0_149 = arith.constant 0 : index
    %c0_150 = arith.constant 0 : index
    %173 = vector.load %arg2[%c21_148, %c0_149, %c0_150] : memref<25x20x256xbf16, #tpu.memory_space<vmem>>, vector<1x20x256xbf16>
    %174 = vector.shape_cast %173 : vector<1x20x256xbf16> to vector<20x256xbf16>
    %cst_151 = arith.constant dense<0.000000e+00> : vector<64x256xf32>
    %175 = tpu.matmul %172, %174, %cst_151 {dimension_numbers = #tpu.dot_dimension_numbers<[1], [0], [0], [1], [0, 0, 1, 1], [], []>} : vector<64x20xbf16>, vector<20x256xbf16>, vector<64x256xf32> -> vector<64x256xf32>
    %176 = arith.addf %168, %175 : vector<64x256xf32>
    %c0_152 = arith.constant 0 : index
    %c2_153 = arith.constant 2 : index
    %c1_154 = arith.constant 1 : index
    %c0_155 = arith.constant 0 : index
    %177 = vector.load %arg1[%c0_152, %c2_153, %c1_154, %c0_155] : memref<1x40x10x20xf32, #tpu.memory_space<vmem>>, vector<1x8x8x20xf32>
    %178 = vector.shape_cast %177 : vector<1x8x8x20xf32> to vector<8x8x20xf32>
    %179 = vector.shape_cast %178 : vector<8x8x20xf32> to vector<64x20xf32>
    %180 = arith.truncf %179 : vector<64x20xf32> to vector<64x20xbf16>
    %c22 = arith.constant 22 : index
    %c0_156 = arith.constant 0 : index
    %c0_157 = arith.constant 0 : index
    %181 = vector.load %arg2[%c22, %c0_156, %c0_157] : memref<25x20x256xbf16, #tpu.memory_space<vmem>>, vector<1x20x256xbf16>
    %182 = vector.shape_cast %181 : vector<1x20x256xbf16> to vector<20x256xbf16>
    %cst_158 = arith.constant dense<0.000000e+00> : vector<64x256xf32>
    %183 = tpu.matmul %180, %182, %cst_158 {dimension_numbers = #tpu.dot_dimension_numbers<[1], [0], [0], [1], [0, 0, 1, 1], [], []>} : vector<64x20xbf16>, vector<20x256xbf16>, vector<64x256xf32> -> vector<64x256xf32>
    %184 = arith.addf %176, %183 : vector<64x256xf32>
    %c0_159 = arith.constant 0 : index
    %c12_160 = arith.constant 12 : index
    %c1_161 = arith.constant 1 : index
    %c0_162 = arith.constant 0 : index
    %185 = vector.load %arg1[%c0_159, %c12_160, %c1_161, %c0_162] : memref<1x40x10x20xf32, #tpu.memory_space<vmem>>, vector<1x8x8x20xf32>
    %186 = vector.shape_cast %185 : vector<1x8x8x20xf32> to vector<8x8x20xf32>
    %187 = vector.shape_cast %186 : vector<8x8x20xf32> to vector<64x20xf32>
    %188 = arith.truncf %187 : vector<64x20xf32> to vector<64x20xbf16>
    %c23 = arith.constant 23 : index
    %c0_163 = arith.constant 0 : index
    %c0_164 = arith.constant 0 : index
    %189 = vector.load %arg2[%c23, %c0_163, %c0_164] : memref<25x20x256xbf16, #tpu.memory_space<vmem>>, vector<1x20x256xbf16>
    %190 = vector.shape_cast %189 : vector<1x20x256xbf16> to vector<20x256xbf16>
    %cst_165 = arith.constant dense<0.000000e+00> : vector<64x256xf32>
    %191 = tpu.matmul %188, %190, %cst_165 {dimension_numbers = #tpu.dot_dimension_numbers<[1], [0], [0], [1], [0, 0, 1, 1], [], []>} : vector<64x20xbf16>, vector<20x256xbf16>, vector<64x256xf32> -> vector<64x256xf32>
    %192 = arith.addf %184, %191 : vector<64x256xf32>
    %c0_166 = arith.constant 0 : index
    %c2_167 = arith.constant 2 : index
    %c2_168 = arith.constant 2 : index
    %c0_169 = arith.constant 0 : index
    %193 = vector.load %arg1[%c0_166, %c2_167, %c2_168, %c0_169] : memref<1x40x10x20xf32, #tpu.memory_space<vmem>>, vector<1x8x8x20xf32>
    %194 = vector.shape_cast %193 : vector<1x8x8x20xf32> to vector<8x8x20xf32>
    %195 = vector.shape_cast %194 : vector<8x8x20xf32> to vector<64x20xf32>
    %196 = arith.truncf %195 : vector<64x20xf32> to vector<64x20xbf16>
    %c24 = arith.constant 24 : index
    %c0_170 = arith.constant 0 : index
    %c0_171 = arith.constant 0 : index
    %197 = vector.load %arg2[%c24, %c0_170, %c0_171] : memref<25x20x256xbf16, #tpu.memory_space<vmem>>, vector<1x20x256xbf16>
    %198 = vector.shape_cast %197 : vector<1x20x256xbf16> to vector<20x256xbf16>
    %cst_172 = arith.constant dense<0.000000e+00> : vector<64x256xf32>
    %199 = tpu.matmul %196, %198, %cst_172 {dimension_numbers = #tpu.dot_dimension_numbers<[1], [0], [0], [1], [0, 0, 1, 1], [], []>} : vector<64x20xbf16>, vector<20x256xbf16>, vector<64x256xf32> -> vector<64x256xf32>
    %200 = arith.addf %192, %199 : vector<64x256xf32>
    %c0_173 = arith.constant 0 : index
    %c0_174 = arith.constant 0 : index
    %201 = vector.load %arg3[%c0_173, %c0_174] : memref<1x256xf32, #tpu.memory_space<vmem>>, vector<1x256xf32>
    %202 = vector.broadcast %201 : vector<1x256xf32> to vector<64x256xf32>
    %203 = arith.addf %200, %202 : vector<64x256xf32>
    %cst_175 = arith.constant 0.000000e+00 : f32
    %204 = vector.broadcast %cst_175 : f32 to vector<64x256xf32>
    %205 = arith.maximumf %203, %204 : vector<64x256xf32>
    %206 = vector.extract_strided_slice %205 {offsets = [0, 0], sizes = [8, 256], strides = [1, 1]} : vector<64x256xf32> to vector<8x256xf32>
    %207 = vector.extract_strided_slice %205 {offsets = [8, 0], sizes = [8, 256], strides = [1, 1]} : vector<64x256xf32> to vector<8x256xf32>
    %208 = arith.maximumf %206, %207 : vector<8x256xf32>
    %209 = vector.extract_strided_slice %205 {offsets = [8, 0], sizes = [8, 256], strides = [1, 1]} : vector<64x256xf32> to vector<8x256xf32>
    %210 = vector.extract_strided_slice %205 {offsets = [16, 0], sizes = [8, 256], strides = [1, 1]} : vector<64x256xf32> to vector<8x256xf32>
    %211 = arith.maximumf %209, %210 : vector<8x256xf32>
    %212 = vector.extract_strided_slice %205 {offsets = [24, 0], sizes = [8, 256], strides = [1, 1]} : vector<64x256xf32> to vector<8x256xf32>
    %213 = arith.maximumf %211, %212 : vector<8x256xf32>
    %214 = vector.extract_strided_slice %205 {offsets = [24, 0], sizes = [8, 256], strides = [1, 1]} : vector<64x256xf32> to vector<8x256xf32>
    %215 = vector.extract_strided_slice %205 {offsets = [32, 0], sizes = [8, 256], strides = [1, 1]} : vector<64x256xf32> to vector<8x256xf32>
    %216 = arith.maximumf %214, %215 : vector<8x256xf32>
    %217 = vector.extract_strided_slice %205 {offsets = [40, 0], sizes = [8, 256], strides = [1, 1]} : vector<64x256xf32> to vector<8x256xf32>
    %218 = arith.maximumf %216, %217 : vector<8x256xf32>
    %219 = vector.extract_strided_slice %205 {offsets = [40, 0], sizes = [8, 256], strides = [1, 1]} : vector<64x256xf32> to vector<8x256xf32>
    %220 = vector.extract_strided_slice %205 {offsets = [48, 0], sizes = [8, 256], strides = [1, 1]} : vector<64x256xf32> to vector<8x256xf32>
    %221 = arith.maximumf %219, %220 : vector<8x256xf32>
    %222 = vector.extract_strided_slice %205 {offsets = [56, 0], sizes = [8, 256], strides = [1, 1]} : vector<64x256xf32> to vector<8x256xf32>
    %223 = arith.maximumf %221, %222 : vector<8x256xf32>
    %224 = tpu.concatenate %208, %213, %218, %223 in 0 : vector<8x256xf32>, vector<8x256xf32>, vector<8x256xf32>, vector<8x256xf32> -> vector<32x256xf32>
    %225 = vector.extract_strided_slice %224 {offsets = [0, 0], sizes = [1, 256], strides = [1, 1]} : vector<32x256xf32> to vector<1x256xf32>
    %226 = vector.extract_strided_slice %224 {offsets = [1, 0], sizes = [1, 256], strides = [1, 1]} : vector<32x256xf32> to vector<1x256xf32>
    %227 = arith.maximumf %225, %226 : vector<1x256xf32>
    %228 = vector.extract_strided_slice %224 {offsets = [1, 0], sizes = [1, 256], strides = [1, 1]} : vector<32x256xf32> to vector<1x256xf32>
    %229 = vector.extract_strided_slice %224 {offsets = [2, 0], sizes = [1, 256], strides = [1, 1]} : vector<32x256xf32> to vector<1x256xf32>
    %230 = arith.maximumf %228, %229 : vector<1x256xf32>
    %231 = vector.extract_strided_slice %224 {offsets = [3, 0], sizes = [1, 256], strides = [1, 1]} : vector<32x256xf32> to vector<1x256xf32>
    %232 = arith.maximumf %230, %231 : vector<1x256xf32>
    %233 = vector.extract_strided_slice %224 {offsets = [3, 0], sizes = [1, 256], strides = [1, 1]} : vector<32x256xf32> to vector<1x256xf32>
    %234 = vector.extract_strided_slice %224 {offsets = [4, 0], sizes = [1, 256], strides = [1, 1]} : vector<32x256xf32> to vector<1x256xf32>
    %235 = arith.maximumf %233, %234 : vector<1x256xf32>
    %236 = vector.extract_strided_slice %224 {offsets = [5, 0], sizes = [1, 256], strides = [1, 1]} : vector<32x256xf32> to vector<1x256xf32>
    %237 = arith.maximumf %235, %236 : vector<1x256xf32>
    %238 = vector.extract_strided_slice %224 {offsets = [5, 0], sizes = [1, 256], strides = [1, 1]} : vector<32x256xf32> to vector<1x256xf32>
    %239 = vector.extract_strided_slice %224 {offsets = [6, 0], sizes = [1, 256], strides = [1, 1]} : vector<32x256xf32> to vector<1x256xf32>
    %240 = arith.maximumf %238, %239 : vector<1x256xf32>
    %241 = vector.extract_strided_slice %224 {offsets = [7, 0], sizes = [1, 256], strides = [1, 1]} : vector<32x256xf32> to vector<1x256xf32>
    %242 = arith.maximumf %240, %241 : vector<1x256xf32>
    %243 = vector.extract_strided_slice %224 {offsets = [8, 0], sizes = [1, 256], strides = [1, 1]} : vector<32x256xf32> to vector<1x256xf32>
    %244 = vector.extract_strided_slice %224 {offsets = [9, 0], sizes = [1, 256], strides = [1, 1]} : vector<32x256xf32> to vector<1x256xf32>
    %245 = arith.maximumf %243, %244 : vector<1x256xf32>
    %246 = vector.extract_strided_slice %224 {offsets = [9, 0], sizes = [1, 256], strides = [1, 1]} : vector<32x256xf32> to vector<1x256xf32>
    %247 = vector.extract_strided_slice %224 {offsets = [10, 0], sizes = [1, 256], strides = [1, 1]} : vector<32x256xf32> to vector<1x256xf32>
    %248 = arith.maximumf %246, %247 : vector<1x256xf32>
    %249 = vector.extract_strided_slice %224 {offsets = [11, 0], sizes = [1, 256], strides = [1, 1]} : vector<32x256xf32> to vector<1x256xf32>
    %250 = arith.maximumf %248, %249 : vector<1x256xf32>
    %251 = vector.extract_strided_slice %224 {offsets = [11, 0], sizes = [1, 256], strides = [1, 1]} : vector<32x256xf32> to vector<1x256xf32>
    %252 = vector.extract_strided_slice %224 {offsets = [12, 0], sizes = [1, 256], strides = [1, 1]} : vector<32x256xf32> to vector<1x256xf32>
    %253 = arith.maximumf %251, %252 : vector<1x256xf32>
    %254 = vector.extract_strided_slice %224 {offsets = [13, 0], sizes = [1, 256], strides = [1, 1]} : vector<32x256xf32> to vector<1x256xf32>
    %255 = arith.maximumf %253, %254 : vector<1x256xf32>
    %256 = vector.extract_strided_slice %224 {offsets = [13, 0], sizes = [1, 256], strides = [1, 1]} : vector<32x256xf32> to vector<1x256xf32>
    %257 = vector.extract_strided_slice %224 {offsets = [14, 0], sizes = [1, 256], strides = [1, 1]} : vector<32x256xf32> to vector<1x256xf32>
    %258 = arith.maximumf %256, %257 : vector<1x256xf32>
    %259 = vector.extract_strided_slice %224 {offsets = [15, 0], sizes = [1, 256], strides = [1, 1]} : vector<32x256xf32> to vector<1x256xf32>
    %260 = arith.maximumf %258, %259 : vector<1x256xf32>
    %261 = vector.extract_strided_slice %224 {offsets = [16, 0], sizes = [1, 256], strides = [1, 1]} : vector<32x256xf32> to vector<1x256xf32>
    %262 = vector.extract_strided_slice %224 {offsets = [17, 0], sizes = [1, 256], strides = [1, 1]} : vector<32x256xf32> to vector<1x256xf32>
    %263 = arith.maximumf %261, %262 : vector<1x256xf32>
    %264 = vector.extract_strided_slice %224 {offsets = [17, 0], sizes = [1, 256], strides = [1, 1]} : vector<32x256xf32> to vector<1x256xf32>
    %265 = vector.extract_strided_slice %224 {offsets = [18, 0], sizes = [1, 256], strides = [1, 1]} : vector<32x256xf32> to vector<1x256xf32>
    %266 = arith.maximumf %264, %265 : vector<1x256xf32>
    %267 = vector.extract_strided_slice %224 {offsets = [19, 0], sizes = [1, 256], strides = [1, 1]} : vector<32x256xf32> to vector<1x256xf32>
    %268 = arith.maximumf %266, %267 : vector<1x256xf32>
    %269 = vector.extract_strided_slice %224 {offsets = [19, 0], sizes = [1, 256], strides = [1, 1]} : vector<32x256xf32> to vector<1x256xf32>
    %270 = vector.extract_strided_slice %224 {offsets = [20, 0], sizes = [1, 256], strides = [1, 1]} : vector<32x256xf32> to vector<1x256xf32>
    %271 = arith.maximumf %269, %270 : vector<1x256xf32>
    %272 = vector.extract_strided_slice %224 {offsets = [21, 0], sizes = [1, 256], strides = [1, 1]} : vector<32x256xf32> to vector<1x256xf32>
    %273 = arith.maximumf %271, %272 : vector<1x256xf32>
    %274 = vector.extract_strided_slice %224 {offsets = [21, 0], sizes = [1, 256], strides = [1, 1]} : vector<32x256xf32> to vector<1x256xf32>
    %275 = vector.extract_strided_slice %224 {offsets = [22, 0], sizes = [1, 256], strides = [1, 1]} : vector<32x256xf32> to vector<1x256xf32>
    %276 = arith.maximumf %274, %275 : vector<1x256xf32>
    %277 = vector.extract_strided_slice %224 {offsets = [23, 0], sizes = [1, 256], strides = [1, 1]} : vector<32x256xf32> to vector<1x256xf32>
    %278 = arith.maximumf %276, %277 : vector<1x256xf32>
    %279 = vector.extract_strided_slice %224 {offsets = [24, 0], sizes = [1, 256], strides = [1, 1]} : vector<32x256xf32> to vector<1x256xf32>
    %280 = vector.extract_strided_slice %224 {offsets = [25, 0], sizes = [1, 256], strides = [1, 1]} : vector<32x256xf32> to vector<1x256xf32>
    %281 = arith.maximumf %279, %280 : vector<1x256xf32>
    %282 = vector.extract_strided_slice %224 {offsets = [25, 0], sizes = [1, 256], strides = [1, 1]} : vector<32x256xf32> to vector<1x256xf32>
    %283 = vector.extract_strided_slice %224 {offsets = [26, 0], sizes = [1, 256], strides = [1, 1]} : vector<32x256xf32> to vector<1x256xf32>
    %284 = arith.maximumf %282, %283 : vector<1x256xf32>
    %285 = vector.extract_strided_slice %224 {offsets = [27, 0], sizes = [1, 256], strides = [1, 1]} : vector<32x256xf32> to vector<1x256xf32>
    %286 = arith.maximumf %284, %285 : vector<1x256xf32>
    %287 = vector.extract_strided_slice %224 {offsets = [27, 0], sizes = [1, 256], strides = [1, 1]} : vector<32x256xf32> to vector<1x256xf32>
    %288 = vector.extract_strided_slice %224 {offsets = [28, 0], sizes = [1, 256], strides = [1, 1]} : vector<32x256xf32> to vector<1x256xf32>
    %289 = arith.maximumf %287, %288 : vector<1x256xf32>
    %290 = vector.extract_strided_slice %224 {offsets = [29, 0], sizes = [1, 256], strides = [1, 1]} : vector<32x256xf32> to vector<1x256xf32>
    %291 = arith.maximumf %289, %290 : vector<1x256xf32>
    %292 = vector.extract_strided_slice %224 {offsets = [29, 0], sizes = [1, 256], strides = [1, 1]} : vector<32x256xf32> to vector<1x256xf32>
    %293 = vector.extract_strided_slice %224 {offsets = [30, 0], sizes = [1, 256], strides = [1, 1]} : vector<32x256xf32> to vector<1x256xf32>
    %294 = arith.maximumf %292, %293 : vector<1x256xf32>
    %295 = vector.extract_strided_slice %224 {offsets = [31, 0], sizes = [1, 256], strides = [1, 1]} : vector<32x256xf32> to vector<1x256xf32>
    %296 = arith.maximumf %294, %295 : vector<1x256xf32>
    %297 = tpu.concatenate %227, %232, %237, %242, %245, %250, %255, %260, %263, %268, %273, %278, %281, %286, %291, %296 in 0 : vector<1x256xf32>, vector<1x256xf32>, vector<1x256xf32>, vector<1x256xf32>, vector<1x256xf32>, vector<1x256xf32>, vector<1x256xf32>, vector<1x256xf32>, vector<1x256xf32>, vector<1x256xf32>, vector<1x256xf32>, vector<1x256xf32>, vector<1x256xf32>, vector<1x256xf32>, vector<1x256xf32>, vector<1x256xf32> -> vector<16x256xf32>
    %298 = vector.extract_strided_slice %297 {offsets = [0, 0], sizes = [16, 32], strides = [1, 1]} : vector<16x256xf32> to vector<16x32xf32>
    %299 = vector.extract_strided_slice %297 {offsets = [0, 32], sizes = [16, 32], strides = [1, 1]} : vector<16x256xf32> to vector<16x32xf32>
    %300 = arith.maximumf %298, %299 : vector<16x32xf32>
    %301 = vector.extract_strided_slice %297 {offsets = [0, 32], sizes = [16, 32], strides = [1, 1]} : vector<16x256xf32> to vector<16x32xf32>
    %302 = vector.extract_strided_slice %297 {offsets = [0, 64], sizes = [16, 32], strides = [1, 1]} : vector<16x256xf32> to vector<16x32xf32>
    %303 = arith.maximumf %301, %302 : vector<16x32xf32>
    %304 = vector.extract_strided_slice %297 {offsets = [0, 96], sizes = [16, 32], strides = [1, 1]} : vector<16x256xf32> to vector<16x32xf32>
    %305 = arith.maximumf %303, %304 : vector<16x32xf32>
    %306 = vector.extract_strided_slice %297 {offsets = [0, 96], sizes = [16, 32], strides = [1, 1]} : vector<16x256xf32> to vector<16x32xf32>
    %307 = vector.extract_strided_slice %297 {offsets = [0, 128], sizes = [16, 32], strides = [1, 1]} : vector<16x256xf32> to vector<16x32xf32>
    %308 = arith.maximumf %306, %307 : vector<16x32xf32>
    %309 = vector.extract_strided_slice %297 {offsets = [0, 160], sizes = [16, 32], strides = [1, 1]} : vector<16x256xf32> to vector<16x32xf32>
    %310 = arith.maximumf %308, %309 : vector<16x32xf32>
    %311 = vector.extract_strided_slice %297 {offsets = [0, 160], sizes = [16, 32], strides = [1, 1]} : vector<16x256xf32> to vector<16x32xf32>
    %312 = vector.extract_strided_slice %297 {offsets = [0, 192], sizes = [16, 32], strides = [1, 1]} : vector<16x256xf32> to vector<16x32xf32>
    %313 = arith.maximumf %311, %312 : vector<16x32xf32>
    %314 = vector.extract_strided_slice %297 {offsets = [0, 224], sizes = [16, 32], strides = [1, 1]} : vector<16x256xf32> to vector<16x32xf32>
    %315 = arith.maximumf %313, %314 : vector<16x32xf32>
    %316 = tpu.concatenate %300, %305, %310, %315 in 1 : vector<16x32xf32>, vector<16x32xf32>, vector<16x32xf32>, vector<16x32xf32> -> vector<16x128xf32>
    %cst_176 = arith.constant 0.000000e+00 : f32
    %317 = vector.broadcast %cst_176 : f32 to vector<5x128xf32>
    %318 = tpu.concatenate %317, %316, %317 in 0 : vector<5x128xf32>, vector<16x128xf32>, vector<5x128xf32> -> vector<26x128xf32>
    %319 = tpu.iota {dimensions = array<i32: 0>} : vector<16x1xi32>
    %c4_i32 = arith.constant 4 : i32
    %c0_i32 = arith.constant 0 : i32
    %320 = arith.cmpi eq, %c4_i32, %c0_i32 : i32
    %c1_i32 = arith.constant 1 : i32
    %321 = arith.select %320, %c1_i32, %c4_i32 : i32
    %322 = vector.broadcast %321 : i32 to vector<16x1xi32>
    %323 = arith.remsi %319, %322 : vector<16x1xi32>
    %c0_i32_177 = arith.constant 0 : i32
    %324 = vector.broadcast %c0_i32_177 : i32 to vector<16x1xi32>
    %325 = arith.cmpi ne, %323, %324 : vector<16x1xi32>
    %c0_i32_178 = arith.constant 0 : i32
    %326 = vector.broadcast %c0_i32_178 : i32 to vector<16x1xi32>
    %327 = arith.cmpi slt, %323, %326 : vector<16x1xi32>
    %c0_i32_179 = arith.constant 0 : i32
    %328 = arith.cmpi slt, %321, %c0_i32_179 : i32
    %329 = vector.broadcast %328 : i1 to vector<16x1xi1>
    %330 = vector.broadcast %329 : vector<16x1xi1> to vector<16x1xi1>
    %331 = arith.xori %327, %330 : vector<16x1xi1>
    %332 = arith.andi %331, %325 : vector<16x1xi1>
    %333 = vector.broadcast %321 : i32 to vector<16x1xi32>
    %334 = arith.addi %323, %333 : vector<16x1xi32>
    %335 = arith.select %332, %334, %323 : vector<16x1xi1>, vector<16x1xi32>
    %cst_180 = arith.constant 0.000000e+00 : f32
    %336 = vector.broadcast %cst_180 : f32 to vector<16x256xf32>
    %337 = vector.extract_strided_slice %318 {offsets = [0, 0], sizes = [16, 128], strides = [1, 1]} : vector<26x128xf32> to vector<16x128xf32>
    %c-1_i32 = arith.constant -1 : i32
    %338 = vector.broadcast %c-1_i32 : i32 to vector<16x1xi32>
    %339 = arith.addi %335, %338 : vector<16x1xi32>
    %c0_i32_181 = arith.constant 0 : i32
    %340 = vector.broadcast %c0_i32_181 : i32 to vector<16x1xi32>
    %341 = arith.cmpi sge, %339, %340 : vector<16x1xi32>
    %c-1_i32_182 = arith.constant -1 : i32
    %342 = vector.broadcast %c-1_i32_182 : i32 to vector<16x1xi32>
    %343 = arith.addi %335, %342 : vector<16x1xi32>
    %c3_i32 = arith.constant 3 : i32
    %344 = vector.broadcast %c3_i32 : i32 to vector<16x1xi32>
    %345 = arith.cmpi sle, %343, %344 : vector<16x1xi32>
    %346 = arith.andi %341, %345 : vector<16x1xi1>
    %cst_183 = arith.constant 0.000000e+00 : f32
    %347 = vector.broadcast %cst_183 : f32 to vector<16x128xf32>
    %348 = vector.shape_cast %346 : vector<16x1xi1> to vector<16x1xi1>
    %349 = vector.broadcast %348 : vector<16x1xi1> to vector<16x128xi1>
    %350 = arith.select %349, %337, %347 : vector<16x128xi1>, vector<16x128xf32>
    %351 = arith.truncf %350 : vector<16x128xf32> to vector<16x128xbf16>
    %c0_184 = arith.constant 0 : index
    %c0_185 = arith.constant 0 : index
    %c0_186 = arith.constant 0 : index
    %352 = vector.load %arg4[%c0_184, %c0_185, %c0_186] : memref<9x128x256xbf16, #tpu.memory_space<vmem>>, vector<1x128x256xbf16>
    %353 = vector.shape_cast %352 : vector<1x128x256xbf16> to vector<128x256xbf16>
    %cst_187 = arith.constant dense<0.000000e+00> : vector<16x256xf32>
    %354 = tpu.matmul %351, %353, %cst_187 {dimension_numbers = #tpu.dot_dimension_numbers<[1], [0], [0], [1], [0, 0, 1, 1], [], []>} : vector<16x128xbf16>, vector<128x256xbf16>, vector<16x256xf32> -> vector<16x256xf32>
    %355 = arith.addf %336, %354 : vector<16x256xf32>
    %356 = vector.extract_strided_slice %318 {offsets = [1, 0], sizes = [16, 128], strides = [1, 1]} : vector<26x128xf32> to vector<16x128xf32>
    %357 = arith.truncf %356 : vector<16x128xf32> to vector<16x128xbf16>
    %c1_188 = arith.constant 1 : index
    %c0_189 = arith.constant 0 : index
    %c0_190 = arith.constant 0 : index
    %358 = vector.load %arg4[%c1_188, %c0_189, %c0_190] : memref<9x128x256xbf16, #tpu.memory_space<vmem>>, vector<1x128x256xbf16>
    %359 = vector.shape_cast %358 : vector<1x128x256xbf16> to vector<128x256xbf16>
    %cst_191 = arith.constant dense<0.000000e+00> : vector<16x256xf32>
    %360 = tpu.matmul %357, %359, %cst_191 {dimension_numbers = #tpu.dot_dimension_numbers<[1], [0], [0], [1], [0, 0, 1, 1], [], []>} : vector<16x128xbf16>, vector<128x256xbf16>, vector<16x256xf32> -> vector<16x256xf32>
    %361 = arith.addf %355, %360 : vector<16x256xf32>
    %362 = vector.extract_strided_slice %318 {offsets = [2, 0], sizes = [16, 128], strides = [1, 1]} : vector<26x128xf32> to vector<16x128xf32>
    %c1_i32_192 = arith.constant 1 : i32
    %363 = vector.broadcast %c1_i32_192 : i32 to vector<16x1xi32>
    %364 = arith.addi %335, %363 : vector<16x1xi32>
    %c0_i32_193 = arith.constant 0 : i32
    %365 = vector.broadcast %c0_i32_193 : i32 to vector<16x1xi32>
    %366 = arith.cmpi sge, %364, %365 : vector<16x1xi32>
    %c1_i32_194 = arith.constant 1 : i32
    %367 = vector.broadcast %c1_i32_194 : i32 to vector<16x1xi32>
    %368 = arith.addi %335, %367 : vector<16x1xi32>
    %c3_i32_195 = arith.constant 3 : i32
    %369 = vector.broadcast %c3_i32_195 : i32 to vector<16x1xi32>
    %370 = arith.cmpi sle, %368, %369 : vector<16x1xi32>
    %371 = arith.andi %366, %370 : vector<16x1xi1>
    %cst_196 = arith.constant 0.000000e+00 : f32
    %372 = vector.broadcast %cst_196 : f32 to vector<16x128xf32>
    %373 = vector.shape_cast %371 : vector<16x1xi1> to vector<16x1xi1>
    %374 = vector.broadcast %373 : vector<16x1xi1> to vector<16x128xi1>
    %375 = arith.select %374, %362, %372 : vector<16x128xi1>, vector<16x128xf32>
    %376 = arith.truncf %375 : vector<16x128xf32> to vector<16x128xbf16>
    %c2_197 = arith.constant 2 : index
    %c0_198 = arith.constant 0 : index
    %c0_199 = arith.constant 0 : index
    %377 = vector.load %arg4[%c2_197, %c0_198, %c0_199] : memref<9x128x256xbf16, #tpu.memory_space<vmem>>, vector<1x128x256xbf16>
    %378 = vector.shape_cast %377 : vector<1x128x256xbf16> to vector<128x256xbf16>
    %cst_200 = arith.constant dense<0.000000e+00> : vector<16x256xf32>
    %379 = tpu.matmul %376, %378, %cst_200 {dimension_numbers = #tpu.dot_dimension_numbers<[1], [0], [0], [1], [0, 0, 1, 1], [], []>} : vector<16x128xbf16>, vector<128x256xbf16>, vector<16x256xf32> -> vector<16x256xf32>
    %380 = arith.addf %361, %379 : vector<16x256xf32>
    %381 = vector.extract_strided_slice %318 {offsets = [4, 0], sizes = [16, 128], strides = [1, 1]} : vector<26x128xf32> to vector<16x128xf32>
    %c-1_i32_201 = arith.constant -1 : i32
    %382 = vector.broadcast %c-1_i32_201 : i32 to vector<16x1xi32>
    %383 = arith.addi %335, %382 : vector<16x1xi32>
    %c0_i32_202 = arith.constant 0 : i32
    %384 = vector.broadcast %c0_i32_202 : i32 to vector<16x1xi32>
    %385 = arith.cmpi sge, %383, %384 : vector<16x1xi32>
    %c-1_i32_203 = arith.constant -1 : i32
    %386 = vector.broadcast %c-1_i32_203 : i32 to vector<16x1xi32>
    %387 = arith.addi %335, %386 : vector<16x1xi32>
    %c3_i32_204 = arith.constant 3 : i32
    %388 = vector.broadcast %c3_i32_204 : i32 to vector<16x1xi32>
    %389 = arith.cmpi sle, %387, %388 : vector<16x1xi32>
    %390 = arith.andi %385, %389 : vector<16x1xi1>
    %cst_205 = arith.constant 0.000000e+00 : f32
    %391 = vector.broadcast %cst_205 : f32 to vector<16x128xf32>
    %392 = vector.shape_cast %390 : vector<16x1xi1> to vector<16x1xi1>
    %393 = vector.broadcast %392 : vector<16x1xi1> to vector<16x128xi1>
    %394 = arith.select %393, %381, %391 : vector<16x128xi1>, vector<16x128xf32>
    %395 = arith.truncf %394 : vector<16x128xf32> to vector<16x128xbf16>
    %c3_206 = arith.constant 3 : index
    %c0_207 = arith.constant 0 : index
    %c0_208 = arith.constant 0 : index
    %396 = vector.load %arg4[%c3_206, %c0_207, %c0_208] : memref<9x128x256xbf16, #tpu.memory_space<vmem>>, vector<1x128x256xbf16>
    %397 = vector.shape_cast %396 : vector<1x128x256xbf16> to vector<128x256xbf16>
    %cst_209 = arith.constant dense<0.000000e+00> : vector<16x256xf32>
    %398 = tpu.matmul %395, %397, %cst_209 {dimension_numbers = #tpu.dot_dimension_numbers<[1], [0], [0], [1], [0, 0, 1, 1], [], []>} : vector<16x128xbf16>, vector<128x256xbf16>, vector<16x256xf32> -> vector<16x256xf32>
    %399 = arith.addf %380, %398 : vector<16x256xf32>
    %400 = vector.extract_strided_slice %318 {offsets = [5, 0], sizes = [16, 128], strides = [1, 1]} : vector<26x128xf32> to vector<16x128xf32>
    %401 = arith.truncf %400 : vector<16x128xf32> to vector<16x128xbf16>
    %c4_210 = arith.constant 4 : index
    %c0_211 = arith.constant 0 : index
    %c0_212 = arith.constant 0 : index
    %402 = vector.load %arg4[%c4_210, %c0_211, %c0_212] : memref<9x128x256xbf16, #tpu.memory_space<vmem>>, vector<1x128x256xbf16>
    %403 = vector.shape_cast %402 : vector<1x128x256xbf16> to vector<128x256xbf16>
    %cst_213 = arith.constant dense<0.000000e+00> : vector<16x256xf32>
    %404 = tpu.matmul %401, %403, %cst_213 {dimension_numbers = #tpu.dot_dimension_numbers<[1], [0], [0], [1], [0, 0, 1, 1], [], []>} : vector<16x128xbf16>, vector<128x256xbf16>, vector<16x256xf32> -> vector<16x256xf32>
    %405 = arith.addf %399, %404 : vector<16x256xf32>
    %406 = vector.extract_strided_slice %318 {offsets = [6, 0], sizes = [16, 128], strides = [1, 1]} : vector<26x128xf32> to vector<16x128xf32>
    %c1_i32_214 = arith.constant 1 : i32
    %407 = vector.broadcast %c1_i32_214 : i32 to vector<16x1xi32>
    %408 = arith.addi %335, %407 : vector<16x1xi32>
    %c0_i32_215 = arith.constant 0 : i32
    %409 = vector.broadcast %c0_i32_215 : i32 to vector<16x1xi32>
    %410 = arith.cmpi sge, %408, %409 : vector<16x1xi32>
    %c1_i32_216 = arith.constant 1 : i32
    %411 = vector.broadcast %c1_i32_216 : i32 to vector<16x1xi32>
    %412 = arith.addi %335, %411 : vector<16x1xi32>
    %c3_i32_217 = arith.constant 3 : i32
    %413 = vector.broadcast %c3_i32_217 : i32 to vector<16x1xi32>
    %414 = arith.cmpi sle, %412, %413 : vector<16x1xi32>
    %415 = arith.andi %410, %414 : vector<16x1xi1>
    %cst_218 = arith.constant 0.000000e+00 : f32
    %416 = vector.broadcast %cst_218 : f32 to vector<16x128xf32>
    %417 = vector.shape_cast %415 : vector<16x1xi1> to vector<16x1xi1>
    %418 = vector.broadcast %417 : vector<16x1xi1> to vector<16x128xi1>
    %419 = arith.select %418, %406, %416 : vector<16x128xi1>, vector<16x128xf32>
    %420 = arith.truncf %419 : vector<16x128xf32> to vector<16x128xbf16>
    %c5_219 = arith.constant 5 : index
    %c0_220 = arith.constant 0 : index
    %c0_221 = arith.constant 0 : index
    %421 = vector.load %arg4[%c5_219, %c0_220, %c0_221] : memref<9x128x256xbf16, #tpu.memory_space<vmem>>, vector<1x128x256xbf16>
    %422 = vector.shape_cast %421 : vector<1x128x256xbf16> to vector<128x256xbf16>
    %cst_222 = arith.constant dense<0.000000e+00> : vector<16x256xf32>
    %423 = tpu.matmul %420, %422, %cst_222 {dimension_numbers = #tpu.dot_dimension_numbers<[1], [0], [0], [1], [0, 0, 1, 1], [], []>} : vector<16x128xbf16>, vector<128x256xbf16>, vector<16x256xf32> -> vector<16x256xf32>
    %424 = arith.addf %405, %423 : vector<16x256xf32>
    %425 = vector.extract_strided_slice %318 {offsets = [8, 0], sizes = [16, 128], strides = [1, 1]} : vector<26x128xf32> to vector<16x128xf32>
    %c-1_i32_223 = arith.constant -1 : i32
    %426 = vector.broadcast %c-1_i32_223 : i32 to vector<16x1xi32>
    %427 = arith.addi %335, %426 : vector<16x1xi32>
    %c0_i32_224 = arith.constant 0 : i32
    %428 = vector.broadcast %c0_i32_224 : i32 to vector<16x1xi32>
    %429 = arith.cmpi sge, %427, %428 : vector<16x1xi32>
    %c-1_i32_225 = arith.constant -1 : i32
    %430 = vector.broadcast %c-1_i32_225 : i32 to vector<16x1xi32>
    %431 = arith.addi %335, %430 : vector<16x1xi32>
    %c3_i32_226 = arith.constant 3 : i32
    %432 = vector.broadcast %c3_i32_226 : i32 to vector<16x1xi32>
    %433 = arith.cmpi sle, %431, %432 : vector<16x1xi32>
    %434 = arith.andi %429, %433 : vector<16x1xi1>
    %cst_227 = arith.constant 0.000000e+00 : f32
    %435 = vector.broadcast %cst_227 : f32 to vector<16x128xf32>
    %436 = vector.shape_cast %434 : vector<16x1xi1> to vector<16x1xi1>
    %437 = vector.broadcast %436 : vector<16x1xi1> to vector<16x128xi1>
    %438 = arith.select %437, %425, %435 : vector<16x128xi1>, vector<16x128xf32>
    %439 = arith.truncf %438 : vector<16x128xf32> to vector<16x128xbf16>
    %c6_228 = arith.constant 6 : index
    %c0_229 = arith.constant 0 : index
    %c0_230 = arith.constant 0 : index
    %440 = vector.load %arg4[%c6_228, %c0_229, %c0_230] : memref<9x128x256xbf16, #tpu.memory_space<vmem>>, vector<1x128x256xbf16>
    %441 = vector.shape_cast %440 : vector<1x128x256xbf16> to vector<128x256xbf16>
    %cst_231 = arith.constant dense<0.000000e+00> : vector<16x256xf32>
    %442 = tpu.matmul %439, %441, %cst_231 {dimension_numbers = #tpu.dot_dimension_numbers<[1], [0], [0], [1], [0, 0, 1, 1], [], []>} : vector<16x128xbf16>, vector<128x256xbf16>, vector<16x256xf32> -> vector<16x256xf32>
    %443 = arith.addf %424, %442 : vector<16x256xf32>
    %444 = vector.extract_strided_slice %318 {offsets = [9, 0], sizes = [16, 128], strides = [1, 1]} : vector<26x128xf32> to vector<16x128xf32>
    %445 = arith.truncf %444 : vector<16x128xf32> to vector<16x128xbf16>
    %c7_232 = arith.constant 7 : index
    %c0_233 = arith.constant 0 : index
    %c0_234 = arith.constant 0 : index
    %446 = vector.load %arg4[%c7_232, %c0_233, %c0_234] : memref<9x128x256xbf16, #tpu.memory_space<vmem>>, vector<1x128x256xbf16>
    %447 = vector.shape_cast %446 : vector<1x128x256xbf16> to vector<128x256xbf16>
    %cst_235 = arith.constant dense<0.000000e+00> : vector<16x256xf32>
    %448 = tpu.matmul %445, %447, %cst_235 {dimension_numbers = #tpu.dot_dimension_numbers<[1], [0], [0], [1], [0, 0, 1, 1], [], []>} : vector<16x128xbf16>, vector<128x256xbf16>, vector<16x256xf32> -> vector<16x256xf32>
    %449 = arith.addf %443, %448 : vector<16x256xf32>
    %450 = vector.extract_strided_slice %318 {offsets = [10, 0], sizes = [16, 128], strides = [1, 1]} : vector<26x128xf32> to vector<16x128xf32>
    %c1_i32_236 = arith.constant 1 : i32
    %451 = vector.broadcast %c1_i32_236 : i32 to vector<16x1xi32>
    %452 = arith.addi %335, %451 : vector<16x1xi32>
    %c0_i32_237 = arith.constant 0 : i32
    %453 = vector.broadcast %c0_i32_237 : i32 to vector<16x1xi32>
    %454 = arith.cmpi sge, %452, %453 : vector<16x1xi32>
    %c1_i32_238 = arith.constant 1 : i32
    %455 = vector.broadcast %c1_i32_238 : i32 to vector<16x1xi32>
    %456 = arith.addi %335, %455 : vector<16x1xi32>
    %c3_i32_239 = arith.constant 3 : i32
    %457 = vector.broadcast %c3_i32_239 : i32 to vector<16x1xi32>
    %458 = arith.cmpi sle, %456, %457 : vector<16x1xi32>
    %459 = arith.andi %454, %458 : vector<16x1xi1>
    %cst_240 = arith.constant 0.000000e+00 : f32
    %460 = vector.broadcast %cst_240 : f32 to vector<16x128xf32>
    %461 = vector.shape_cast %459 : vector<16x1xi1> to vector<16x1xi1>
    %462 = vector.broadcast %461 : vector<16x1xi1> to vector<16x128xi1>
    %463 = arith.select %462, %450, %460 : vector<16x128xi1>, vector<16x128xf32>
    %464 = arith.truncf %463 : vector<16x128xf32> to vector<16x128xbf16>
    %c8_241 = arith.constant 8 : index
    %c0_242 = arith.constant 0 : index
    %c0_243 = arith.constant 0 : index
    %465 = vector.load %arg4[%c8_241, %c0_242, %c0_243] : memref<9x128x256xbf16, #tpu.memory_space<vmem>>, vector<1x128x256xbf16>
    %466 = vector.shape_cast %465 : vector<1x128x256xbf16> to vector<128x256xbf16>
    %cst_244 = arith.constant dense<0.000000e+00> : vector<16x256xf32>
    %467 = tpu.matmul %464, %466, %cst_244 {dimension_numbers = #tpu.dot_dimension_numbers<[1], [0], [0], [1], [0, 0, 1, 1], [], []>} : vector<16x128xbf16>, vector<128x256xbf16>, vector<16x256xf32> -> vector<16x256xf32>
    %468 = arith.addf %449, %467 : vector<16x256xf32>
    %c0_245 = arith.constant 0 : index
    %c0_246 = arith.constant 0 : index
    %469 = vector.load %arg5[%c0_245, %c0_246] : memref<1x256xf32, #tpu.memory_space<vmem>>, vector<1x256xf32>
    %470 = vector.broadcast %469 : vector<1x256xf32> to vector<16x256xf32>
    %471 = arith.addf %468, %470 : vector<16x256xf32>
    %cst_247 = arith.constant 0.000000e+00 : f32
    %472 = vector.broadcast %cst_247 : f32 to vector<16x256xf32>
    %473 = arith.maximumf %471, %472 : vector<16x256xf32>
    %474 = vector.extract_strided_slice %473 {offsets = [0, 0], sizes = [4, 256], strides = [1, 1]} : vector<16x256xf32> to vector<4x256xf32>
    %475 = vector.extract_strided_slice %473 {offsets = [4, 0], sizes = [4, 256], strides = [1, 1]} : vector<16x256xf32> to vector<4x256xf32>
    %476 = arith.maximumf %474, %475 : vector<4x256xf32>
    %477 = vector.extract_strided_slice %473 {offsets = [4, 0], sizes = [4, 256], strides = [1, 1]} : vector<16x256xf32> to vector<4x256xf32>
    %478 = vector.extract_strided_slice %473 {offsets = [8, 0], sizes = [4, 256], strides = [1, 1]} : vector<16x256xf32> to vector<4x256xf32>
    %479 = arith.maximumf %477, %478 : vector<4x256xf32>
    %480 = vector.extract_strided_slice %473 {offsets = [12, 0], sizes = [4, 256], strides = [1, 1]} : vector<16x256xf32> to vector<4x256xf32>
    %481 = arith.maximumf %479, %480 : vector<4x256xf32>
    %482 = tpu.concatenate %476, %481 in 0 : vector<4x256xf32>, vector<4x256xf32> -> vector<8x256xf32>
    %483 = vector.extract_strided_slice %482 {offsets = [0, 0], sizes = [1, 256], strides = [1, 1]} : vector<8x256xf32> to vector<1x256xf32>
    %484 = vector.extract_strided_slice %482 {offsets = [1, 0], sizes = [1, 256], strides = [1, 1]} : vector<8x256xf32> to vector<1x256xf32>
    %485 = arith.maximumf %483, %484 : vector<1x256xf32>
    %486 = vector.extract_strided_slice %482 {offsets = [1, 0], sizes = [1, 256], strides = [1, 1]} : vector<8x256xf32> to vector<1x256xf32>
    %487 = vector.extract_strided_slice %482 {offsets = [2, 0], sizes = [1, 256], strides = [1, 1]} : vector<8x256xf32> to vector<1x256xf32>
    %488 = arith.maximumf %486, %487 : vector<1x256xf32>
    %489 = vector.extract_strided_slice %482 {offsets = [3, 0], sizes = [1, 256], strides = [1, 1]} : vector<8x256xf32> to vector<1x256xf32>
    %490 = arith.maximumf %488, %489 : vector<1x256xf32>
    %491 = vector.extract_strided_slice %482 {offsets = [4, 0], sizes = [1, 256], strides = [1, 1]} : vector<8x256xf32> to vector<1x256xf32>
    %492 = vector.extract_strided_slice %482 {offsets = [5, 0], sizes = [1, 256], strides = [1, 1]} : vector<8x256xf32> to vector<1x256xf32>
    %493 = arith.maximumf %491, %492 : vector<1x256xf32>
    %494 = vector.extract_strided_slice %482 {offsets = [5, 0], sizes = [1, 256], strides = [1, 1]} : vector<8x256xf32> to vector<1x256xf32>
    %495 = vector.extract_strided_slice %482 {offsets = [6, 0], sizes = [1, 256], strides = [1, 1]} : vector<8x256xf32> to vector<1x256xf32>
    %496 = arith.maximumf %494, %495 : vector<1x256xf32>
    %497 = vector.extract_strided_slice %482 {offsets = [7, 0], sizes = [1, 256], strides = [1, 1]} : vector<8x256xf32> to vector<1x256xf32>
    %498 = arith.maximumf %496, %497 : vector<1x256xf32>
    %499 = tpu.concatenate %485, %490, %493, %498 in 0 : vector<1x256xf32>, vector<1x256xf32>, vector<1x256xf32>, vector<1x256xf32> -> vector<4x256xf32>
    %500 = vector.extract_strided_slice %499 {offsets = [0, 0], sizes = [4, 64], strides = [1, 1]} : vector<4x256xf32> to vector<4x64xf32>
    %501 = vector.extract_strided_slice %499 {offsets = [0, 64], sizes = [4, 64], strides = [1, 1]} : vector<4x256xf32> to vector<4x64xf32>
    %502 = arith.maximumf %500, %501 : vector<4x64xf32>
    %503 = vector.extract_strided_slice %499 {offsets = [0, 64], sizes = [4, 64], strides = [1, 1]} : vector<4x256xf32> to vector<4x64xf32>
    %504 = vector.extract_strided_slice %499 {offsets = [0, 128], sizes = [4, 64], strides = [1, 1]} : vector<4x256xf32> to vector<4x64xf32>
    %505 = arith.maximumf %503, %504 : vector<4x64xf32>
    %506 = vector.extract_strided_slice %499 {offsets = [0, 192], sizes = [4, 64], strides = [1, 1]} : vector<4x256xf32> to vector<4x64xf32>
    %507 = arith.maximumf %505, %506 : vector<4x64xf32>
    %508 = tpu.concatenate %502, %507 in 1 : vector<4x64xf32>, vector<4x64xf32> -> vector<4x128xf32>
    %509 = vector.shape_cast %508 : vector<4x128xf32> to vector<1x512xf32>
    %510 = arith.truncf %509 : vector<1x512xf32> to vector<1x512xbf16>
    %c0_248 = arith.constant 0 : index
    %c0_249 = arith.constant 0 : index
    %511 = vector.load %arg6[%c0_248, %c0_249] : memref<512x1024xbf16, #tpu.memory_space<vmem>>, vector<512x1024xbf16>
    %cst_250 = arith.constant dense<0.000000e+00> : vector<1x1024xf32>
    %512 = tpu.matmul %510, %511, %cst_250 {dimension_numbers = #tpu.dot_dimension_numbers<[1], [0], [0], [1], [0, 0, 1, 1], [], []>} : vector<1x512xbf16>, vector<512x1024xbf16>, vector<1x1024xf32> -> vector<1x1024xf32>
    %c0_251 = arith.constant 0 : index
    %c0_252 = arith.constant 0 : index
    %513 = vector.load %arg7[%c0_251, %c0_252] : memref<1x1024xf32, #tpu.memory_space<vmem>>, vector<1x1024xf32>
    %514 = arith.addf %512, %513 : vector<1x1024xf32>
    %cst_253 = arith.constant 0.000000e+00 : f32
    %515 = vector.broadcast %cst_253 : f32 to vector<1x1024xf32>
    %516 = arith.maximumf %514, %515 : vector<1x1024xf32>
    %517 = vector.extract_strided_slice %516 {offsets = [0, 0], sizes = [1, 128], strides = [1, 1]} : vector<1x1024xf32> to vector<1x128xf32>
    %518 = vector.extract_strided_slice %516 {offsets = [0, 128], sizes = [1, 128], strides = [1, 1]} : vector<1x1024xf32> to vector<1x128xf32>
    %519 = arith.maximumf %517, %518 : vector<1x128xf32>
    %520 = vector.extract_strided_slice %516 {offsets = [0, 256], sizes = [1, 128], strides = [1, 1]} : vector<1x1024xf32> to vector<1x128xf32>
    %521 = arith.maximumf %519, %520 : vector<1x128xf32>
    %522 = vector.extract_strided_slice %516 {offsets = [0, 384], sizes = [1, 128], strides = [1, 1]} : vector<1x1024xf32> to vector<1x128xf32>
    %523 = arith.maximumf %521, %522 : vector<1x128xf32>
    %524 = vector.extract_strided_slice %516 {offsets = [0, 512], sizes = [1, 128], strides = [1, 1]} : vector<1x1024xf32> to vector<1x128xf32>
    %525 = arith.maximumf %523, %524 : vector<1x128xf32>
    %526 = vector.extract_strided_slice %516 {offsets = [0, 640], sizes = [1, 128], strides = [1, 1]} : vector<1x1024xf32> to vector<1x128xf32>
    %527 = arith.maximumf %525, %526 : vector<1x128xf32>
    %528 = vector.extract_strided_slice %516 {offsets = [0, 768], sizes = [1, 128], strides = [1, 1]} : vector<1x1024xf32> to vector<1x128xf32>
    %529 = arith.maximumf %527, %528 : vector<1x128xf32>
    %530 = vector.extract_strided_slice %516 {offsets = [0, 896], sizes = [1, 128], strides = [1, 1]} : vector<1x1024xf32> to vector<1x128xf32>
    %531 = arith.maximumf %529, %530 : vector<1x128xf32>
    %532 = arith.truncf %531 : vector<1x128xf32> to vector<1x128xbf16>
    %c0_254 = arith.constant 0 : index
    %c0_255 = arith.constant 0 : index
    %533 = vector.load %arg8[%c0_254, %c0_255] : memref<128x128xbf16, #tpu.memory_space<vmem>>, vector<128x128xbf16>
    %cst_256 = arith.constant dense<0.000000e+00> : vector<1x128xf32>
    %534 = tpu.matmul %532, %533, %cst_256 {dimension_numbers = #tpu.dot_dimension_numbers<[1], [0], [0], [1], [0, 0, 1, 1], [], []>} : vector<1x128xbf16>, vector<128x128xbf16>, vector<1x128xf32> -> vector<1x128xf32>
    %c0_257 = arith.constant 0 : index
    %c0_258 = arith.constant 0 : index
    %535 = vector.load %arg9[%c0_257, %c0_258] : memref<1x128xf32, #tpu.memory_space<vmem>>, vector<1x128xf32>
    %536 = arith.addf %534, %535 : vector<1x128xf32>
    %c0_259 = arith.constant 0 : index
    %c0_260 = arith.constant 0 : index
    %c0_261 = arith.constant 0 : index
    %537 = vector.load %arg10[%c0_259, %c0_260, %c0_261] : memref<1x1x128xf32, #tpu.memory_space<vmem>>, vector<1x1x128xf32>
    %538 = vector.shape_cast %537 : vector<1x1x128xf32> to vector<1x128xf32>
    %539 = vector.shape_cast %536 : vector<1x128xf32> to vector<1x1x128xf32>
    tpu.vector_store %arg10[%c0_259, %c0_260, %c0_261], %539 {strides = array<i32>} : memref<1x1x128xf32, #tpu.memory_space<vmem>>, vector<1x1x128xf32>,
    return
  }
  func.func @transform_0(%arg0: i32) -> (i32, i32, i32, i32) {
    %c0_i32 = arith.constant 0 : i32
    %c0_i32_0 = arith.constant 0 : i32
    %c0_i32_1 = arith.constant 0 : i32
    %c0_i32_2 = arith.constant 0 : i32
    return %arg0, %c0_i32, %c0_i32_0, %c0_i32_1 : i32, i32, i32, i32
  }
  func.func @transform_1(%arg0: i32) -> (i32, i32, i32) {
    %c0_i32 = arith.constant 0 : i32
    %c0_i32_0 = arith.constant 0 : i32
    %c0_i32_1 = arith.constant 0 : i32
    %c0_i32_2 = arith.constant 0 : i32
    return %c0_i32, %c0_i32_0, %c0_i32_1 : i32, i32, i32
  }
  func.func @transform_2(%arg0: i32) -> (i32, i32) {
    %c0_i32 = arith.constant 0 : i32
    %c0_i32_0 = arith.constant 0 : i32
    %c0_i32_1 = arith.constant 0 : i32
    return %c0_i32, %c0_i32_0 : i32, i32
  }
  func.func @transform_3(%arg0: i32) -> (i32, i32, i32) {
    %c0_i32 = arith.constant 0 : i32
    %c0_i32_0 = arith.constant 0 : i32
    %c0_i32_1 = arith.constant 0 : i32
    %c0_i32_2 = arith.constant 0 : i32
    return %c0_i32, %c0_i32_0, %c0_i32_1 : i32, i32, i32
  }
  func.func @transform_4(%arg0: i32) -> (i32, i32) {
    %c0_i32 = arith.constant 0 : i32
    %c0_i32_0 = arith.constant 0 : i32
    %c0_i32_1 = arith.constant 0 : i32
    return %c0_i32, %c0_i32_0 : i32, i32
  }
  func.func @transform_5(%arg0: i32) -> (i32, i32) {
    %c0_i32 = arith.constant 0 : i32
    %c0_i32_0 = arith.constant 0 : i32
    %c0_i32_1 = arith.constant 0 : i32
    return %c0_i32, %c0_i32_0 : i32, i32
  }
  func.func @transform_6(%arg0: i32) -> (i32, i32) {
    %c0_i32 = arith.constant 0 : i32
    %c0_i32_0 = arith.constant 0 : i32
    %c0_i32_1 = arith.constant 0 : i32
    return %c0_i32, %c0_i32_0 : i32, i32
  }
  func.func @transform_7(%arg0: i32) -> (i32, i32) {
    %c0_i32 = arith.constant 0 : i32
    %c0_i32_0 = arith.constant 0 : i32
    %c0_i32_1 = arith.constant 0 : i32
    return %c0_i32, %c0_i32_0 : i32, i32
  }
  func.func @transform_8(%arg0: i32) -> (i32, i32) {
    %c0_i32 = arith.constant 0 : i32
    %c0_i32_0 = arith.constant 0 : i32
    %c0_i32_1 = arith.constant 0 : i32
    return %c0_i32, %c0_i32_0 : i32, i32
  }
  func.func @transform_9(%arg0: i32) -> (i32, i32, i32) {
    %c0_i32 = arith.constant 0 : i32
    %c0_i32_0 = arith.constant 0 : i32
    %c0_i32_1 = arith.constant 0 : i32
    return %arg0, %c0_i32, %c0_i32_0 : i32, i32, i32
  }
}

</mosaic_0001>

<bundles_post_ra>
// kernel: discriminator_3d_2_forward.1
= control target key start
LH: loop header
LB: loop body
LE: loop exit
PB: predicated region body
PF: predicated region fallthrough
CT: control target
= control target key end

     0   :  { %14 = vsyncpa [#allocation3], 0  ;;  %s12219_s0 = inlined_call_operand.vmem [shape: f32[2,40,10,20], index: 0, kind: input, shape index: {}]   ;;  %s12220_s1 = inlined_call_operand.vmem [shape: bf16[25,20,256], index: 1, kind: input, shape index: {}]   ;;  %s12221_s2 = inlined_call_operand.vmem [shape: f32[1,256], index: 2, kind: input, shape index: {}]   ;;  %s12222_s3 = inlined_call_operand.vmem [shape: bf16[9,128,256], index: 3, kind: input, shape index: {}]   ;;  %s12223_s4 = inlined_call_operand.vmem [shape: f32[1,256], index: 4, kind: input, shape index: {}]   ;;  %s12224_s5 = inlined_call_operand.vmem [shape: bf16[512,1024], index: 5, kind: input, shape index: {}]   ;;  %s12225_s6 = inlined_call_operand.vmem [shape: f32[1,1024], index: 6, kind: input, shape index: {}]   ;;  %s12226_s7 = inlined_call_operand.vmem [shape: bf16[128,128], index: 7, kind: input, shape index: {}]   ;;  %s12227_s8 = inlined_call_operand.vmem [shape: f32[1,128], index: 8, kind: input, shape index: {}]   ;;  %s12228_s9 = inlined_call_operand.hbm [shape: f32[2,1,128], index: 9, kind: output, shape index: {}]  }
   0x1   :  { %16 = vsyncpa [#allocation3 + $0x1], 0  ;;  %s9734_s30 = smov 0   ;;  %s9736_s10 = smov 0  }
   0x2   :  { %s9738_s11 = smov 0   ;;  %s9740_s12 = smov 0  }
   0x3 LB: > { %s9755_s13 = sadd.s32 4294967295, %s9675_s12   ;;  %s7679_s14 = sadd.s32 4294967294, %s9675_s12   ;;  %s9675_s12 = sphi %s9740_s12, %s12262_s12   ;;  %s9671_s11 = sphi %s9738_s11, %s12261_s11   ;;  %s9667_s10 = sphi %s9736_s10, %s12260_s10   ;;  %s9663_s30 = sphi %s9734_s30, %s12259_s30  }
   0x4   : > { %s9759_s15 = sadd.s32 1, %s9675_s12   ;;  %s223_s16 = sadd.s32 1, %s9671_s11 }
   0x5   : > { %s220_s17 = ssub.s32 %s9675_s12, %s9759_s15  ;;  %p233_p0 = scmp.ne.s32.totalorder %s9671_s11, %s9667_s10 }
   0x6   : > { %p221_p1 = scmp.eq.s32.totalorder %s220_s17, 0  ;;  %p234_p2 = scmp.eq.s32.totalorder %s9755_s13, 1 }
   0x7   : > { %p239_p3 = scmp.ne.s32.totalorder %s9667_s10, %s9663_s30  ;;  %p240_p4 = scmp.eq.s32.totalorder %s7679_s14, 1 }
   0x8   : > { %s9770_s18 = scalar_select %p221_p1, %s9671_s11, %s223_s16  }
   0x9   : > { %p9772_p5 = por %p234_p2, %p233_p0  ;;  %p9776_p6 = por %p240_p4, %p239_p3 }
   0xa   : > { %p7682_p7 = scmp.ge.s32.totalorder %s9675_s12, 1  ;;  %p290_p8 = scmp.lt.s32.totalorder %s9675_s12, 3 }
   0xc   : > { %p291_p9 = pnand %p7682_p7, %p290_p8 }
   0xe   : > { %294 = sbr.rel (%p291_p9) target bundleno = 2831 (0xb0f), region = 56 }
  0x15   : > { %v9259_v0 = vld [vmem:[%s12220_s1 + $0x1c] ss:$8 sps:$4 sm:$0xff]   ;;  %v9261_v1 = vld [vmem:[%s12220_s1 + $0x18] ss:$8 sps:$4 sm:$0xff]   ;;  %v7694_v2 = vld [vmem:[%s12220_s1 + $0x28] sm:$0x33] }
  0x16   : > { %vm391_vm0 = vcmask 1041408   ;;  %v9677_v3 = vmov 0   ;;  %p325_p10 = scmp.lt.s32.totalorder %s9755_s13, 1  ;;  %398 = vmatprep.subr.bf16.mxu0 %v9259_v0  ;;  %v7698_v4 = vcombine.high %v7694_v2, %v7694_v2  ;;  %v7697_v5 = vcombine.low %v7694_v2, %v7694_v2  ;;  %v9266_v7 = vld [vmem:[%s12220_s1 + $0x4] ss:$8 sps:$4 sm:$0xff]   ;;  %s9678_s28 = smov 96  }
  0x17   : > { %430 = vmatprep.mubr.bf16.mxu0 %v9677_v3  ;;  %4245 = vmatprep.mubr.bf16.mxu1 %v9677_v3  ;;  %v345_v8 = vld [vmem:[%s12220_s1 + $0x10] sm:$0x33]  ;;  %vm378_vm1 = vcmask 162816   ;;  %v9264_v11 = vld [vmem:[%s12220_s1] ss:$8 sps:$4 sm:$0xff]   ;;  %vm3933_vm2 = vcmask 1040384  }
  0x18   : > { %399 = vmatpush1.bf16.msra.mxu0 %v9261_v1  ;;  %s326_s27 = scalar_select %p325_p10, %s9755_s13, 1  ;;  %v393_v6 = vsel %vm391_vm0, %v7697_v5, 0  ;;  %v7707_v13 = vcombine.high %v345_v8, %v345_v8  ;;  %v7706_v14 = vcombine.low %v345_v8, %v345_v8  ;;  %v9271_v18 = vld [vmem:[%s12220_s1 + $0x34] ss:$8 sps:$4 sm:$0xff]   ;;  %v7715_v28 = vld [vmem:[%s12220_s1 + $0x40] sm:$0x33] }
  0x19   : > { %7699 = vmatprep.subr.msk.bf16.mxu0 %vm391_vm0, %v7698_v4  ;;  %v9269_v29 = vld [vmem:[%s12220_s1 + $0x30] ss:$8 sps:$4 sm:$0xff]   ;;  %v7719_v31 = vcombine.high %v7715_v28, %v7715_v28  ;;  %v7718_v32 = vcombine.low %v7715_v28, %v7715_v28  ;;  %v9276_v33 = vld [vmem:[%s12220_s1 + $0x4c] ss:$8 sps:$4 sm:$0xff]   ;;  %v9279_v2 = vld [vmem:[%s12220_s1 + $0x60] ss:$8 sps:$4 sm:$0xff]  }
  0x1a   : > { %s9183_s14 = smul.u32 640, %s326_s27  ;;  %v499_v17 = vsel %vm391_vm0, %v7706_v14, 0  ;;  %v7735_v46 = vld [vmem:[%s12220_s1 + $0x58] sm:$0x33]  ;;  %v9274_v47 = vld [vmem:[%s12220_s1 + $0x48] ss:$8 sps:$4 sm:$0xff]  }
  0x1b   : > { %v621_v36 = vsel %vm391_vm0, %v7718_v32, 0  ;;  %v7739_v49 = vcombine.high %v7735_v46, %v7735_v46  ;;  %v7738_v50 = vcombine.low %v7735_v46, %v7735_v46  ;;  %v9281_v53 = vld [vmem:[%s12220_s1 + $0x64] ss:$8 sps:$4 sm:$0xff]   ;;  %v7747_v0 = vld [vmem:[%s12220_s1 + $0x70] sm:$0x33]  ;;  %vm3938_vm3 = vcmask 1042432  }
  0x1c   : > { %401 = vmatpush1.bf16.msra.mxu0 %v393_v6  ;;  %s9806_s23 = scalar_lea.vmem %s12219_s0, %s9183_s14  ;;  %v7751_v4 = vcombine.high %v7747_v0, %v7747_v0  ;;  %v7750_v5 = vcombine.low %v7747_v0, %v7747_v0  ;;  %vm3941_vm4 = vcmask 1043456   ;;  %vm3944_vm5 = vcmask 1044480   ;;  %s9679_s21 = smov 64  }
  0x1d   : > { %v7684_v9 = vld [vmem:[%s9806_s23 + $0xa0] sm:$0xff]  ;;  %v7685_v10 = vld [vmem:[%s9806_s23 + $0xb0] sm:$0xff]  ;;  %504 = vmatprep.subr.bf16.mxu0 %v9266_v7  ;;  %v759_v54 = vsel %vm391_vm0, %v7738_v50, 0  ;;  %vm3947_vm6 = vcmask 1045504   ;;  %vm3950_vm7 = vcmask 1046528   ;;  %vm4023_vm8 = vcmask 261120  }
  0x1e   : > { %v355_v12 = vpack.c.bf16 %v7685_v10, %v7684_v9  ;;  %v7686_v15 = vld [vmem:[%s9806_s23 + $0xc0] sm:$0xff]  ;;  %v7687_v16 = vld [vmem:[%s9806_s23 + $0xd0] sm:$0xff]  ;;  %v897_v8 = vsel %vm391_vm0, %v7750_v5, 0  ;;  %vm4026_vm9 = vcmask 523264   ;;  %vm4029_vm10 = vcmask 785408   ;;  %s323_s25 = sand.u32 1, %s9667_s10  }
  0x1f   : > { %v356_v19 = vpack.c.bf16 %v7687_v16, %v7686_v15  ;;  %v7688_v20 = vld [vmem:[%s9806_s23 + $0xe0] sm:$0xff]  ;;  %v7689_v21 = vld [vmem:[%s9806_s23 + $0xf0] sm:$0xff]  ;;  %vm4119_vm11 = vsmask.f32 7424  ;;  %vm4718_vm12 = vsmask.f32 5376 }
  0x20   : > { %7700 = vmatmul.mubr.msk.bf16.vlgmr.msra.gmra.mrb[0].mxu0 %vm378_vm1, %v355_v12  ;;  %v357_v22 = vpack.c.bf16 %v7689_v21, %v7688_v20  ;;  %v9829_v23 = vld [vmem:[%s9806_s23 + $0x100] sm:$0xff]  ;;  %v9832_v24 = vld [vmem:[%s9806_s23 + $0x110] sm:$0xff]  ;;  %s8711_s27 = sshll.u32 %s9755_s13, 4  ;;  %s324_s29 = scalar_lea.vmem [#allocation2], %s323_s25 }
  0x21   : > { %505 = vmatpush1.bf16.msra.mxu0 %v9264_v11  ;;  %440 = vmatprep.mubr.bf16.mxu0 %v9677_v3  ;;  %v358_v25 = vpack.c.bf16 %v9832_v24, %v9829_v23  ;;  %v331_v26 = vld [vmem:[%s9806_s23] sm:$0xff]  ;;  %v9840_v27 = vld [vmem:[%s9806_s23 + $0x10] sm:$0xff]  ;;  %s7624_s14 = sshll.u32 %s324_s29, 4  ;;  %s12177_s17 = scalar_lea.hbm %s12228_s9, %s8711_s27  ;;  %s12179_s14 = int_to_ptr.vmem [resolvable:$true] %s7624_s14 }
  0x22   : > { %7708 = vmatprep.subr.msk.bf16.mxu0 %vm391_vm0, %v7707_v13  ;;  %v339_v30 = vpack.c.bf16 %v9840_v27, %v331_v26  ;;  %v9855_v34 = vld [vmem:[%s9806_s23 + $0x20] sm:$0xff]  ;;  %v9858_v35 = vld [vmem:[%s9806_s23 + $0x30] sm:$0xff]  ;;  %s9613_s13 = scalar_lea.vmem %s12179_s14, 16  ;;  %s9683_s22 = smov [#allocation2]  }
  0x23   : > { %v340_v37 = vpack.c.bf16 %v9858_v35, %v9855_v34  ;;  %v9867_v38 = vld [vmem:[%s9806_s23 + $0x40] sm:$0xff]  ;;  %v9870_v39 = vld [vmem:[%s9806_s23 + $0x50] sm:$0xff]  ;;  %p9614_p11 = scmp.ne.s32.totalorder %s12179_s14, %s9613_s13  ;;  %s9617_s24 = sshll.u32 %s9683_s22, 4  ;;  %s9618_s24 = int_to_ptr.vmem [resolvable:$false] %s9617_s24 }
  0x24   : > { %v341_v40 = vpack.c.bf16 %v9870_v39, %v9867_v38  ;;  %v9877_v41 = vld [vmem:[%s9806_s23 + $0x60] sm:$0xff]  ;;  %v9880_v42 = vld [vmem:[%s9806_s23 + $0x70] sm:$0xff]  ;;  %p9620_p0 = scmp.lt.s32.totalorder %s12179_s14, %s9618_s24 }
  0x25   : > { %507 = vmatpush1.bf16.msra.mxu0 %v499_v17  ;;  %v342_v43 = vpack.c.bf16 %v9880_v42, %v9877_v41  ;;  %v577_v44 = vld [vmem:[%s9806_s23 + $0x1] sm:$0xff]  ;;  %v9888_v45 = vld [vmem:[%s9806_s23 + $0x11] sm:$0xff]  ;;  %p9615_p12 = pnand %p9614_p11, %p9772_p5 }
  0x26   : > { %626 = vmatprep.subr.bf16.mxu0 %v9271_v18  ;;  %v585_v48 = vpack.c.bf16 %v9888_v45, %v577_v44  ;;  %v9899_v51 = vld [vmem:[%s9806_s23 + $0x21] sm:$0xff]  ;;  %v9903_v52 = vld [vmem:[%s9806_s23 + $0x31] sm:$0xff] }
  0x27   : > { %v586_v55 = vpack.c.bf16 %v9903_v52, %v9899_v51  ;;  %v9915_v56 = vld [vmem:[%s9806_s23 + $0x41] sm:$0xff]  ;;  %v9918_v57 = vld [vmem:[%s9806_s23 + $0x51] sm:$0xff]  ;;  %p9616_p13 = pneg %p9615_p12 }
  0x28   : > { %7701 = vmatmul.mubr.msk.bf16.gmra.mrb[4].mxu0 %vm378_vm1, %v356_v19  ;;  %v587_v58 = vpack.c.bf16 %v9918_v57, %v9915_v56  ;;  %v9925_v59 = vld [vmem:[%s9806_s23 + $0x61] sm:$0xff]  ;;  %v9928_v60 = vld [vmem:[%s9806_s23 + $0x71] sm:$0xff] }
  0x29   : > { %450 = vmatprep.mubr.bf16.mxu0 %v9677_v3  ;;  %v588_v61 = vpack.c.bf16 %v9928_v60, %v9925_v59  ;;  %v7725_v62 = vld [vmem:[%s9806_s23 + $0xa1] sm:$0xff]  ;;  %v9936_v63 = vld [vmem:[%s9806_s23 + $0xb1] sm:$0xff] }
  0x2a   : > { %v723_v1 = vpack.c.bf16 %v9936_v63, %v7725_v62  ;;  %v9948_v6 = vld [vmem:[%s9806_s23 + $0xc1] sm:$0xff]  ;;  %v9951_v7 = vld [vmem:[%s9806_s23 + $0xd1] sm:$0xff] }
  0x2b   : > { %v9286_v9 = vld [vmem:[%s12220_s1 + $0x7c] ss:$8 sps:$4 sm:$0xff]   ;;  %v724_v10 = vpack.c.bf16 %v9951_v7, %v9948_v6  ;;  %v9966_v12 = vld [vmem:[%s9806_s23 + $0xf1] sm:$0xff]  ;;  %v7767_v19 = vld [vmem:[%s12220_s1 + $0x88] sm:$0x33] }
  0x2c   : > { %v9963_v11 = vld [vmem:[%s9806_s23 + $0xe1] sm:$0xff]  ;;  %v9976_v15 = vld [vmem:[%s9806_s23 + $0x111] sm:$0xff] }
  0x2d   : > { %v725_v13 = vpack.c.bf16 %v9966_v12, %v9963_v11  ;;  %v9973_v14 = vld [vmem:[%s9806_s23 + $0x101] sm:$0xff]  ;;  %v9984_v18 = vld [vmem:[%s9806_s23 + $0x12] sm:$0xff] }
  0x2e   : > { %v726_v16 = vpack.c.bf16 %v9976_v15, %v9973_v14  ;;  %v853_v17 = vld [vmem:[%s9806_s23 + $0x2] sm:$0xff]  ;;  %v9999_v28 = vld [vmem:[%s9806_s23 + $0x32] sm:$0xff] }
  0x2f   : > { %v861_v20 = vpack.c.bf16 %v9984_v18, %v853_v17  ;;  %v9284_v21 = vld [vmem:[%s12220_s1 + $0x78] ss:$8 sps:$4 sm:$0xff]   ;;  %v10032_v46 = vld [vmem:[%s9806_s23 + $0x150] sm:$0xff] }
  0x30   : > { %7702 = vmatmul.mubr.msk.bf16.gmra.mrb[8].mxu0 %vm378_vm1, %v357_v22  ;;  %v7771_v22 = vcombine.high %v7767_v19, %v7767_v19  ;;  %v9996_v26 = vld [vmem:[%s9806_s23 + $0x22] sm:$0xff]  ;;  %v10072_v5 = vld [vmem:[%s9806_s23 + $0x1b0] sm:$0xff] }
  0x31   : > { %460 = vmatprep.mubr.bf16.mxu0 %v9677_v3  ;;  %v10011_v32 = vld [vmem:[%s9806_s23 + $0x42] sm:$0xff] }
  0x32   : > { %v7757_v44 = vld [vmem:[%s9806_s23 + $0x140] sm:$0xff]  ;;  %v9294_v17 = vld [vmem:[%s12220_s1 + $0xa8] ss:$8 sps:$4 sm:$0xff]  }
  0x33   : > { %v10059_v0 = vld [vmem:[%s9806_s23 + $0x180] sm:$0xff] }
  0x38   : > { %7703 = vmatmul.mubr.msk.bf16.gmra.mrb[12].mxu0 %vm378_vm1, %v358_v25  ;;  %v7770_v25 = vcombine.low %v7767_v19, %v7767_v19 }
  0x39   : > { %536 = vmatprep.mubr.bf16.mxu0 %v9677_v3 }
  0x40   : > { %7709 = vmatmul.mubr.msk.bf16.vlgmr.msra.gmra.mrb[0].mxu0 %vm378_vm1, %v339_v30  ;;  %v9291_v30 = vld [vmem:[%s12220_s1 + $0x94] ss:$8 sps:$4 sm:$0xff]  }
  0x41   : > { %627 = vmatpush1.bf16.msra.mxu0 %v9269_v29  ;;  %546 = vmatprep.mubr.bf16.mxu0 %v9677_v3  ;;  %v1036_v29 = vsel %vm391_vm0, %v7770_v25, 0 }
  0x42   : > { %7720 = vmatprep.subr.msk.bf16.mxu0 %vm391_vm0, %v7719_v31  ;;  %v862_v31 = vpack.c.bf16 %v9999_v28, %v9996_v26 }
  0x45   : > { %629 = vmatpush1.bf16.msra.mxu0 %v621_v36 }
  0x46   : > { %764 = vmatprep.subr.bf16.mxu0 %v9276_v33  ;;  %v10014_v33 = vld [vmem:[%s9806_s23 + $0x52] sm:$0xff] }
  0x47   : > { %v863_v36 = vpack.c.bf16 %v10014_v33, %v10011_v32 }
  0x48   : > { %7710 = vmatmul.mubr.msk.bf16.gmra.mrb[4].mxu0 %vm378_vm1, %v340_v37  ;;  %v10021_v37 = vld [vmem:[%s9806_s23 + $0x62] sm:$0xff] }
  0x49   : > { %556 = vmatprep.mubr.bf16.mxu0 %v9677_v3 }
  0x50   : > { %7711 = vmatmul.mubr.msk.bf16.gmra.mrb[8].mxu0 %vm378_vm1, %v341_v40  ;;  %v10024_v40 = vld [vmem:[%s9806_s23 + $0x72] sm:$0xff] }
  0x51   : > { %566 = vmatprep.mubr.bf16.mxu0 %v9677_v3 }
  0x58   : > { %7712 = vmatmul.mubr.msk.bf16.gmra.mrb[12].mxu0 %vm378_vm1, %v342_v43  ;;  %v864_v43 = vpack.c.bf16 %v10024_v40, %v10021_v37 }
  0x59   : > { %658 = vmatprep.mubr.bf16.mxu0 %v9677_v3 }
  0x60   : > { %7721 = vmatmul.mubr.msk.bf16.vlgmr.msra.gmra.mrb[0].mxu0 %vm378_vm1, %v585_v48  ;;  %v1000_v48 = vpack.c.bf16 %v10032_v46, %v7757_v44  ;;  %v10117_v44 = vld [vmem:[%s9806_s23 + $0x240] sm:$0xff] }
  0x61   : > { %765 = vmatpush1.bf16.msra.mxu0 %v9274_v47  ;;  %668 = vmatprep.mubr.bf16.mxu0 %v9677_v3  ;;  %v7787_v47 = vld [vmem:[%s12220_s1 + $0xa0] sm:$0x33] }
  0x62   : > { %7740 = vmatprep.subr.msk.bf16.mxu0 %vm391_vm0, %v7739_v49  ;;  %v9289_v49 = vld [vmem:[%s12220_s1 + $0x90] ss:$8 sps:$4 sm:$0xff]   ;;  %v7791_v50 = vcombine.high %v7787_v47, %v7787_v47 }
  0x65   : > { %767 = vmatpush1.bf16.msra.mxu0 %v759_v54  ;;  %v10044_v54 = vld [vmem:[%s9806_s23 + $0x160] sm:$0xff] }
  0x66   : > { %902 = vmatprep.subr.bf16.mxu0 %v9281_v53  ;;  %v7790_v53 = vcombine.low %v7787_v47, %v7787_v47  ;;  %v10120_v47 = vld [vmem:[%s9806_s23 + $0x250] sm:$0xff] }
  0x68   : > { %7722 = vmatmul.mubr.msk.bf16.gmra.mrb[4].mxu0 %vm378_vm1, %v586_v55  ;;  %v10047_v55 = vld [vmem:[%s9806_s23 + $0x170] sm:$0xff] }
  0x69   : > { %678 = vmatprep.mubr.bf16.mxu0 %v9677_v3  ;;  %v1001_v62 = vpack.c.bf16 %v10047_v55, %v10044_v54 }
  0x70   : > { %7723 = vmatmul.mubr.msk.bf16.gmra.mrb[8].mxu0 %vm378_vm1, %v587_v58  ;;  %v1175_v58 = vsel %vm391_vm0, %v7790_v53, 0  ;;  %v7827_v53 = vld [vmem:[%s12220_s1 + $0xd0] sm:$0x33] }
  0x71   : > { %688 = vmatprep.mubr.bf16.mxu0 %v9677_v3 }
  0x78   : > { %7724 = vmatmul.mubr.msk.bf16.gmra.mrb[12].mxu0 %vm378_vm1, %v588_v61  ;;  %v9296_v61 = vld [vmem:[%s12220_s1 + $0xac] ss:$8 sps:$4 sm:$0xff]  }
  0x79   : > { %796 = vmatprep.mubr.bf16.mxu0 %v9677_v3 }
  0x80   : > { %7741 = vmatmul.mubr.msk.bf16.vlgmr.msra.gmra.mrb[0].mxu0 %vm378_vm1, %v723_v1  ;;  %v10062_v1 = vld [vmem:[%s9806_s23 + $0x190] sm:$0xff] }
  0x81   : > { %903 = vmatpush1.bf16.msra.mxu0 %v9279_v2  ;;  %806 = vmatprep.mubr.bf16.mxu0 %v9677_v3  ;;  %v1002_v2 = vpack.c.bf16 %v10062_v1, %v10059_v0 }
  0x82   : > { %7752 = vmatprep.subr.msk.bf16.mxu0 %vm391_vm0, %v7751_v4  ;;  %v10069_v4 = vld [vmem:[%s9806_s23 + $0x1a0] sm:$0xff] }
  0x85   : > { %905 = vmatpush1.bf16.msra.mxu0 %v897_v8  ;;  %v1003_v8 = vpack.c.bf16 %v10072_v5, %v10069_v4 }
  0x86   : > { %1041 = vmatprep.subr.bf16.mxu0 %v9286_v9  ;;  %v7777_v9 = vld [vmem:[%s9806_s23 + $0x1e0] sm:$0xff] }
  0x88   : > { %7742 = vmatmul.mubr.msk.bf16.gmra.mrb[4].mxu0 %vm378_vm1, %v724_v10  ;;  %v10080_v10 = vld [vmem:[%s9806_s23 + $0x1f0] sm:$0xff] }
  0x89   : > { %816 = vmatprep.mubr.bf16.mxu0 %v9677_v3 }
  0x90   : > { %7743 = vmatmul.mubr.msk.bf16.gmra.mrb[8].mxu0 %vm378_vm1, %v725_v13  ;;  %v7807_v13 = vld [vmem:[%s12220_s1 + $0xb8] sm:$0x33] }
  0x91   : > { %826 = vmatprep.mubr.bf16.mxu0 %v9677_v3  ;;  %v7811_v19 = vcombine.high %v7807_v13, %v7807_v13 }
  0x98   : > { %7744 = vmatmul.mubr.msk.bf16.gmra.mrb[12].mxu0 %vm378_vm1, %v726_v16  ;;  %v1139_v16 = vpack.c.bf16 %v10080_v10, %v7777_v9  ;;  %v10143_v9 = vld [vmem:[%s9806_s23 + $0x171] sm:$0xff] }
  0x99   : > { %934 = vmatprep.mubr.bf16.mxu0 %v9677_v3 }
  0xa0   : > { %7753 = vmatmul.mubr.msk.bf16.vlgmr.msra.gmra.mrb[0].mxu0 %vm378_vm1, %v861_v20  ;;  %v7810_v20 = vcombine.low %v7807_v13, %v7807_v13 }
  0xa1   : > { %1042 = vmatpush1.bf16.msra.mxu0 %v9284_v21  ;;  %944 = vmatprep.mubr.bf16.mxu0 %v9677_v3  ;;  %v10092_v21 = vld [vmem:[%s9806_s23 + $0x200] sm:$0xff] }
  0xa2   : > { %7772 = vmatprep.subr.msk.bf16.mxu0 %vm391_vm0, %v7771_v22  ;;  %v10095_v22 = vld [vmem:[%s9806_s23 + $0x210] sm:$0xff]  ;;  %v1313_v25 = vsel %vm391_vm0, %v7810_v20, 0 }
  0xa3   : > { %v10158_v20 = vld [vmem:[%s9806_s23 + $0x191] sm:$0xff] }
  0xa5   : > { %1044 = vmatpush1.bf16.msra.mxu0 %v1036_v29  ;;  %v9301_v29 = vld [vmem:[%s12220_s1 + $0xc4] ss:$8 sps:$4 sm:$0xff]  }
  0xa6   : > { %1180 = vmatprep.subr.bf16.mxu0 %v9291_v30  ;;  %v1140_v30 = vpack.c.bf16 %v10095_v22, %v10092_v21 }
  0xa8   : > { %7754 = vmatmul.mubr.msk.bf16.gmra.mrb[4].mxu0 %vm378_vm1, %v862_v31  ;;  %v10107_v31 = vld [vmem:[%s9806_s23 + $0x220] sm:$0xff] }
  0xa9   : > { %954 = vmatprep.mubr.bf16.mxu0 %v9677_v3 }
  0xb0   : > { %7755 = vmatmul.mubr.msk.bf16.gmra.mrb[8].mxu0 %vm378_vm1, %v863_v36  ;;  %v10110_v36 = vld [vmem:[%s9806_s23 + $0x230] sm:$0xff] }
  0xb1   : > { %964 = vmatprep.mubr.bf16.mxu0 %v9677_v3 }
  0xb8   : > { %7756 = vmatmul.mubr.msk.bf16.gmra.mrb[12].mxu0 %vm378_vm1, %v864_v43  ;;  %v1141_v43 = vpack.c.bf16 %v10110_v36, %v10107_v31 }
  0xb9   : > { %1073 = vmatprep.mubr.bf16.mxu0 %v9677_v3 }
  0xc0   : > { %7773 = vmatmul.mubr.msk.bf16.vlgmr.msra.gmra.mrb[0].mxu0 %vm378_vm1, %v1000_v48  ;;  %v1142_v48 = vpack.c.bf16 %v10120_v47, %v10117_v44 }
  0xc1   : > { %1181 = vmatpush1.bf16.msra.mxu0 %v9289_v49  ;;  %1083 = vmatprep.mubr.bf16.mxu0 %v9677_v3  ;;  %v7797_v49 = vld [vmem:[%s9806_s23 + $0x141] sm:$0xff] }
  0xc2   : > { %7792 = vmatprep.subr.msk.bf16.mxu0 %vm391_vm0, %v7791_v50  ;;  %v10128_v50 = vld [vmem:[%s9806_s23 + $0x151] sm:$0xff] }
  0xc5   : > { %1183 = vmatpush1.bf16.msra.mxu0 %v1175_v58  ;;  %v1277_v58 = vpack.c.bf16 %v10128_v50, %v7797_v49  ;;  %v10176_v49 = vld [vmem:[%s9806_s23 + $0x1f1] sm:$0xff] }
  0xc6   : > { %1318 = vmatprep.subr.bf16.mxu0 %v9296_v61  ;;  %v9299_v61 = vld [vmem:[%s12220_s1 + $0xc0] ss:$8 sps:$4 sm:$0xff]  }
  0xc8   : > { %7774 = vmatmul.mubr.msk.bf16.gmra.mrb[4].mxu0 %vm378_vm1, %v1001_v62  ;;  %v7831_v62 = vcombine.high %v7827_v53, %v7827_v53 }
  0xc9   : > { %1093 = vmatprep.mubr.bf16.mxu0 %v9677_v3 }
  0xd0   : > { %7775 = vmatmul.mubr.msk.bf16.gmra.mrb[8].mxu0 %vm378_vm1, %v1002_v2  ;;  %v7830_v2 = vcombine.low %v7827_v53, %v7827_v53  ;;  %v7847_v53 = vld [vmem:[%s12220_s1 + $0xe8] sm:$0x33] }
  0xd1   : > { %1103 = vmatprep.mubr.bf16.mxu0 %v9677_v3 }
  0xd2   : > { %v1451_v13 = vsel %vm391_vm0, %v7830_v2, 0  ;;  %v7850_v2 = vcombine.low %v7847_v53, %v7847_v53 }
  0xd8   : > { %7776 = vmatmul.mubr.msk.bf16.gmra.mrb[12].mxu0 %vm378_vm1, %v1003_v8  ;;  %v10140_v8 = vld [vmem:[%s9806_s23 + $0x161] sm:$0xff] }
  0xd9   : > { %1212 = vmatprep.mubr.bf16.mxu0 %v9677_v3 }
  0xe0   : > { %7793 = vmatmul.mubr.msk.bf16.vlgmr.msra.gmra.mrb[0].mxu0 %vm378_vm1, %v1139_v16  ;;  %v9306_v16 = vld [vmem:[%s12220_s1 + $0xdc] ss:$8 sps:$4 sm:$0xff]  }
  0xe1   : > { %1319 = vmatpush1.bf16.msra.mxu0 %v9294_v17  ;;  %1222 = vmatprep.mubr.bf16.mxu0 %v9677_v3  ;;  %v1278_v17 = vpack.c.bf16 %v10143_v9, %v10140_v8 }
  0xe2   : > { %7812 = vmatprep.subr.msk.bf16.mxu0 %vm391_vm0, %v7811_v19  ;;  %v10155_v19 = vld [vmem:[%s9806_s23 + $0x181] sm:$0xff] }
  0xe5   : > { %1321 = vmatpush1.bf16.msra.mxu0 %v1313_v25  ;;  %v1279_v25 = vpack.c.bf16 %v10158_v20, %v10155_v19 }
  0xe6   : > { %1456 = vmatprep.subr.bf16.mxu0 %v9301_v29  ;;  %v10165_v29 = vld [vmem:[%s9806_s23 + $0x1a1] sm:$0xff] }
  0xe8   : > { %7794 = vmatmul.mubr.msk.bf16.gmra.mrb[4].mxu0 %vm378_vm1, %v1140_v30  ;;  %v10168_v30 = vld [vmem:[%s9806_s23 + $0x1b1] sm:$0xff] }
  0xe9   : > { %1232 = vmatprep.mubr.bf16.mxu0 %v9677_v3 }
  0xf0   : > { %7795 = vmatmul.mubr.msk.bf16.gmra.mrb[8].mxu0 %vm378_vm1, %v1141_v43  ;;  %v1280_v43 = vpack.c.bf16 %v10168_v30, %v10165_v29 }
  0xf1   : > { %1242 = vmatprep.mubr.bf16.mxu0 %v9677_v3 }
  0xf8   : > { %7796 = vmatmul.mubr.msk.bf16.gmra.mrb[12].mxu0 %vm378_vm1, %v1142_v48  ;;  %v7817_v48 = vld [vmem:[%s9806_s23 + $0x1e1] sm:$0xff] }
  0xf9   : > { %1350 = vmatprep.mubr.bf16.mxu0 %v9677_v3 }
 0x100   : > { %7813 = vmatmul.mubr.msk.bf16.vlgmr.msra.gmra.mrb[0].mxu0 %vm378_vm1, %v1277_v58  ;;  %v1415_v58 = vpack.c.bf16 %v10176_v49, %v7817_v48  ;;  %v10203_v48 = vld [vmem:[%s9806_s23 + $0x221] sm:$0xff] }
 0x101   : > { %1457 = vmatpush1.bf16.msra.mxu0 %v9299_v61  ;;  %1360 = vmatprep.mubr.bf16.mxu0 %v9677_v3  ;;  %v9304_v61 = vld [vmem:[%s12220_s1 + $0xd8] ss:$8 sps:$4 sm:$0xff]   ;;  %12239 = vst [vmem:[#allocation5_spill] sm:$0xff] %v10203_v48 }
 0x102   : > { %7832 = vmatprep.subr.msk.bf16.mxu0 %vm391_vm0, %v7831_v62  ;;  %v7851_v62 = vcombine.high %v7847_v53, %v7847_v53  ;;  %v10206_v53 = vld [vmem:[%s9806_s23 + $0x231] sm:$0xff] }
 0x103   : > { %12240 = vst [vmem:[#allocation6_spill] sm:$0xff] %v10206_v53 }
 0x105   : > { %1459 = vmatpush1.bf16.msra.mxu0 %v1451_v13  ;;  %v10188_v13 = vld [vmem:[%s9806_s23 + $0x201] sm:$0xff] }
 0x106   : > { %1594 = vmatprep.subr.bf16.mxu0 %v9306_v16  ;;  %v10191_v16 = vld [vmem:[%s9806_s23 + $0x211] sm:$0xff] }
 0x108   : > { %7814 = vmatmul.mubr.msk.bf16.gmra.mrb[4].mxu0 %vm378_vm1, %v1278_v17  ;;  %v1589_v17 = vsel %vm391_vm0, %v7850_v2, 0 }
 0x109   : > { %1370 = vmatprep.mubr.bf16.mxu0 %v9677_v3 }
 0x110   : > { %7815 = vmatmul.mubr.msk.bf16.gmra.mrb[8].mxu0 %vm378_vm1, %v1279_v25  ;;  %v9311_v25 = vld [vmem:[%s12220_s1 + $0xf4] ss:$8 sps:$4 sm:$0xff]  }
 0x111   : > { %1380 = vmatprep.mubr.bf16.mxu0 %v9677_v3 }
 0x118   : > { %7816 = vmatmul.mubr.msk.bf16.gmra.mrb[12].mxu0 %vm378_vm1, %v1280_v43  ;;  %v1416_v43 = vpack.c.bf16 %v10191_v16, %v10188_v13 }
 0x119   : > { %1488 = vmatprep.mubr.bf16.mxu0 %v9677_v3 }
 0x120   : > { %7833 = vmatmul.mubr.msk.bf16.vlgmr.msra.gmra.mrb[0].mxu0 %vm378_vm1, %v1415_v58  ;;  %v1417_v58 = vpack.c.bf16 %v10206_v53, %v10203_v48  ;;  %v9309_v53 = vld [vmem:[%s12220_s1 + $0xf0] ss:$8 sps:$4 sm:$0xff]  }
 0x121   : > { %1595 = vmatpush1.bf16.msra.mxu0 %v9304_v61  ;;  %1498 = vmatprep.mubr.bf16.mxu0 %v9677_v3  ;;  %v10213_v61 = vld [vmem:[%s9806_s23 + $0x241] sm:$0xff] }
 0x122   : > { %7852 = vmatprep.subr.msk.bf16.mxu0 %vm391_vm0, %v7851_v62  ;;  %12241 = vst [vmem:[#allocation7_spill] sm:$0xff] %v10213_v61  ;;  %v10216_v62 = vld [vmem:[%s9806_s23 + $0x251] sm:$0xff] }
 0x123   : > { %12242 = vst [vmem:[#allocation8_spill] sm:$0xff] %v10216_v62  ;;  %v1418_v2 = vpack.c.bf16 %v10216_v62, %v10213_v61  ;;  %v10239_v61 = vld [vmem:[%s9806_s23 + $0x172] sm:$0xff] }
 0x124   : > { %12244 = vst [vmem:[#allocation10_spill] sm:$0xff] %v10239_v61 }
 0x125   : > { %1597 = vmatpush1.bf16.msra.mxu0 %v1589_v17  ;;  %v7837_v17 = vld [vmem:[%s9806_s23 + $0x142] sm:$0xff] }
 0x126   : > { %1733 = vmatprep.subr.bf16.mxu0 %v9311_v25  ;;  %v10224_v25 = vld [vmem:[%s9806_s23 + $0x152] sm:$0xff] }
 0x127   : > { %12243 = vst [vmem:[#allocation9_spill] sm:$0xff] %v10224_v25 }
 0x128   : > { %7834 = vmatmul.mubr.msk.bf16.gmra.mrb[4].mxu0 %vm378_vm1, %v1416_v43  ;;  %v7867_v43 = vld [vmem:[%s12220_s1 + $0x100] sm:$0x33] }
 0x129   : > { %1508 = vmatprep.mubr.bf16.mxu0 %v9677_v3  ;;  %v7871_v48 = vcombine.high %v7867_v43, %v7867_v43  ;;  %v7870_v62 = vcombine.low %v7867_v43, %v7867_v43 }
 0x130   : > { %7835 = vmatmul.mubr.msk.bf16.gmra.mrb[8].mxu0 %vm378_vm1, %v1417_v58  ;;  %v1553_v58 = vpack.c.bf16 %v10224_v25, %v7837_v17  ;;  %v1728_v17 = vsel %vm391_vm0, %v7870_v62, 0  ;;  %v9316_v25 = vld [vmem:[%s12220_s1 + $0x10c] ss:$8 sps:$4 sm:$0xff]   ;;  %v10261_v62 = vld [vmem:[%s9806_s23 + $0x1a2] sm:$0xff] }
 0x131   : > { %1518 = vmatprep.mubr.bf16.mxu0 %v9677_v3 }
 0x138   : > { %7836 = vmatmul.mubr.msk.bf16.gmra.mrb[12].mxu0 %vm378_vm1, %v1418_v2  ;;  %v10236_v2 = vld [vmem:[%s9806_s23 + $0x162] sm:$0xff] }
 0x139   : > { %1626 = vmatprep.mubr.bf16.mxu0 %v9677_v3  ;;  %v1554_v43 = vpack.c.bf16 %v10239_v61, %v10236_v2  ;;  %v10264_v61 = vld [vmem:[%s9806_s23 + $0x1b2] sm:$0xff] }
 0x140   : > { %7853 = vmatmul.mubr.msk.bf16.vlgmr.msra.gmra.mrb[0].mxu0 %vm378_vm1, %v1553_v58  ;;  %v10254_v58 = vld [vmem:[%s9806_s23 + $0x192] sm:$0xff] }
 0x141   : > { %1734 = vmatpush1.bf16.msra.mxu0 %v9309_v53  ;;  %1636 = vmatprep.mubr.bf16.mxu0 %v9677_v3  ;;  %v10251_v53 = vld [vmem:[%s9806_s23 + $0x182] sm:$0xff]  ;;  %12246 = vst [vmem:[#allocation12_spill] sm:$0xff] %v10254_v58 }
 0x142   : > { %7872 = vmatprep.subr.msk.bf16.mxu0 %vm391_vm0, %v7871_v48  ;;  %12245 = vst [vmem:[#allocation11_spill] sm:$0xff] %v10251_v53  ;;  %v1555_v48 = vpack.c.bf16 %v10254_v58, %v10251_v53 }
 0x145   : > { %1736 = vmatpush1.bf16.msra.mxu0 %v1728_v17  ;;  %v7887_v17 = vld [vmem:[%s12220_s1 + $0x118] sm:$0x33] }
 0x146   : > { %1872 = vmatprep.subr.bf16.mxu0 %v9316_v25  ;;  %v1556_v25 = vpack.c.bf16 %v10264_v61, %v10261_v62  ;;  %v7891_v58 = vcombine.high %v7887_v17, %v7887_v17  ;;  %v7890_v53 = vcombine.low %v7887_v17, %v7887_v17 }
 0x148   : > { %7854 = vmatmul.mubr.msk.bf16.gmra.mrb[4].mxu0 %vm378_vm1, %v1554_v43  ;;  %v1692_v43 = vpack.c.bf16 %v9855_v34, %v9840_v27  ;;  %v9321_v27 = vld [vmem:[%s12220_s1 + $0x124] ss:$8 sps:$4 sm:$0xff]   ;;  %v1693_v34 = vpack.c.bf16 %v9867_v38, %v9858_v35  ;;  %v7907_v35 = vld [vmem:[%s12220_s1 + $0x130] sm:$0x33] }
 0x149   : > { %1646 = vmatprep.mubr.bf16.mxu0 %v9677_v3  ;;  %v9608_v38 = vld [vmem:[%s9806_s23 + $0xb0] sm:$0xff] }
 0x150   : > { %7855 = vmatmul.mubr.msk.bf16.gmra.mrb[8].mxu0 %vm378_vm1, %v1555_v48  ;;  %v9314_v48 = vld [vmem:[%s12220_s1 + $0x108] ss:$8 sps:$4 sm:$0xff]  }
 0x151   : > { %1656 = vmatprep.mubr.bf16.mxu0 %v9677_v3 }
 0x158   : > { %7856 = vmatmul.mubr.msk.bf16.gmra.mrb[12].mxu0 %vm378_vm1, %v1556_v25  ;;  %v1867_v25 = vsel %vm391_vm0, %v7890_v53, 0  ;;  %v10294_v53 = vld [vmem:[%s9806_s23 + $0x80] sm:$0xff] }
 0x159   : > { %1765 = vmatprep.mubr.bf16.mxu0 %v9677_v3  ;;  %v1695_v17 = vpack.c.bf16 %v10294_v53, %v9880_v42  ;;  %v7910_v42 = vcombine.low %v7907_v35, %v7907_v35 }
 0x160   : > { %7873 = vmatmul.mubr.msk.bf16.vlgmr.msra.gmra.mrb[0].mxu0 %vm378_vm1, %v1692_v43  ;;  %v9319_v43 = vld [vmem:[%s12220_s1 + $0x120] ss:$8 sps:$4 sm:$0xff]  }
 0x161   : > { %1873 = vmatpush1.bf16.msra.mxu0 %v9314_v48  ;;  %1775 = vmatprep.mubr.bf16.mxu0 %v9677_v3  ;;  %v7911_v48 = vcombine.high %v7907_v35, %v7907_v35  ;;  %v9612_v35 = vld [vmem:[%s9806_s23 + $0xf0] sm:$0xff] }
 0x162   : > { %7892 = vmatprep.subr.msk.bf16.mxu0 %vm391_vm0, %v7891_v58  ;;  %v1694_v58 = vpack.c.bf16 %v9877_v41, %v9870_v39  ;;  %v9609_v39 = vld [vmem:[%s9806_s23 + $0xc0] sm:$0xff] }
 0x163   : > { %v1831_v41 = vpack.c.bf16 %v9609_v39, %v9608_v38  ;;  %v1833_v38 = vpack.c.bf16 %v9829_v23, %v9612_v35  ;;  %v10324_v39 = vld [vmem:[%s9806_s23 + $0x120] sm:$0xff]  ;;  %v1969_v23 = vpack.c.bf16 %v9899_v51, %v9888_v45  ;;  %v9331_v45 = vld [vmem:[%s12220_s1 + $0x154] ss:$8 sps:$4 sm:$0xff]   ;;  %v1970_v51 = vpack.c.bf16 %v9915_v56, %v9903_v52 }
 0x164   : > { %v7947_v52 = vld [vmem:[%s12220_s1 + $0x160] sm:$0x33]  ;;  %v2107_v56 = vpack.c.bf16 %v9948_v6, %v9936_v63  ;;  %v9336_v63 = vld [vmem:[%s12220_s1 + $0x16c] ss:$8 sps:$4 sm:$0xff]   ;;  %v2108_v6 = vpack.c.bf16 %v9963_v11, %v9951_v7  ;;  %v2109_v35 = vpack.c.bf16 %v9973_v14, %v9966_v12  ;;  %v7967_v7 = vld [vmem:[%s12220_s1 + $0x178] sm:$0x33]  ;;  %v2245_v11 = vpack.c.bf16 %v9996_v26, %v9984_v18 }
 0x165   : > { %1875 = vmatpush1.bf16.msra.mxu0 %v1867_v25  ;;  %v2005_v25 = vsel %vm391_vm0, %v7910_v42, 0  ;;  %v9334_v12 = vld [vmem:[%s12220_s1 + $0x168] ss:$8 sps:$4 sm:$0xff]   ;;  %v7971_v14 = vcombine.high %v7967_v7, %v7967_v7  ;;  %v9341_v18 = vld [vmem:[%s12220_s1 + $0x184] ss:$8 sps:$4 sm:$0xff]   ;;  %v2246_v26 = vpack.c.bf16 %v10011_v32, %v9999_v28  ;;  %v2384_v32 = vpack.c.bf16 %v10044_v54, %v10032_v46 }
 0x166   : > { %2010 = vmatprep.subr.bf16.mxu0 %v9321_v27  ;;  %v9326_v27 = vld [vmem:[%s12220_s1 + $0x13c] ss:$8 sps:$4 sm:$0xff]   ;;  %v7987_v28 = vld [vmem:[%s12220_s1 + $0x190] sm:$0x33]  ;;  %v2385_v54 = vpack.c.bf16 %v10059_v0, %v10047_v55  ;;  %v8007_v55 = vld [vmem:[%s12220_s1 + $0x1a8] sm:$0x33]  ;;  %v2523_v0 = vpack.c.bf16 %v10092_v21, %v10080_v10  ;;  %v2524_v21 = vpack.c.bf16 %v10107_v31, %v10095_v22  ;;  %v2661_v31 = vpack.c.bf16 %v10140_v8, %v10128_v50 }
 0x167   : > { %v9346_v46 = vld [vmem:[%s12220_s1 + $0x19c] ss:$8 sps:$4 sm:$0xff]   ;;  %v9356_v50 = vld [vmem:[%s12220_s1 + $0x1cc] ss:$8 sps:$4 sm:$0xff]   ;;  %v2662_v8 = vpack.c.bf16 %v10155_v19, %v10143_v9  ;;  %v2799_v19 = vpack.c.bf16 %v10188_v13, %v10176_v49 }
 0x168   : > { %7874 = vmatmul.mubr.msk.bf16.gmra.mrb[4].mxu0 %vm378_vm1, %v1693_v34  ;;  %v9610_v34 = vld [vmem:[%s9806_s23 + $0xd0] sm:$0xff]  ;;  %v8027_v22 = vld [vmem:[%s12220_s1 + $0x1c0] sm:$0x33]  ;;  %v8047_v9 = vld [vmem:[%s12220_s1 + $0x1d8] sm:$0x33] }
 0x169   : > { %1785 = vmatprep.mubr.bf16.mxu0 %v9677_v3  ;;  %v9351_v10 = vld [vmem:[%s12220_s1 + $0x1b4] ss:$8 sps:$4 sm:$0xff]   ;;  %v9361_v49 = vld [vmem:[%s12220_s1 + $0x1e4] ss:$8 sps:$4 sm:$0xff]  }
 0x16a   : > { %v12247_v13 = vld [vmem:[#allocation5_spill] sm:$0xff] }
 0x170   : > { %7875 = vmatmul.mubr.msk.bf16.gmra.mrb[8].mxu0 %vm378_vm1, %v1694_v58  ;;  %v9611_v58 = vld [vmem:[%s9806_s23 + $0xe0] sm:$0xff] }
 0x171   : > { %1795 = vmatprep.mubr.bf16.mxu0 %v9677_v3 }
 0x178   : > { %7876 = vmatmul.mubr.msk.bf16.gmra.mrb[12].mxu0 %vm378_vm1, %v1695_v17  ;;  %v1832_v17 = vpack.c.bf16 %v9611_v58, %v9610_v34  ;;  %v10354_v34 = vld [vmem:[%s9806_s23 + $0x81] sm:$0xff] }
 0x179   : > { %1904 = vmatprep.mubr.bf16.mxu0 %v9677_v3  ;;  %v1972_v58 = vpack.c.bf16 %v10354_v34, %v9928_v60 }
 0x180   : > { %7893 = vmatmul.mubr.msk.bf16.vlgmr.msra.gmra.mrb[0].mxu0 %vm378_vm1, %v1831_v41  ;;  %v1834_v41 = vpack.c.bf16 %v10324_v39, %v9832_v24 }
 0x181   : > { %2011 = vmatpush1.bf16.msra.mxu0 %v9319_v43  ;;  %1914 = vmatprep.mubr.bf16.mxu0 %v9677_v3  ;;  %v7927_v43 = vld [vmem:[%s12220_s1 + $0x148] sm:$0x33] }
 0x182   : > { %7912 = vmatprep.subr.msk.bf16.mxu0 %vm391_vm0, %v7911_v48  ;;  %v9324_v48 = vld [vmem:[%s12220_s1 + $0x138] ss:$8 sps:$4 sm:$0xff]   ;;  %v7931_v42 = vcombine.high %v7927_v43, %v7927_v43 }
 0x185   : > { %2013 = vmatpush1.bf16.msra.mxu0 %v2005_v25  ;;  %v7930_v25 = vcombine.low %v7927_v43, %v7927_v43  ;;  %v7970_v43 = vcombine.low %v7967_v7, %v7967_v7 }
 0x186   : > { %2148 = vmatprep.subr.bf16.mxu0 %v9326_v27  ;;  %v1971_v27 = vpack.c.bf16 %v9925_v59, %v9918_v57  ;;  %v9329_v57 = vld [vmem:[%s12220_s1 + $0x150] ss:$8 sps:$4 sm:$0xff]   ;;  %v7951_v59 = vcombine.high %v7947_v52, %v7947_v52 }
 0x187   : > { %v2143_v24 = vsel %vm391_vm0, %v7930_v25, 0  ;;  %v7990_v25 = vcombine.low %v7987_v28, %v7987_v28 }
 0x188   : > { %7894 = vmatmul.mubr.msk.bf16.gmra.mrb[4].mxu0 %vm378_vm1, %v1832_v17  ;;  %v7950_v17 = vcombine.low %v7947_v52, %v7947_v52  ;;  %v7984_v52 = vld [vmem:[%s9806_s23 + $0x260] sm:$0xff] }
 0x189   : > { %1924 = vmatprep.mubr.bf16.mxu0 %v9677_v3 }
 0x18a   : > { %v2281_v60 = vsel %vm391_vm0, %v7950_v17, 0  ;;  %v8004_v17 = vld [vmem:[%s9806_s23 + $0x1c1] sm:$0xff] }
 0x190   : > { %7895 = vmatmul.mubr.msk.bf16.gmra.mrb[8].mxu0 %vm378_vm1, %v1833_v38  ;;  %v10384_v38 = vld [vmem:[%s9806_s23 + $0x121] sm:$0xff] }
 0x191   : > { %1934 = vmatprep.mubr.bf16.mxu0 %v9677_v3 }
 0x198   : > { %7896 = vmatmul.mubr.msk.bf16.gmra.mrb[12].mxu0 %vm378_vm1, %v1834_v41  ;;  %v2110_v41 = vpack.c.bf16 %v10384_v38, %v9976_v15  ;;  %v2420_v15 = vsel %vm391_vm0, %v7970_v43, 0  ;;  %v12251_v43 = vld [vmem:[#allocation9_spill] sm:$0xff] }
 0x199   : > { %2042 = vmatprep.mubr.bf16.mxu0 %v9677_v3 }
 0x1a0   : > { %7913 = vmatmul.mubr.msk.bf16.vlgmr.msra.gmra.mrb[0].mxu0 %vm378_vm1, %v1969_v23  ;;  %v2247_v23 = vpack.c.bf16 %v10021_v37, %v10014_v33  ;;  %v9339_v33 = vld [vmem:[%s12220_s1 + $0x180] ss:$8 sps:$4 sm:$0xff]   ;;  %v7991_v37 = vcombine.high %v7987_v28, %v7987_v28 }
 0x1a1   : > { %2149 = vmatpush1.bf16.msra.mxu0 %v9324_v48  ;;  %2052 = vmatprep.mubr.bf16.mxu0 %v9677_v3  ;;  %v10414_v48 = vld [vmem:[%s9806_s23 + $0x82] sm:$0xff]  ;;  %v12252_v28 = vld [vmem:[#allocation10_spill] sm:$0xff] }
 0x1a2   : > { %7932 = vmatprep.subr.msk.bf16.mxu0 %vm391_vm0, %v7931_v42  ;;  %v2248_v42 = vpack.c.bf16 %v10414_v48, %v10024_v40  ;;  %v2559_v40 = vsel %vm391_vm0, %v7990_v25, 0 }
 0x1a5   : > { %2151 = vmatpush1.bf16.msra.mxu0 %v2143_v24  ;;  %v2386_v24 = vpack.c.bf16 %v10069_v4, %v10062_v1  ;;  %v9344_v1 = vld [vmem:[%s12220_s1 + $0x198] ss:$8 sps:$4 sm:$0xff]   ;;  %v8011_v4 = vcombine.high %v8007_v55, %v8007_v55 }
 0x1a6   : > { %2286 = vmatprep.subr.bf16.mxu0 %v9331_v45  ;;  %v7964_v45 = vld [vmem:[%s9806_s23 + $0x1c0] sm:$0xff] }
 0x1a8   : > { %7914 = vmatmul.mubr.msk.bf16.gmra.mrb[4].mxu0 %vm378_vm1, %v1970_v51  ;;  %v2387_v51 = vpack.c.bf16 %v7964_v45, %v10072_v5  ;;  %v8087_v45 = vld [vmem:[%s12220_s1 + $0x208] sm:$0x33] }
 0x1a9   : > { %2062 = vmatprep.mubr.bf16.mxu0 %v9677_v3 }
 0x1b0   : > { %7915 = vmatmul.mubr.msk.bf16.gmra.mrb[8].mxu0 %vm378_vm1, %v1971_v27  ;;  %v8010_v27 = vcombine.low %v8007_v55, %v8007_v55  ;;  %v8091_v55 = vcombine.high %v8087_v45, %v8087_v45 }
 0x1b1   : > { %2072 = vmatprep.mubr.bf16.mxu0 %v9677_v3 }
 0x1b2   : > { %v2697_v5 = vsel %vm391_vm0, %v8010_v27, 0  ;;  %v9371_v27 = vld [vmem:[%s12220_s1 + $0x214] ss:$8 sps:$4 sm:$0xff]  }
 0x1b8   : > { %7916 = vmatmul.mubr.msk.bf16.gmra.mrb[12].mxu0 %vm378_vm1, %v1972_v58  ;;  %v2525_v58 = vpack.c.bf16 %v10117_v44, %v10110_v36  ;;  %v9349_v36 = vld [vmem:[%s12220_s1 + $0x1b0] ss:$8 sps:$4 sm:$0xff]   ;;  %v8031_v44 = vcombine.high %v8027_v22, %v8027_v22 }
 0x1b9   : > { %2180 = vmatprep.mubr.bf16.mxu0 %v9677_v3 }
 0x1c0   : > { %7933 = vmatmul.mubr.msk.bf16.vlgmr.msra.gmra.mrb[0].mxu0 %vm378_vm1, %v2107_v56  ;;  %v2526_v56 = vpack.c.bf16 %v7984_v52, %v10120_v47  ;;  %v8064_v52 = vld [vmem:[%s9806_s23 + $0x90] sm:$0xff] }
 0x1c1   : > { %2287 = vmatpush1.bf16.msra.mxu0 %v9329_v57  ;;  %2190 = vmatprep.mubr.bf16.mxu0 %v9677_v3  ;;  %v8030_v57 = vcombine.low %v8027_v22, %v8027_v22  ;;  %v8077_v22 = vld [vmem:[%s9806_s23 + $0xc0] sm:$0xff] }
 0x1c2   : > { %7952 = vmatprep.subr.msk.bf16.mxu0 %vm391_vm0, %v7951_v59  ;;  %v2663_v59 = vpack.c.bf16 %v10165_v29, %v10158_v20  ;;  %v9354_v20 = vld [vmem:[%s12220_s1 + $0x1c8] ss:$8 sps:$4 sm:$0xff]   ;;  %v8051_v29 = vcombine.high %v8047_v9, %v8047_v9 }
 0x1c3   : > { %v2835_v47 = vsel %vm391_vm0, %v8030_v57, 0  ;;  %v9369_v57 = vld [vmem:[%s12220_s1 + $0x210] ss:$8 sps:$4 sm:$0xff]  }
 0x1c5   : > { %2289 = vmatpush1.bf16.msra.mxu0 %v2281_v60  ;;  %v2664_v60 = vpack.c.bf16 %v8004_v17, %v10168_v30  ;;  %v9376_v17 = vld [vmem:[%s12220_s1 + $0x22c] ss:$8 sps:$4 sm:$0xff]  }
 0x1c6   : > { %2425 = vmatprep.subr.bf16.mxu0 %v9336_v63  ;;  %v8050_v63 = vcombine.low %v8047_v9, %v8047_v9  ;;  %v8081_v9 = vld [vmem:[%s9806_s23 + $0x100] sm:$0xff] }
 0x1c8   : > { %7934 = vmatmul.mubr.msk.bf16.gmra.mrb[4].mxu0 %vm378_vm1, %v2108_v6  ;;  %v2973_v30 = vsel %vm391_vm0, %v8050_v63, 0  ;;  %v2800_v6 = vpack.c.bf16 %v12247_v13, %v10191_v16  ;;  %v8067_v16 = vld [vmem:[%s12220_s1 + $0x1f0] sm:$0x33]  ;;  %v8127_v13 = vld [vmem:[%s12220_s1 + $0x238] sm:$0x33] }
 0x1c9   : > { %2200 = vmatprep.mubr.bf16.mxu0 %v9677_v3 }
 0x1d0   : > { %7935 = vmatmul.mubr.msk.bf16.gmra.mrb[8].mxu0 %vm378_vm1, %v2109_v35  ;;  %v12248_v35 = vld [vmem:[#allocation6_spill] sm:$0xff] }
 0x1d1   : > { %2210 = vmatprep.mubr.bf16.mxu0 %v9677_v3 }
 0x1d8   : > { %7936 = vmatmul.mubr.msk.bf16.gmra.mrb[12].mxu0 %vm378_vm1, %v2110_v41  ;;  %v12249_v41 = vld [vmem:[#allocation7_spill] sm:$0xff] }
 0x1d9   : > { %2318 = vmatprep.mubr.bf16.mxu0 %v9677_v3  ;;  %v2801_v7 = vpack.c.bf16 %v12249_v41, %v12248_v35  ;;  %v9374_v35 = vld [vmem:[%s12220_s1 + $0x228] ss:$8 sps:$4 sm:$0xff]   ;;  %v8131_v41 = vcombine.high %v8127_v13, %v8127_v13 }
 0x1e0   : > { %7953 = vmatmul.mubr.msk.bf16.vlgmr.msra.gmra.mrb[0].mxu0 %vm378_vm1, %v2245_v11  ;;  %v8024_v11 = vld [vmem:[%s9806_s23 + $0x261] sm:$0xff] }
 0x1e1   : > { %2426 = vmatpush1.bf16.msra.mxu0 %v9334_v12  ;;  %2328 = vmatprep.mubr.bf16.mxu0 %v9677_v3  ;;  %v12250_v12 = vld [vmem:[#allocation8_spill] sm:$0xff] }
 0x1e2   : > { %7972 = vmatprep.subr.msk.bf16.mxu0 %vm391_vm0, %v7971_v14  ;;  %v2802_v14 = vpack.c.bf16 %v8024_v11, %v12250_v12  ;;  %v8100_v11 = vld [vmem:[%s9806_s23 + $0x51] sm:$0xff] }
 0x1e5   : > { %2428 = vmatpush1.bf16.msra.mxu0 %v2420_v15  ;;  %v2937_v15 = vpack.c.bf16 %v10236_v2, %v12251_v43  ;;  %v9366_v2 = vld [vmem:[%s12220_s1 + $0x1fc] ss:$8 sps:$4 sm:$0xff]  }
 0x1e6   : > { %2564 = vmatprep.subr.bf16.mxu0 %v9341_v18  ;;  %v9359_v18 = vld [vmem:[%s12220_s1 + $0x1e0] ss:$8 sps:$4 sm:$0xff]  }
 0x1e7   : > { %v8101_v43 = vld [vmem:[%s9806_s23 + $0x61] sm:$0xff] }
 0x1e8   : > { %7954 = vmatmul.mubr.msk.bf16.gmra.mrb[4].mxu0 %vm378_vm1, %v2246_v26  ;;  %v8071_v26 = vcombine.high %v8067_v16, %v8067_v16 }
 0x1e9   : > { %2338 = vmatprep.mubr.bf16.mxu0 %v9677_v3 }
 0x1f0   : > { %7955 = vmatmul.mubr.msk.bf16.gmra.mrb[8].mxu0 %vm378_vm1, %v2247_v23  ;;  %v8070_v23 = vcombine.low %v8067_v16, %v8067_v16 }
 0x1f1   : > { %2348 = vmatprep.mubr.bf16.mxu0 %v9677_v3 }
 0x1f8   : > { %7956 = vmatmul.mubr.msk.bf16.gmra.mrb[12].mxu0 %vm378_vm1, %v2248_v42  ;;  %v3112_v42 = vsel %vm391_vm0, %v8070_v23, 0 }
 0x1f9   : > { %2457 = vmatprep.mubr.bf16.mxu0 %v9677_v3 }
 0x200   : > { %7973 = vmatmul.mubr.msk.bf16.vlgmr.msra.gmra.mrb[0].mxu0 %vm378_vm1, %v2384_v32  ;;  %v12253_v32 = vld [vmem:[#allocation11_spill] sm:$0xff] }
 0x201   : > { %2565 = vmatpush1.bf16.msra.mxu0 %v9339_v33  ;;  %2467 = vmatprep.mubr.bf16.mxu0 %v9677_v3  ;;  %v2938_v33 = vpack.c.bf16 %v12253_v32, %v12252_v28  ;;  %v8147_v28 = vld [vmem:[%s12220_s1 + $0x250] sm:$0x33] }
 0x202   : > { %7992 = vmatprep.subr.msk.bf16.mxu0 %vm391_vm0, %v7991_v37  ;;  %v12254_v37 = vld [vmem:[#allocation12_spill] sm:$0xff] }
 0x203   : > { %v2939_v25 = vpack.c.bf16 %v10261_v62, %v12254_v37  ;;  %v8151_v37 = vcombine.high %v8147_v28, %v8147_v28 }
 0x205   : > { %2567 = vmatpush1.bf16.msra.mxu0 %v2559_v40  ;;  %v8044_v40 = vld [vmem:[%s9806_s23 + $0x1c2] sm:$0xff] }
 0x206   : > { %2702 = vmatprep.subr.bf16.mxu0 %v9346_v46  ;;  %v2940_v46 = vpack.c.bf16 %v8044_v40, %v10264_v61  ;;  %v8059_v61 = vld [vmem:[%s9806_s23 + $0x40] sm:$0xff]  ;;  %v8120_v40 = vld [vmem:[%s9806_s23 + $0xf1] sm:$0xff] }
 0x208   : > { %7974 = vmatmul.mubr.msk.bf16.gmra.mrb[4].mxu0 %vm378_vm1, %v2385_v54  ;;  %v8057_v54 = vld [vmem:[%s9806_s23 + $0x20] sm:$0xff] }
 0x209   : > { %2477 = vmatprep.mubr.bf16.mxu0 %v9677_v3 }
 0x210   : > { %7975 = vmatmul.mubr.msk.bf16.gmra.mrb[8].mxu0 %vm378_vm1, %v2386_v24  ;;  %v8058_v24 = vld [vmem:[%s9806_s23 + $0x30] sm:$0xff] }
 0x211   : > { %2487 = vmatprep.mubr.bf16.mxu0 %v9677_v3  ;;  %v3076_v62 = vpack.c.bf16 %v8058_v24, %v8057_v54  ;;  %v8121_v24 = vld [vmem:[%s9806_s23 + $0x101] sm:$0xff] }
 0x218   : > { %7976 = vmatmul.mubr.msk.bf16.gmra.mrb[12].mxu0 %vm378_vm1, %v2387_v51  ;;  %v9364_v51 = vld [vmem:[%s12220_s1 + $0x1f8] ss:$8 sps:$4 sm:$0xff]  }
 0x219   : > { %2596 = vmatprep.mubr.bf16.mxu0 %v9677_v3 }
 0x220   : > { %7993 = vmatmul.mubr.msk.bf16.vlgmr.msra.gmra.mrb[0].mxu0 %vm378_vm1, %v2523_v0  ;;  %v8090_v0 = vcombine.low %v8087_v45, %v8087_v45  ;;  %v8122_v45 = vld [vmem:[%s9806_s23 + $0x111] sm:$0xff] }
 0x221   : > { %2703 = vmatpush1.bf16.msra.mxu0 %v9344_v1  ;;  %2606 = vmatprep.mubr.bf16.mxu0 %v9677_v3  ;;  %v8060_v1 = vld [vmem:[%s9806_s23 + $0x50] sm:$0xff] }
 0x222   : > { %8012 = vmatprep.subr.msk.bf16.mxu0 %vm391_vm0, %v8011_v4  ;;  %v3251_v4 = vsel %vm391_vm0, %v8090_v0, 0  ;;  %v8137_v0 = vld [vmem:[%s9806_s23 + $0x22] sm:$0xff] }
 0x225   : > { %2705 = vmatpush1.bf16.msra.mxu0 %v2697_v5  ;;  %v3077_v5 = vpack.c.bf16 %v8060_v1, %v8059_v61  ;;  %v8138_v61 = vld [vmem:[%s9806_s23 + $0x32] sm:$0xff] }
 0x226   : > { %2840 = vmatprep.subr.bf16.mxu0 %v9351_v10  ;;  %v8061_v10 = vld [vmem:[%s9806_s23 + $0x60] sm:$0xff]  ;;  %v3629_v1 = vpack.c.bf16 %v8138_v61, %v8137_v0 }
 0x228   : > { %7994 = vmatmul.mubr.msk.bf16.gmra.mrb[4].mxu0 %vm378_vm1, %v2524_v21  ;;  %v8062_v21 = vld [vmem:[%s9806_s23 + $0x70] sm:$0xff] }
 0x229   : > { %2616 = vmatprep.mubr.bf16.mxu0 %v9677_v3 }
 0x230   : > { %7995 = vmatmul.mubr.msk.bf16.gmra.mrb[8].mxu0 %vm378_vm1, %v2525_v58  ;;  %v3078_v58 = vpack.c.bf16 %v8062_v21, %v8061_v10  ;;  %v8142_v10 = vld [vmem:[%s9806_s23 + $0x72] sm:$0xff] }
 0x231   : > { %2626 = vmatprep.mubr.bf16.mxu0 %v9677_v3 }
 0x238   : > { %7996 = vmatmul.mubr.msk.bf16.gmra.mrb[12].mxu0 %vm378_vm1, %v2526_v56  ;;  %v3079_v56 = vpack.c.bf16 %v8064_v52, %v10294_v53  ;;  %v8079_v53 = vld [vmem:[%s9806_s23 + $0xe0] sm:$0xff] }
 0x239   : > { %2734 = vmatprep.mubr.bf16.mxu0 %v9677_v3 }
 0x240   : > { %8013 = vmatmul.mubr.msk.bf16.vlgmr.msra.gmra.mrb[0].mxu0 %vm378_vm1, %v2661_v31  ;;  %v8078_v31 = vld [vmem:[%s9806_s23 + $0xd0] sm:$0xff] }
 0x241   : > { %2841 = vmatpush1.bf16.msra.mxu0 %v9349_v36  ;;  %2744 = vmatprep.mubr.bf16.mxu0 %v9677_v3  ;;  %v8107_v36 = vld [vmem:[%s12220_s1 + $0x220] sm:$0x33] }
 0x242   : > { %8032 = vmatprep.subr.msk.bf16.mxu0 %vm391_vm0, %v8031_v44  ;;  %v3215_v44 = vpack.c.bf16 %v8078_v31, %v8077_v22 }
 0x245   : > { %2843 = vmatpush1.bf16.msra.mxu0 %v2835_v47  ;;  %v8111_v47 = vcombine.high %v8107_v36, %v8107_v36 }
 0x246   : > { %2978 = vmatprep.subr.bf16.mxu0 %v9356_v50  ;;  %v8110_v50 = vcombine.low %v8107_v36, %v8107_v36  ;;  %v3759_v36 = vld [vmem:[%s12221_s2] sm:$0x3] }
 0x248   : > { %8014 = vmatmul.mubr.msk.bf16.gmra.mrb[4].mxu0 %vm378_vm1, %v2662_v8  ;;  %v8080_v8 = vld [vmem:[%s9806_s23 + $0xf0] sm:$0xff] }
 0x249   : > { %2754 = vmatprep.mubr.bf16.mxu0 %v9677_v3 }
 0x250   : > { %8015 = vmatmul.mubr.msk.bf16.gmra.mrb[8].mxu0 %vm378_vm1, %v2663_v59  ;;  %v3389_v59 = vsel %vm391_vm0, %v8110_v50, 0 }
 0x251   : > { %2764 = vmatprep.mubr.bf16.mxu0 %v9677_v3 }
 0x258   : > { %8016 = vmatmul.mubr.msk.bf16.gmra.mrb[12].mxu0 %vm378_vm1, %v2664_v60  ;;  %v3216_v60 = vpack.c.bf16 %v8080_v8, %v8079_v53 }
 0x259   : > { %2872 = vmatprep.mubr.bf16.mxu0 %v9677_v3 }
 0x260   : > { %8033 = vmatmul.mubr.msk.bf16.vlgmr.msra.gmra.mrb[0].mxu0 %vm378_vm1, %v2799_v19  ;;  %v8082_v19 = vld [vmem:[%s9806_s23 + $0x110] sm:$0xff] }
 0x261   : > { %2979 = vmatpush1.bf16.msra.mxu0 %v9354_v20  ;;  %2882 = vmatprep.mubr.bf16.mxu0 %v9677_v3  ;;  %v3217_v20 = vpack.c.bf16 %v8082_v19, %v8081_v9 }
 0x262   : > { %8052 = vmatprep.subr.msk.bf16.mxu0 %vm391_vm0, %v8051_v29  ;;  %v8084_v29 = vld [vmem:[%s9806_s23 + $0x130] sm:$0xff] }
 0x263   : > { %v3218_v63 = vpack.c.bf16 %v8084_v29, %v10324_v39  ;;  %v8099_v39 = vld [vmem:[%s9806_s23 + $0x41] sm:$0xff] }
 0x264   : > { %v3354_v16 = vpack.c.bf16 %v8100_v11, %v8099_v39 }
 0x265   : > { %2981 = vmatpush1.bf16.msra.mxu0 %v2973_v30  ;;  %v8097_v30 = vld [vmem:[%s9806_s23 + $0x21] sm:$0xff] }
 0x266   : > { %3117 = vmatprep.subr.bf16.mxu0 %v9361_v49  ;;  %v8098_v49 = vld [vmem:[%s9806_s23 + $0x31] sm:$0xff] }
 0x268   : > { %8034 = vmatmul.mubr.msk.bf16.gmra.mrb[4].mxu0 %vm378_vm1, %v2800_v6  ;;  %v3353_v6 = vpack.c.bf16 %v8098_v49, %v8097_v30 }
 0x269   : > { %2892 = vmatprep.mubr.bf16.mxu0 %v9677_v3 }
 0x270   : > { %8035 = vmatmul.mubr.msk.bf16.gmra.mrb[8].mxu0 %vm378_vm1, %v2801_v7  ;;  %v8130_v7 = vcombine.low %v8127_v13, %v8127_v13 }
 0x271   : > { %2902 = vmatprep.mubr.bf16.mxu0 %v9677_v3 }
 0x272   : > { %v3527_v12 = vsel %vm391_vm0, %v8130_v7, 0 }
 0x278   : > { %8036 = vmatmul.mubr.msk.bf16.gmra.mrb[12].mxu0 %vm378_vm1, %v2802_v14  ;;  %v9381_v14 = vld [vmem:[%s12220_s1 + $0x244] ss:$8 sps:$4 sm:$0xff]  }
 0x279   : > { %3010 = vmatprep.mubr.bf16.mxu0 %v9677_v3 }
 0x280   : > { %8053 = vmatmul.mubr.msk.bf16.vlgmr.msra.gmra.mrb[0].mxu0 %vm378_vm1, %v2937_v15  ;;  %v8102_v15 = vld [vmem:[%s9806_s23 + $0x71] sm:$0xff] }
 0x281   : > { %3118 = vmatpush1.bf16.msra.mxu0 %v9359_v18  ;;  %3020 = vmatprep.mubr.bf16.mxu0 %v9677_v3  ;;  %v3355_v18 = vpack.c.bf16 %v8102_v15, %v8101_v43 }
 0x282   : > { %8072 = vmatprep.subr.msk.bf16.mxu0 %vm391_vm0, %v8071_v26  ;;  %v8104_v26 = vld [vmem:[%s9806_s23 + $0x91] sm:$0xff] }
 0x283   : > { %v3356_v23 = vpack.c.bf16 %v8104_v26, %v10354_v34  ;;  %v8119_v34 = vld [vmem:[%s9806_s23 + $0xe1] sm:$0xff] }
 0x284   : > { %v3492_v54 = vpack.c.bf16 %v8120_v40, %v8119_v34 }
 0x285   : > { %3120 = vmatpush1.bf16.msra.mxu0 %v3112_v42  ;;  %v8117_v42 = vld [vmem:[%s9806_s23 + $0xc1] sm:$0xff] }
 0x286   : > { %3256 = vmatprep.subr.bf16.mxu0 %v9366_v2  ;;  %v8118_v2 = vld [vmem:[%s9806_s23 + $0xd1] sm:$0xff] }
 0x287   : > { %v3491_v32 = vpack.c.bf16 %v8118_v2, %v8117_v42 }
 0x288   : > { %8054 = vmatmul.mubr.msk.bf16.gmra.mrb[4].mxu0 %vm378_vm1, %v2938_v33  ;;  %v9379_v33 = vld [vmem:[%s12220_s1 + $0x240] ss:$8 sps:$4 sm:$0xff]  }
 0x289   : > { %3030 = vmatprep.mubr.bf16.mxu0 %v9677_v3 }
 0x290   : > { %8055 = vmatmul.mubr.msk.bf16.gmra.mrb[8].mxu0 %vm378_vm1, %v2939_v25  ;;  %v8150_v25 = vcombine.low %v8147_v28, %v8147_v28 }
 0x291   : > { %3040 = vmatprep.mubr.bf16.mxu0 %v9677_v3 }
 0x298   : > { %8056 = vmatmul.mubr.msk.bf16.gmra.mrb[12].mxu0 %vm378_vm1, %v2940_v46  ;;  %v3665_v46 = vsel %vm391_vm0, %v8150_v25, 0 }
 0x299   : > { %3149 = vmatprep.mubr.bf16.mxu0 %v9677_v3 }
 0x2a0   : > { %8073 = vmatmul.mubr.msk.bf16.vlgmr.msra.gmra.mrb[0].mxu0 %vm378_vm1, %v3076_v62  ;;  %v3493_v62 = vpack.c.bf16 %v8122_v45, %v8121_v24 }
 0x2a1   : > { %3257 = vmatpush1.bf16.msra.mxu0 %v9364_v51  ;;  %3159 = vmatprep.mubr.bf16.mxu0 %v9677_v3  ;;  %v8124_v51 = vld [vmem:[%s9806_s23 + $0x131] sm:$0xff] }
 0x2a2   : > { %8092 = vmatprep.subr.msk.bf16.mxu0 %vm391_vm0, %v8091_v55  ;;  %v3494_v55 = vpack.c.bf16 %v8124_v51, %v10384_v38  ;;  %v8141_v38 = vld [vmem:[%s9806_s23 + $0x62] sm:$0xff] }
 0x2a3   : > { %v3631_v21 = vpack.c.bf16 %v8142_v10, %v8141_v38 }
 0x2a5   : > { %3259 = vmatpush1.bf16.msra.mxu0 %v3251_v4  ;;  %v8139_v4 = vld [vmem:[%s9806_s23 + $0x42] sm:$0xff] }
 0x2a6   : > { %3394 = vmatprep.subr.bf16.mxu0 %v9371_v27  ;;  %v8140_v27 = vld [vmem:[%s9806_s23 + $0x52] sm:$0xff] }
 0x2a8   : > { %8074 = vmatmul.mubr.msk.bf16.gmra.mrb[4].mxu0 %vm378_vm1, %v3077_v5  ;;  %v3630_v5 = vpack.c.bf16 %v8140_v27, %v8139_v4 }
 0x2a9   : > { %3169 = vmatprep.mubr.bf16.mxu0 %v9677_v3 }
 0x2b0   : > { %8075 = vmatmul.mubr.msk.bf16.gmra.mrb[8].mxu0 %vm378_vm1, %v3078_v58  ;;  %v8144_v58 = vld [vmem:[%s9806_s23 + $0x92] sm:$0xff]  ;;  %s7612_s23 = scalar_lea.sflag [#allocation3], %s323_s25 }
 0x2b1   : > { %3179 = vmatprep.mubr.bf16.mxu0 %v9677_v3  ;;  %v3632_v52 = vpack.c.bf16 %v8144_v58, %v10414_v48 }
 0x2b8   : > { %8076 = vmatmul.mubr.msk.bf16.gmra.mrb[12].mxu0 %vm378_vm1, %v3079_v56  ;;  %v3761_v56 = vlaneseq }
 0x2b9   : > { %3288 = vmatprep.mubr.bf16.mxu0 %v9677_v3 }
 0x2ba   : > { %v10675_v22 = vshrl.u32 %v3761_v56, 7 }
 0x2bc   : > { %v10678_v31 = vsub.s32 0, %v10675_v22 }
 0x2c0   : > { %8093 = vmatmul.mubr.msk.bf16.vlgmr.msra.gmra.mrb[0].mxu0 %vm378_vm1, %v3215_v44  ;;  %v10684_v44 = vsub.s32 1, %v10675_v22 }
 0x2c1   : > { %3395 = vmatpush1.bf16.msra.mxu0 %v9369_v57  ;;  %3298 = vmatprep.mubr.bf16.mxu0 %v9677_v3  ;;  %v10687_v57 = vrot.slane %v3759_v36, %v10678_v31 }
 0x2c2   : > { %8112 = vmatprep.subr.msk.bf16.mxu0 %vm391_vm0, %v8111_v47  ;;  %v10690_v48 = vrot.slane %v3759_v36, %v10684_v44 }
 0x2c5   : > { %3397 = vmatpush1.bf16.msra.mxu0 %v3389_v59 }
 0x2c6   : > { %3532 = vmatprep.subr.bf16.mxu0 %v9376_v17 }
 0x2c8   : > { %8094 = vmatmul.mubr.msk.bf16.gmra.mrb[4].mxu0 %vm378_vm1, %v3216_v60 }
 0x2c9   : > { %3308 = vmatprep.mubr.bf16.mxu0 %v9677_v3 }
 0x2d0   : > { %8095 = vmatmul.mubr.msk.bf16.gmra.mrb[8].mxu0 %vm378_vm1, %v3217_v20 }
 0x2d1   : > { %3318 = vmatprep.mubr.bf16.mxu0 %v9677_v3 }
 0x2d8   : > { %8096 = vmatmul.mubr.msk.bf16.gmra.mrb[12].mxu0 %vm378_vm1, %v3218_v63 }
 0x2d9   : > { %3426 = vmatprep.mubr.bf16.mxu0 %v9677_v3 }
 0x2e0   : > { %8113 = vmatmul.mubr.msk.bf16.vlgmr.msra.gmra.mrb[0].mxu0 %vm378_vm1, %v3353_v6 }
 0x2e1   : > { %3533 = vmatpush1.bf16.msra.mxu0 %v9374_v35  ;;  %3436 = vmatprep.mubr.bf16.mxu0 %v9677_v3 }
 0x2e2   : > { %8132 = vmatprep.subr.msk.bf16.mxu0 %vm391_vm0, %v8131_v41 }
 0x2e5   : > { %3535 = vmatpush1.bf16.msra.mxu0 %v3527_v12 }
 0x2e6   : > { %3670 = vmatprep.subr.bf16.mxu0 %v9381_v14 }
 0x2e8   : > { %8114 = vmatmul.mubr.msk.bf16.gmra.mrb[4].mxu0 %vm378_vm1, %v3354_v16 }
 0x2e9   : > { %3446 = vmatprep.mubr.bf16.mxu0 %v9677_v3 }
 0x2f0   : > { %8115 = vmatmul.mubr.msk.bf16.gmra.mrb[8].mxu0 %vm378_vm1, %v3355_v18 }
 0x2f1   : > { %3456 = vmatprep.mubr.bf16.mxu0 %v9677_v3 }
 0x2f8   : > { %8116 = vmatmul.mubr.msk.bf16.gmra.mrb[12].mxu0 %vm378_vm1, %v3356_v23 }
 0x2f9   : > { %3564 = vmatprep.mubr.bf16.mxu0 %v9677_v3 }
 0x300   : > { %8133 = vmatmul.mubr.msk.bf16.vlgmr.msra.gmra.mrb[0].mxu0 %vm378_vm1, %v3491_v32 }
 0x301   : > { %3671 = vmatpush1.bf16.msra.mxu0 %v9379_v33  ;;  %3574 = vmatprep.mubr.bf16.mxu0 %v9677_v3 }
 0x302   : > { %8152 = vmatprep.subr.msk.bf16.mxu0 %vm391_vm0, %v8151_v37 }
 0x305   : > { %3673 = vmatpush1.bf16.msra.mxu0 %v3665_v46 }
 0x308   : > { %8134 = vmatmul.mubr.msk.bf16.gmra.mrb[4].mxu0 %vm378_vm1, %v3492_v54 }
 0x309   : > { %3584 = vmatprep.mubr.bf16.mxu0 %v9677_v3 }
 0x310   : > { %8135 = vmatmul.mubr.msk.bf16.gmra.mrb[8].mxu0 %vm378_vm1, %v3493_v62 }
 0x311   : > { %3594 = vmatprep.mubr.bf16.mxu0 %v9677_v3 }
 0x318   : > { %8136 = vmatmul.mubr.msk.bf16.gmra.mrb[12].mxu0 %vm378_vm1, %v3494_v55 }
 0x319   : > { %3702 = vmatprep.mubr.bf16.mxu0 %v9677_v3 }
 0x320   : > { %8153 = vmatmul.mubr.msk.bf16.vlgmr.msra.gmra.mrb[0].mxu0 %vm378_vm1, %v3629_v1 }
 0x321   : > { %3712 = vmatprep.mubr.bf16.mxu0 %v9677_v3 }
 0x328   : > { %8154 = vmatmul.mubr.msk.bf16.gmra.mrb[4].mxu0 %vm378_vm1, %v3630_v5 }
 0x329   : > { %3722 = vmatprep.mubr.bf16.mxu0 %v9677_v3 }
 0x330   : > { %8155 = vmatmul.mubr.msk.bf16.gmra.mrb[8].mxu0 %vm378_vm1, %v3631_v21 }
 0x331   : > { %3732 = vmatprep.mubr.bf16.mxu0 %v9677_v3 }
 0x338   : > { %8156 = vmatmul.mubr.msk.bf16.gmra.mrb[12].mxu0 %vm378_vm1, %v3632_v52 }
 0x3f3   : > { %v3704_v47 = vpop.f32.mrb[0].mxu0 }
 0x3f4   : > { %v3771_v50 = vadd.f32 %v10687_v57, %v3704_v47  ;;  %v3706_v53 = vpop.f32.mrb[1].mxu0 }
 0x3f5   : > { %v3772_v8 = vadd.f32 %v10690_v48, %v3706_v53  ;;  %v3708_v59 = vpop.f32.mrb[2].mxu0 }
 0x3f6   : > { %v3773_v17 = vadd.f32 %v10687_v57, %v3708_v59  ;;  %v3710_v60 = vpop.f32.mrb[3].mxu0  ;;  %v3787_v19 = vmax.f32 %v3771_v50, 0.0 }
 0x3f7   : > { %v3774_v9 = vadd.f32 %v10690_v48, %v3710_v60  ;;  %v3788_v29 = vmax.f32 %v3772_v8, 0.0 }
 0x3f8   : > { %v3789_v20 = vmax.f32 %v3773_v17, 0.0 }
 0x3f9   : > { %v3790_v63 = vmax.f32 %v3774_v9, 0.0 }
 0x3fa   : > { %v3803_v30 = vmax.f32 %v3787_v19, %v3789_v20 }
 0x3fb   : > { %v3804_v49 = vmax.f32 %v3788_v29, %v3790_v63  ;;  %v3714_v13 = vpop.f32.mrb[4].mxu0 }
 0x3fc   : > { %v3819_v6 = vrot.slane %v3803_v30, 1  ;;  %v3775_v35 = vadd.f32 %v10687_v57, %v3714_v13  ;;  %v3716_v41 = vpop.f32.mrb[5].mxu0  ;;  %v3825_v14 = vrot.slane %v3803_v30, 2 }
 0x3fd   : > { %v3820_v7 = vrot.slane %v3804_v49, 1  ;;  %v3776_v39 = vadd.f32 %v10690_v48, %v3716_v41  ;;  %v3718_v11 = vpop.f32.mrb[6].mxu0  ;;  %v3826_v26 = vrot.slane %v3804_v49, 2 }
 0x3fe   : > { %v3823_v12 = vmax.f32 %v3803_v30, %v3819_v6  ;;  %v3791_v16 = vmax.f32 %v3775_v35, 0.0  ;;  %v3777_v43 = vadd.f32 %v10687_v57, %v3718_v11  ;;  %v3720_v15 = vpop.f32.mrb[7].mxu0 }
 0x3ff   : > { %v3824_v18 = vmax.f32 %v3804_v49, %v3820_v7  ;;  %v3792_v23 = vmax.f32 %v3776_v39, 0.0  ;;  %v3778_v42 = vadd.f32 %v10690_v48, %v3720_v15 }
 0x400   : > { %v3829_v2 = vmax.f32 %v3823_v12, %v3825_v14  ;;  %v3805_v28 = vmax.f32 %v3789_v20, %v3791_v16  ;;  %v3793_v32 = vmax.f32 %v3777_v43, 0.0 }
 0x401   : > { %v3830_v33 = vmax.f32 %v3824_v18, %v3826_v26  ;;  %v3806_v37 = vmax.f32 %v3790_v63, %v3792_v23  ;;  %v3794_v25 = vmax.f32 %v3778_v42, 0.0 }
 0x402   : > { %v3875_v34 = vrot.slane %v3829_v2, 1  ;;  %v3934_v40 = vsel %vm3933_vm2, %v3823_v12, %v3829_v2  ;;  %v3807_v46 = vmax.f32 %v3805_v28, %v3793_v32  ;;  %v3879_v54 = vrot.slane %v3829_v2, 2 }
 0x403   : > { %v3876_v24 = vrot.slane %v3830_v33, 1  ;;  %v3935_v45 = vsel %vm3933_vm2, %v3824_v18, %v3830_v33  ;;  %v3808_v62 = vmax.f32 %v3806_v37, %v3794_v25  ;;  %v3724_v51 = vpop.f32.mrb[8].mxu0  ;;  %v3880_v0 = vrot.slane %v3830_v33, 2 }
 0x404   : > { %v3936_v55 = vsel %vm391_vm0, %v3934_v40, %v3875_v34  ;;  %v3833_v61 = vrot.slane %v3807_v46, 1  ;;  %v3779_v1 = vadd.f32 %v10687_v57, %v3724_v51  ;;  %v3726_v4 = vpop.f32.mrb[9].mxu0  ;;  %v3839_v5 = vrot.slane %v3807_v46, 2 }
 0x405   : > { %v3937_v27 = vsel %vm391_vm0, %v3935_v45, %v3876_v24  ;;  %v3834_v38 = vrot.slane %v3808_v62, 1  ;;  %v3780_v10 = vadd.f32 %v10690_v48, %v3726_v4  ;;  %v3728_v21 = vpop.f32.mrb[10].mxu0  ;;  %v3840_v52 = vrot.slane %v3808_v62, 2 }
 0x406   : > { %v3837_v58 = vmax.f32 %v3807_v46, %v3833_v61  ;;  %v3795_v56 = vmax.f32 %v3779_v1, 0.0  ;;  %v3781_v36 = vadd.f32 %v10687_v57, %v3728_v21  ;;  %v3730_v47 = vpop.f32.mrb[11].mxu0  ;;  %v3939_v59 = vsel %vm3938_vm3, %v3936_v55, %v3879_v54 }
 0x407   : > { %v3838_v50 = vmax.f32 %v3808_v62, %v3834_v38  ;;  %v3796_v53 = vmax.f32 %v3780_v10, 0.0  ;;  %v3782_v8 = vadd.f32 %v10690_v48, %v3730_v47  ;;  %v3940_v30 = vsel %vm3938_vm3, %v3937_v27, %v3880_v0 }
 0x408   : > { %v3843_v17 = vmax.f32 %v3837_v58, %v3839_v5  ;;  %v3885_v60 = vrot.slane %v3837_v58, 4  ;;  %v3809_v9 = vmax.f32 %v3793_v32, %v3795_v56  ;;  %v3797_v19 = vmax.f32 %v3781_v36, 0.0 }
 0x409   : > { %v3844_v20 = vmax.f32 %v3838_v50, %v3840_v52  ;;  %v3810_v29 = vmax.f32 %v3794_v25, %v3796_v53  ;;  %v3798_v63 = vmax.f32 %v3782_v8, 0.0  ;;  %v3886_v13 = vrot.slane %v3838_v50, 4 }
 0x40a   : > { %v3891_v49 = vrot.slane %v3843_v17, 4  ;;  %v3811_v6 = vmax.f32 %v3809_v9, %v3797_v19  ;;  %v3895_v35 = vrot.slane %v3843_v17, 5  ;;  %v3899_v39 = vrot.slane %v3843_v17, 6 }
 0x40b   : > { %v3812_v41 = vmax.f32 %v3810_v29, %v3798_v63  ;;  %v3734_v7 = vpop.f32.mrb[12].mxu0  ;;  %v3942_v11 = vsel %vm3941_vm4, %v3939_v59, %v3885_v60  ;;  %v3892_v12 = vrot.slane %v3844_v20, 4  ;;  %v3896_v18 = vrot.slane %v3844_v20, 5 }
 0x40c   : > { %v3847_v14 = vrot.slane %v3811_v6, 1  ;;  %v3783_v16 = vadd.f32 %v10687_v57, %v3734_v7  ;;  %v3736_v43 = vpop.f32.mrb[13].mxu0  ;;  %v3945_v15 = vsel %vm3944_vm5, %v3942_v11, %v3891_v49  ;;  %v3853_v26 = vrot.slane %v3811_v6, 2 }
 0x40d   : > { %v3848_v23 = vrot.slane %v3812_v41, 1  ;;  %v3784_v42 = vadd.f32 %v10690_v48, %v3736_v43  ;;  %v3738_v2 = vpop.f32.mrb[14].mxu0  ;;  %v3948_v28 = vsel %vm3947_vm6, %v3945_v15, %v3895_v35  ;;  %v3854_v46 = vrot.slane %v3812_v41, 2 }
 0x40e   : > { %v3851_v32 = vmax.f32 %v3811_v6, %v3847_v14  ;;  %v3799_v33 = vmax.f32 %v3783_v16, 0.0  ;;  %v3785_v37 = vadd.f32 %v10687_v57, %v3738_v2  ;;  %v3740_v25 = vpop.f32.mrb[15].mxu0  ;;  %v10717_v34 = vsel %vm3950_vm7, %v3948_v28, %v3899_v39  ;;  %v9386_v2 = vld [vmem:[%s12222_s3 + $0x80] ss:$8 sps:$4 sm:$0xff]   ;;  %v9387_v28 = vld [vmem:[%s12222_s3 + $0x94] ss:$8 sps:$4 sm:$0xff]  }
 0x40f   : > { %v3852_v40 = vmax.f32 %v3812_v41, %v3848_v23  ;;  %v3800_v54 = vmax.f32 %v3784_v42, 0.0  ;;  %v3786_v24 = vadd.f32 %v10690_v48, %v3740_v25  ;;  %v3943_v55 = vsel %vm3941_vm4, %v3940_v30, %v3886_v13  ;;  %v9384_v42 = vld [vmem:[%s12222_s3 + $0x84] ss:$8 sps:$4 sm:$0xff]   ;;  %v9392_v25 = vld [vmem:[%s12222_s3 + $0xa0] ss:$8 sps:$4 sm:$0xff]  }
 0x410   : > { %v3857_v45 = vmax.f32 %v3851_v32, %v3853_v26  ;;  %v3813_v62 = vmax.f32 %v3797_v19, %v3799_v33  ;;  %v3801_v51 = vmax.f32 %v3785_v37, 0.0  ;;  %v3946_v4 = vsel %vm3944_vm5, %v3943_v55, %v3892_v12  ;;  %4213 = vmatprep.subr.bf16.mxu1 %v9384_v42  ;;  %v9389_v33 = vld [vmem:[%s12222_s3 + $0x90] ss:$8 sps:$4 sm:$0xff]   ;;  %v9390_v37 = vld [vmem:[%s12222_s3 + $0xa4] ss:$8 sps:$4 sm:$0xff]  }
 0x411   : > { %v3858_v0 = vmax.f32 %v3852_v40, %v3854_v46  ;;  %v3814_v61 = vmax.f32 %v3798_v63, %v3800_v54  ;;  %v3802_v1 = vmax.f32 %v3786_v24, 0.0  ;;  %v3900_v48 = vrot.slane %v3844_v20, 6  ;;  %4214 = vmatpush1.bf16.msra.mxu1 %v9386_v2  ;;  %v9395_v46 = vld [vmem:[%s12222_s3 + $0xb0] ss:$8 sps:$4 sm:$0xff]   ;;  %v9396_v54 = vld [vmem:[%s12222_s3 + $0xc4] ss:$8 sps:$4 sm:$0xff]  }
 0x412   : > { %v3905_v57 = vrot.slane %v3857_v45, 1  ;;  %v3815_v27 = vmax.f32 %v3813_v62, %v3801_v51  ;;  %v3953_v5 = vsel %vm3933_vm2, %v3851_v32, %v3857_v45  ;;  %v3949_v52 = vsel %vm3947_vm6, %v3946_v4, %v3896_v18  ;;  %4215 = vmatprep.subr.bf16.mxu1 %v9387_v28  ;;  %v9398_v51 = vld [vmem:[%s12222_s3 + $0xc0] ss:$8 sps:$4 sm:$0xff]  }
 0x413   : > { %v3906_v38 = vrot.slane %v3858_v0, 1  ;;  %v3816_v10 = vmax.f32 %v3814_v61, %v3802_v1  ;;  %v3954_v21 = vsel %vm3933_vm2, %v3852_v40, %v3858_v0  ;;  %v3909_v56 = vrot.slane %v3857_v45, 2  ;;  %v9393_v40 = vld [vmem:[%s12222_s3 + $0xb4] ss:$8 sps:$4 sm:$0xff]  }
 0x414   : > { %v3861_v58 = vrot.slane %v3815_v27, 1  ;;  %v3910_v36 = vrot.slane %v3858_v0, 2  ;;  %v3955_v50 = vsel %vm391_vm0, %v3953_v5, %v3905_v57  ;;  %v3867_v8 = vrot.slane %v3815_v27, 2  ;;  %v9399_v5 = vld [vmem:[%s12222_s3 + $0xd4] ss:$8 sps:$4 sm:$0xff]  }
 0x415   : > { %v3862_v47 = vrot.slane %v3816_v10, 1  ;;  %v3952_v59 = vsel %vm3950_vm7, %v3949_v52, %v3900_v48  ;;  %v3956_v17 = vsel %vm391_vm0, %v3954_v21, %v3906_v38  ;;  %v3868_v9 = vrot.slane %v3816_v10, 2  ;;  %4216 = vmatpush1.bf16.msra.mxu1 %v9389_v33  ;;  %v9401_v38 = vld [vmem:[%s12222_s3 + $0xd0] ss:$8 sps:$4 sm:$0xff]  }
 0x416   : > { %v3865_v53 = vmax.f32 %v3815_v27, %v3861_v58  ;;  %v3957_v20 = vsel %vm3938_vm3, %v3955_v50, %v3909_v56  ;;  %v3958_v35 = vsel %vm3938_vm3, %v3956_v17, %v3910_v36  ;;  %4217 = vmatprep.subr.bf16.mxu1 %v9390_v37  ;;  %v9405_v50 = vld [vmem:[%s12222_s3 + $0xf4] ss:$8 sps:$4 sm:$0xff]  }
 0x417   : > { %v3866_v60 = vmax.f32 %v3816_v10, %v3862_v47  ;;  %v9402_v10 = vld [vmem:[%s12222_s3 + $0xe4] ss:$8 sps:$4 sm:$0xff]   ;;  %v9404_v47 = vld [vmem:[%s12222_s3 + $0xe0] ss:$8 sps:$4 sm:$0xff]  }
 0x418   : > { %v3871_v19 = vmax.f32 %v3865_v53, %v3867_v8  ;;  %v3915_v29 = vrot.slane %v3865_v53, 4  ;;  %v9680_v53 = vmov 0.0   ;;  %v9407_v8 = vld [vmem:[%s12222_s3 + $0xf0] ss:$8 sps:$4 sm:$0xff]  }
 0x419   : > { %v3872_v63 = vmax.f32 %v3866_v60, %v3868_v9  ;;  %v3916_v30 = vrot.slane %v3866_v60, 4  ;;  %4218 = vmatpush1.bf16.msra.mxu1 %v9392_v25  ;;  %8723 = vmatprep.subr.bf16.mxu0 %v9680_v53  ;;  %v5317_v28 = vrot.slane %v9680_v53, 2 }
 0x41a   : > { %v3921_v49 = vrot.slane %v3871_v19, 4  ;;  %v3925_v13 = vrot.slane %v3871_v19, 5  ;;  %v3959_v6 = vsel %vm3941_vm4, %v3957_v20, %v3915_v29  ;;  %v3929_v11 = vrot.slane %v3871_v19, 6  ;;  %4219 = vmatprep.subr.bf16.mxu1 %v9393_v40 }
 0x41b   : > { %v3922_v41 = vrot.slane %v3872_v63, 4  ;;  %v3926_v7 = vrot.slane %v3872_v63, 5  ;;  %v3960_v39 = vsel %vm3941_vm4, %v3958_v35, %v3916_v30  ;;  %v3930_v16 = vrot.slane %v3872_v63, 6 }
 0x41c   : > { %v3961_v12 = vsel %vm3944_vm5, %v3959_v6, %v3921_v49 }
 0x41d   : > { %v3963_v14 = vsel %vm3947_vm6, %v3961_v12, %v3925_v13  ;;  %v3962_v43 = vsel %vm3944_vm5, %v3960_v39, %v3922_v41  ;;  %4220 = vmatpush1.bf16.msra.mxu1 %v9395_v46 }
 0x41e   : > { %v10736_v15 = vsel %vm3950_vm7, %v3963_v14, %v3929_v11  ;;  %v3964_v18 = vsel %vm3947_vm6, %v3962_v43, %v3926_v7  ;;  %4221 = vmatprep.subr.bf16.mxu1 %v9396_v54 }
 0x41f   : > { %v9239_v26 = vpack.i.bf16 %v10736_v15, %v10717_v34  ;;  %v3966_v23 = vsel %vm3950_vm7, %v3964_v18, %v3930_v16 }
 0x420   : > { %v9229_v32 = vpack.i.bf16 %v3966_v23, %v3952_v59 }
 0x421   : > { %9240 = vrot.lane.b32.xlu1 %v9239_v26, %s9678_s28  ;;  %4222 = vmatpush1.bf16.msra.mxu1 %v9398_v51 }
 0x422   : > { %9230 = vrot.lane.b32.xlu0 %v9229_v32, %s9678_s28  ;;  %4223 = vmatprep.subr.bf16.mxu1 %v9399_v5 }
 0x425   : > { %9245 = vrot.lane.b32.xlu1 %v9239_v26, %s9679_s21  ;;  %4224 = vmatpush1.bf16.msra.mxu1 %v9401_v38 }
 0x426   : > { %9235 = vrot.lane.b32.xlu0 %v9229_v32, %s9679_s21  ;;  %4225 = vmatprep.subr.bf16.mxu1 %v9402_v10 }
 0x429   : > { %4226 = vmatpush1.bf16.msra.mxu1 %v9404_v47  ;;  %v9408_v47 = vld [vmem:[%s12222_s3] ss:$8 sps:$4 sm:$0xff]  }
 0x42a   : > { %4227 = vmatprep.subr.bf16.mxu1 %v9405_v50 }
 0x42d   : > { %4228 = vmatpush1.bf16.msra.mxu1 %v9407_v8 }
 0x493   : > { %v9241_v17 = vpop.permute.xlu1 %9240 }
 0x494   : > { %v9231_v24 = vpop.permute.xlu0 %9230  ;;  %v9243_v9 = vunpack.i.h.bf16 %v9241_v17  ;;  %v9242_v19 = vunpack.i.l.bf16 %v9241_v17 }
 0x495   : > { %v9233_v45 = vunpack.i.h.bf16 %v9231_v24  ;;  %v9232_v62 = vunpack.i.l.bf16 %v9231_v24 }
 0x496   : > { %v3976_v30 = vmax.f32 %v10736_v15, %v9243_v9  ;;  %v3975_v20 = vmax.f32 %v10717_v34, %v9242_v19 }
 0x497   : > { %v3994_v55 = vmax.f32 %v10736_v15, %v9233_v45  ;;  %v4004_v0 = vmax.f32 %v3966_v23, %v9233_v45  ;;  %v3993_v1 = vmax.f32 %v10717_v34, %v9232_v62  ;;  %v4003_v4 = vmax.f32 %v3952_v59, %v9232_v62  ;;  %v9410_v59 = vld [vmem:[%s12222_s3 + $0x4] ss:$8 sps:$4 sm:$0xff]   ;;  %v9246_v60 = vpop.permute.xlu1 %9245 }
 0x498   : > { %v9236_v61 = vpop.permute.xlu0 %9235  ;;  %4336 = vmatprep.subr.bf16.mxu1 %v9410_v59  ;;  %v9248_v29 = vunpack.i.h.bf16 %v9246_v60  ;;  %v9247_v63 = vunpack.i.l.bf16 %v9246_v60  ;;  %v9413_v60 = vld [vmem:[%s12222_s3 + $0x14] ss:$8 sps:$4 sm:$0xff]  }
 0x499   : > { %v9238_v57 = vunpack.i.h.bf16 %v9236_v61  ;;  %v9237_v27 = vunpack.i.l.bf16 %v9236_v61 }
 0x49a   : > { %v3983_v49 = vmax.f32 %v3975_v20, %v9247_v63  ;;  %v3984_v13 = vmax.f32 %v3976_v30, %v9248_v29 }
 0x49b   : > { %v4001_v21 = vmax.f32 %v3993_v1, %v9237_v27  ;;  %v4002_v58 = vmax.f32 %v3994_v55, %v9238_v57  ;;  %v4005_v48 = vmax.f32 %v4003_v4, %v9237_v27  ;;  %v4006_v52 = vmax.f32 %v4004_v0, %v9238_v57 }
 0x49c   : > { %v4024_v12 = vsel %vm4023_vm8, %v3975_v20, %v3983_v49  ;;  %v4025_v14 = vsel %vm4023_vm8, %v3976_v30, %v3984_v13  ;;  %v5186_v20 = vrot.slane %v9677_v3, 1 }
 0x49d   : > { %v9254_v56 = vpack.i.bf16 %v4006_v52, %v4005_v48  ;;  %v9249_v36 = vpack.i.bf16 %v4002_v58, %v4001_v21 }
 0x49f   : > { %9255 = vrot.lane.b32.xlu1 %v9254_v56, %s9679_s21  ;;  %9250 = vrot.lane.b32.xlu0 %v9249_v36, %s9678_s28  ;;  %s9619_s28 = scalar_lea.vmem %s9618_s24, 32 }
 0x4a0   : > { %p9621_p1 = scmp.lt.s32.totalorder %s9619_s28, %s9613_s13 }
 0x4a2   : > { %p9622_p2 = por %p9621_p1, %p9620_p0 }
 0x4a4   : > { %p9623_p3 = pnand %p9622_p2, %p9616_p13 }
 0x511   : > { %v9256_v6 = vpop.permute.xlu1 %9255  ;;  %v9251_v35 = vpop.permute.xlu0 %9250 }
 0x512   : > { %v9258_v41 = vunpack.i.h.bf16 %v9256_v6  ;;  %v9257_v7 = vunpack.i.l.bf16 %v9256_v6  ;;  %v9253_v39 = vunpack.i.h.bf16 %v9251_v35  ;;  %v9252_v11 = vunpack.i.l.bf16 %v9251_v35 }
 0x514   : > { %v4028_v16 = vsel %vm4026_vm9, %v4025_v14, %v9253_v39  ;;  %v4027_v43 = vsel %vm4026_vm9, %v4024_v12, %v9252_v11  ;;  %v9416_v39 = vld [vmem:[%s12222_s3 + $0x24] ss:$8 sps:$4 sm:$0xff]   ;;  %v9414_v14 = vld [vmem:[%s12222_s3 + $0x20] ss:$8 sps:$4 sm:$0xff]  }
 0x515   : > { %v4031_v15 = vsel %vm4029_vm10, %v4028_v16, %v9258_v41  ;;  %v4030_v18 = vsel %vm4029_vm10, %v4027_v43, %v9257_v7  ;;  %v9411_v7 = vld [vmem:[%s12222_s3 + $0x10] ss:$8 sps:$4 sm:$0xff]   ;;  %v9419_v16 = vld [vmem:[%s12222_s3 + $0x34] ss:$8 sps:$4 sm:$0xff]  }
 0x516   : > { %v4035_v34 = vrot.slane %v4031_v15, 3  ;;  %v4034_v26 = vrot.slane %v4030_v18, 3  ;;  %v9417_v43 = vld [vmem:[%s12222_s3 + $0x30] ss:$8 sps:$4 sm:$0xff]   ;;  %v9422_v15 = vld [vmem:[%s12222_s3 + $0x44] ss:$8 sps:$4 sm:$0xff]  }
 0x517   : > { %v9420_v18 = vld [vmem:[%s12222_s3 + $0x40] ss:$8 sps:$4 sm:$0xff]  }
 0x518   : > { %v4041_v23 = vsel %vm3944_vm5, %v4035_v34, 0.0  ;;  %v4036_v42 = vsel %vm3944_vm5, %v4034_v26, %v4035_v34  ;;  %v4040_v2 = vsel %vm3944_vm5, 0.0, %v4034_v26  ;;  %v9425_v34 = vld [vmem:[%s12222_s3 + $0x54] ss:$8 sps:$4 sm:$0xff]   ;;  %v4044_v26 = vadd.s32 8, %v10675_v22 }
 0x519   : > { %v4396_v32 = vrot.slane %v4041_v23, 2  ;;  %v4550_v33 = vrot.slane %v4041_v23, 4  ;;  %v4859_v37 = vrot.slane %v4041_v23, 6  ;;  %v4393_v25 = vrot.slane %v4040_v2, 2 }
 0x51a   : > { %v4547_v40 = vrot.slane %v4040_v2, 4  ;;  %v4856_v46 = vrot.slane %v4040_v2, 6  ;;  %v10810_v54 = vpack.c.bf16 %v4036_v42, %v4040_v2  ;;  %v4101_v24 = vpack.c.bf16 %v4041_v23, %v4041_v23 }
 0x51b   : > { %v4394_v45 = vrot.slane %v4036_v42, 2  ;;  %v4548_v62 = vrot.slane %v4036_v42, 4  ;;  %v4857_v51 = vrot.slane %v4036_v42, 6  ;;  %v10812_v55 = vpack.c.bf16 %v4041_v23, %v4036_v42  ;;  %v9423_v23 = vld [vmem:[%s12222_s3 + $0x50] ss:$8 sps:$4 sm:$0xff]  }
 0x51c   : > { %v4121_v0 = vshrl.u32 %v10810_v54, 16  ;;  %v4123_v61 = vshll.u32 %v10810_v54, 16  ;;  %v4128_v1 = vshll.u32 %v4101_v24, 16  ;;  %v4722_v4 = vshrl.u32 %v4101_v24, 16  ;;  %v9428_v42 = vld [vmem:[%s12222_s3 + $0x64] ss:$8 sps:$4 sm:$0xff]  }
 0x51d   : > { %v10817_v57 = vsel %vm3947_vm6, %v4393_v25, %v4394_v45  ;;  %v10820_v27 = vsel %vm3947_vm6, %v4394_v45, %v4396_v32  ;;  %v10823_v5 = vsel %vm3941_vm4, %v4547_v40, %v4548_v62  ;;  %v10826_v38 = vsel %vm3941_vm4, %v4548_v62, %v4550_v33  ;;  %v9431_v33 = vld [vmem:[%s12222_s3 + $0x74] ss:$8 sps:$4 sm:$0xff]   ;;  %v9429_v40 = vld [vmem:[%s12222_s3 + $0x70] ss:$8 sps:$4 sm:$0xff]   ;;  %v9432_v45 = vld [vmem:[%s12222_s3 + $0x100] ss:$8 sps:$4 sm:$0xff]  }
 0x51e   : > { %v4125_v10 = vrot.slane %v4123_v61, 1  ;;  %v8241_v21 = vpack.c.bf16 %v10820_v27, %v10817_v57  ;;  %v8276_v58 = vpack.c.bf16 %v10826_v38, %v10823_v5  ;;  %v4719_v48 = vrot.slane %v4121_v0, 2  ;;  %v9437_v62 = vld [vmem:[%s12222_s3 + $0x114] ss:$8 sps:$4 sm:$0xff]   ;;  %v9462_v57 = vld [vmem:[%s12222_s3 + $0x1a0] ss:$8 sps:$4 sm:$0xff]  }
 0x51f   : > { %v4720_v52 = vrot.slane %v4123_v61, 3  ;;  %v4724_v56 = vrot.slane %v4722_v4, 2  ;;  %v4725_v36 = vrot.slane %v4128_v1, 3  ;;  %v4130_v8 = vrot.slane %v4128_v1, 1  ;;  %v9438_v61 = vld [vmem:[%s12222_s3 + $0x120] ss:$8 sps:$4 sm:$0xff]  }
 0x520   : > { %v4126_v50 = vor.u32 %v4125_v10, %v4121_v0  ;;  %v10836_v59 = vsel %vm391_vm0, %v4856_v46, %v4857_v51  ;;  %v10839_v17 = vsel %vm391_vm0, %v4857_v51, %v4859_v37  ;;  %v5179_v63 = vshll.u32 %v10812_v55, 16  ;;  %v9434_v46 = vld [vmem:[%s12222_s3 + $0x104] ss:$8 sps:$4 sm:$0xff]   ;;  %v9435_v51 = vld [vmem:[%s12222_s3 + $0x110] ss:$8 sps:$4 sm:$0xff]  }
 0x521   : > { %v4721_v9 = vor.u32 %v4720_v52, %v4719_v48  ;;  %v4726_v19 = vor.u32 %v4725_v36, %v4724_v56  ;;  %v8343_v29 = vpack.c.bf16 %v10839_v17, %v10836_v59  ;;  %v10850_v49 = vsel %vm3947_vm6, %v4396_v32, %v5317_v28  ;;  %v9426_v32 = vld [vmem:[%s12222_s3 + $0x60] ss:$8 sps:$4 sm:$0xff]   ;;  %v9440_v0 = vld [vmem:[%s12222_s3 + $0x124] ss:$8 sps:$4 sm:$0xff]   ;;  %v9441_v1 = vld [vmem:[%s12222_s3 + $0x130] ss:$8 sps:$4 sm:$0xff]  }
 0x522   : > { %v4131_v30 = vsel %vm4119_vm11, %v4126_v50, %v4130_v8  ;;  %v5177_v6 = vshrl.u32 %v10812_v55, 16  ;;  %v5181_v35 = vrot.slane %v5179_v63, 1  ;;  %v8445_v41 = vpack.c.bf16 %v10850_v49, %v10820_v27  ;;  %v9446_v4 = vld [vmem:[%s12222_s3 + $0x144] ss:$8 sps:$4 sm:$0xff]   ;;  %v9444_v10 = vld [vmem:[%s12222_s3 + $0x140] ss:$8 sps:$4 sm:$0xff]  }
 0x523   : > { %4246 = vmatmul.mubr.bf16.vlgmr.msra.gmra.mrb[0].mxu1 %v4131_v30  ;;  %v10853_v13 = vsel %vm4718_vm12, %v4721_v9, %v4726_v19  ;;  %v4049_v2 = vand.u32 3, %v10675_v22  ;;  %v4056_v28 = vand.u32 3, %v4044_v26  ;;  %v9449_v48 = vld [vmem:[%s12222_s3 + $0x154] ss:$8 sps:$4 sm:$0xff]   ;;  %v9447_v52 = vld [vmem:[%s12222_s3 + $0x150] ss:$8 sps:$4 sm:$0xff]  }
 0x524   : > { %4337 = vmatpush1.bf16.msra.mxu1 %v9408_v47  ;;  %4368 = vmatprep.mubr.bf16.mxu1 %v9677_v3  ;;  %v5182_v11 = vor.u32 %v5181_v35, %v5177_v6  ;;  %v9452_v56 = vld [vmem:[%s12222_s3 + $0x164] ss:$8 sps:$4 sm:$0xff]   ;;  %v9450_v36 = vld [vmem:[%s12222_s3 + $0x160] ss:$8 sps:$4 sm:$0xff]   ;;  %v9455_v47 = vld [vmem:[%s12222_s3 + $0x174] ss:$8 sps:$4 sm:$0xff]  }
 0x525   : > { %4338 = vmatprep.subr.bf16.mxu1 %v9413_v60  ;;  %v4069_v37 = vadd.s32 4294967295, %v4049_v2  ;;  %v4070_v25 = vadd.s32 4294967295, %v4056_v28  ;;  %v4379_v50 = vadd.s32 1, %v4049_v2  ;;  %v4380_v8 = vadd.s32 1, %v4056_v28  ;;  %v9453_v60 = vld [vmem:[%s12222_s3 + $0x170] ss:$8 sps:$4 sm:$0xff]  }
 0x526   : > { %v10866_v12 = vsel %vm4119_vm11, %v5182_v11, %v5186_v20  ;;  %v9458_v9 = vld [vmem:[%s12222_s3 + $0x184] ss:$8 sps:$4 sm:$0xff]   ;;  %v9456_v63 = vld [vmem:[%s12222_s3 + $0x180] ss:$8 sps:$4 sm:$0xff]   ;;  %v9461_v30 = vld [vmem:[%s12222_s3 + $0x194] ss:$8 sps:$4 sm:$0xff]  }
 0x527   : > { %vm4071_vm13 = vcmp.ge.s32.totalorder %v4069_v37, 0  ;;  %vm4072_vm14 = vcmp.ge.s32.totalorder %v4070_v25, 0  ;;  %vm4383_vm1 = vcmp.le.s32.totalorder %v4379_v50, 3  ;;  %vm4384_vm5 = vcmp.le.s32.totalorder %v4380_v8, 3  ;;  %v9459_v20 = vld [vmem:[%s12222_s3 + $0x190] ss:$8 sps:$4 sm:$0xff]  }
 0x528   : > { %4339 = vmatpush1.bf16.msra.mxu1 %v9411_v7  ;;  %vm10906_vm15 = vmpackc.low %vm4072_vm14, %vm4071_vm13  ;;  %v9464_v6 = vld [vmem:[%s12222_s3 + $0x1a4] ss:$8 sps:$4 sm:$0xff]   ;;  %v9465_v35 = vld [vmem:[%s12222_s3 + $0x1b0] ss:$8 sps:$4 sm:$0xff]  }
 0x529   : > { %4340 = vmatprep.subr.bf16.mxu1 %v9416_v39  ;;  %vm10962_vm6 = vmpackc.low %vm4384_vm5, %vm4383_vm1  ;;  %v9470_v7 = vld [vmem:[%s12222_s3 + $0x1c4] ss:$8 sps:$4 sm:$0xff]   ;;  %v9468_v39 = vld [vmem:[%s12222_s3 + $0x1c0] ss:$8 sps:$4 sm:$0xff]  }
 0x52a   : > { %v9473_v11 = vld [vmem:[%s12222_s3 + $0x1d4] ss:$8 sps:$4 sm:$0xff]   ;;  %v9480_v26 = vld [vmem:[%s12222_s3 + $0x200] ss:$8 sps:$4 sm:$0xff]   ;;  %v9488_v2 = vld [vmem:[%s12222_s3 + $0x224] ss:$8 sps:$4 sm:$0xff]  }
 0x52b   : > { %v9486_v5 = vld [vmem:[%s12222_s3 + $0x220] ss:$8 sps:$4 sm:$0xff]   ;;  %v9491_v38 = vld [vmem:[%s12222_s3 + $0x234] ss:$8 sps:$4 sm:$0xff]   ;;  %v9494_v28 = vld [vmem:[%s12222_s3 + $0x244] ss:$8 sps:$4 sm:$0xff]  }
 0x52c   : > { %4341 = vmatpush1.bf16.msra.mxu1 %v9414_v14  ;;  %v9471_v14 = vld [vmem:[%s12222_s3 + $0x1d0] ss:$8 sps:$4 sm:$0xff]   ;;  %v9500_v25 = vld [vmem:[%s12222_s3 + $0x264] ss:$8 sps:$4 sm:$0xff]   ;;  %v9527_v50 = vld [vmem:[%s12222_s3 + $0x2f4] ss:$8 sps:$4 sm:$0xff]  }
 0x52d   : > { %4342 = vmatprep.subr.bf16.mxu1 %v9419_v16  ;;  %v9476_v16 = vld [vmem:[%s12222_s3 + $0x1e4] ss:$8 sps:$4 sm:$0xff]   ;;  %v9495_v37 = vld [vmem:[%s12222_s3 + $0x250] ss:$8 sps:$4 sm:$0xff]   ;;  %v9534_v59 = vld [vmem:[%s12222_s3 + $0x320] ss:$8 sps:$4 sm:$0xff]  }
 0x52e   : > { %v9525_v8 = vld [vmem:[%s12222_s3 + $0x2f0] ss:$8 sps:$4 sm:$0xff]   ;;  %v9539_v17 = vld [vmem:[%s12222_s3 + $0x334] ss:$8 sps:$4 sm:$0xff]   ;;  %v5595_v27 = vld [vmem:[%s12224_s5 + $0x60] sm:$0xff] }
 0x52f   : > { %v9561_v24 = vld [vmem:[%s12222_s3 + $0x3b0] ss:$8 sps:$4 sm:$0xff]   ;;  %v5603_v19 = vld [vmem:[%s12224_s5 + $0xa0] sm:$0xff] }
 0x530   : > { %4343 = vmatpush1.bf16.msra.mxu1 %v9417_v43  ;;  %v9474_v43 = vld [vmem:[%s12222_s3 + $0x1e0] ss:$8 sps:$4 sm:$0xff]  }
 0x531   : > { %4344 = vmatprep.subr.bf16.mxu1 %v9422_v15  ;;  %v9479_v15 = vld [vmem:[%s12222_s3 + $0x1f4] ss:$8 sps:$4 sm:$0xff]  }
 0x534   : > { %4345 = vmatpush1.bf16.msra.mxu1 %v9420_v18  ;;  %v9477_v18 = vld [vmem:[%s12222_s3 + $0x1f0] ss:$8 sps:$4 sm:$0xff]  }
 0x535   : > { %4346 = vmatprep.subr.bf16.mxu1 %v9425_v34  ;;  %v9482_v34 = vld [vmem:[%s12222_s3 + $0x204] ss:$8 sps:$4 sm:$0xff]  }
 0x538   : > { %4347 = vmatpush1.bf16.msra.mxu1 %v9423_v23  ;;  %v9485_v23 = vld [vmem:[%s12222_s3 + $0x214] ss:$8 sps:$4 sm:$0xff]  }
 0x539   : > { %4348 = vmatprep.subr.bf16.mxu1 %v9428_v42  ;;  %v9483_v42 = vld [vmem:[%s12222_s3 + $0x210] ss:$8 sps:$4 sm:$0xff]  }
 0x53c   : > { %4349 = vmatpush1.bf16.msra.mxu1 %v9426_v32  ;;  %v9492_v32 = vld [vmem:[%s12222_s3 + $0x240] ss:$8 sps:$4 sm:$0xff]  }
 0x53d   : > { %4350 = vmatprep.subr.bf16.mxu1 %v9431_v33  ;;  %v9497_v33 = vld [vmem:[%s12222_s3 + $0x254] ss:$8 sps:$4 sm:$0xff]  }
 0x540   : > { %4351 = vmatpush1.bf16.msra.mxu1 %v9429_v40  ;;  %v9498_v40 = vld [vmem:[%s12222_s3 + $0x260] ss:$8 sps:$4 sm:$0xff]  }
 0x541   : > { %4500 = vmatprep.subr.bf16.mxu1 %v9434_v46  ;;  %v9503_v46 = vld [vmem:[%s12222_s3 + $0x274] ss:$8 sps:$4 sm:$0xff]  }
 0x543   : > { %8207 = vmatmul.mubr.msk.bf16.vlgmr.msra.gmra.mrb[0].mxu1 %vm10906_vm15, %v10810_v54  ;;  %v9443_v54 = vld [vmem:[%s12222_s3 + $0x134] ss:$8 sps:$4 sm:$0xff]  }
 0x544   : > { %4501 = vmatpush1.bf16.msra.mxu1 %v9432_v45  ;;  %4532 = vmatprep.mubr.bf16.mxu1 %v9677_v3  ;;  %v9501_v45 = vld [vmem:[%s12222_s3 + $0x270] ss:$8 sps:$4 sm:$0xff]  }
 0x545   : > { %4502 = vmatprep.subr.bf16.mxu1 %v9437_v62  ;;  %v9506_v62 = vld [vmem:[%s12222_s3 + $0x284] ss:$8 sps:$4 sm:$0xff]  }
 0x548   : > { %4503 = vmatpush1.bf16.msra.mxu1 %v9435_v51  ;;  %v9504_v51 = vld [vmem:[%s12222_s3 + $0x280] ss:$8 sps:$4 sm:$0xff]  }
 0x549   : > { %4504 = vmatprep.subr.bf16.mxu1 %v9440_v0  ;;  %v9509_v0 = vld [vmem:[%s12222_s3 + $0x294] ss:$8 sps:$4 sm:$0xff]  }
 0x54c   : > { %4505 = vmatpush1.bf16.msra.mxu1 %v9438_v61  ;;  %v9507_v61 = vld [vmem:[%s12222_s3 + $0x290] ss:$8 sps:$4 sm:$0xff]  }
 0x54d   : > { %4506 = vmatprep.subr.bf16.mxu1 %v9443_v54  ;;  %v9512_v54 = vld [vmem:[%s12222_s3 + $0x2a4] ss:$8 sps:$4 sm:$0xff]  }
 0x550   : > { %4507 = vmatpush1.bf16.msra.mxu1 %v9441_v1  ;;  %v9510_v1 = vld [vmem:[%s12222_s3 + $0x2a0] ss:$8 sps:$4 sm:$0xff]  }
 0x551   : > { %4508 = vmatprep.subr.bf16.mxu1 %v9446_v4  ;;  %v9513_v4 = vld [vmem:[%s12222_s3 + $0x2b0] ss:$8 sps:$4 sm:$0xff]  }
 0x554   : > { %4509 = vmatpush1.bf16.msra.mxu1 %v9444_v10  ;;  %v9518_v10 = vld [vmem:[%s12222_s3 + $0x2c4] ss:$8 sps:$4 sm:$0xff]  }
 0x555   : > { %4510 = vmatprep.subr.bf16.mxu1 %v9449_v48  ;;  %v9516_v48 = vld [vmem:[%s12222_s3 + $0x2c0] ss:$8 sps:$4 sm:$0xff]  }
 0x558   : > { %4511 = vmatpush1.bf16.msra.mxu1 %v9447_v52  ;;  %v9521_v52 = vld [vmem:[%s12222_s3 + $0x2d4] ss:$8 sps:$4 sm:$0xff]  }
 0x559   : > { %4512 = vmatprep.subr.bf16.mxu1 %v9452_v56  ;;  %v9519_v56 = vld [vmem:[%s12222_s3 + $0x2d0] ss:$8 sps:$4 sm:$0xff]  }
 0x55c   : > { %4513 = vmatpush1.bf16.msra.mxu1 %v9450_v36  ;;  %v9524_v36 = vld [vmem:[%s12222_s3 + $0x2e4] ss:$8 sps:$4 sm:$0xff]  }
 0x55d   : > { %4514 = vmatprep.subr.bf16.mxu1 %v9455_v47  ;;  %v9522_v47 = vld [vmem:[%s12222_s3 + $0x2e0] ss:$8 sps:$4 sm:$0xff]  }
 0x560   : > { %4515 = vmatpush1.bf16.msra.mxu1 %v9453_v60  ;;  %v9530_v60 = vld [vmem:[%s12222_s3 + $0x304] ss:$8 sps:$4 sm:$0xff]  }
 0x561   : > { %4654 = vmatprep.subr.bf16.mxu1 %v9458_v9  ;;  %v9528_v9 = vld [vmem:[%s12222_s3 + $0x300] ss:$8 sps:$4 sm:$0xff]  }
 0x563   : > { %8242 = vmatmul.mubr.msk.bf16.vlgmr.msra.gmra.mrb[0].mxu1 %vm10962_vm6, %v8241_v21  ;;  %v9467_v21 = vld [vmem:[%s12222_s3 + $0x1b4] ss:$8 sps:$4 sm:$0xff]  }
 0x564   : > { %4655 = vmatpush1.bf16.msra.mxu1 %v9456_v63  ;;  %4686 = vmatprep.mubr.bf16.mxu1 %v9677_v3  ;;  %v9533_v63 = vld [vmem:[%s12222_s3 + $0x314] ss:$8 sps:$4 sm:$0xff]  }
 0x565   : > { %4656 = vmatprep.subr.bf16.mxu1 %v9461_v30  ;;  %v9531_v30 = vld [vmem:[%s12222_s3 + $0x310] ss:$8 sps:$4 sm:$0xff]  }
 0x568   : > { %4657 = vmatpush1.bf16.msra.mxu1 %v9459_v20  ;;  %v9536_v20 = vld [vmem:[%s12222_s3 + $0x324] ss:$8 sps:$4 sm:$0xff]  }
 0x569   : > { %4658 = vmatprep.subr.bf16.mxu1 %v9464_v6  ;;  %v9542_v6 = vld [vmem:[%s12222_s3 + $0x344] ss:$8 sps:$4 sm:$0xff]  }
 0x56c   : > { %4659 = vmatpush1.bf16.msra.mxu1 %v9462_v57  ;;  %v9540_v57 = vld [vmem:[%s12222_s3 + $0x340] ss:$8 sps:$4 sm:$0xff]  }
 0x56d   : > { %4660 = vmatprep.subr.bf16.mxu1 %v9467_v21  ;;  %v9545_v21 = vld [vmem:[%s12222_s3 + $0x354] ss:$8 sps:$4 sm:$0xff]  }
 0x570   : > { %4661 = vmatpush1.bf16.msra.mxu1 %v9465_v35  ;;  %v9543_v35 = vld [vmem:[%s12222_s3 + $0x350] ss:$8 sps:$4 sm:$0xff]  }
 0x571   : > { %4662 = vmatprep.subr.bf16.mxu1 %v9470_v7  ;;  %v9548_v7 = vld [vmem:[%s12222_s3 + $0x364] ss:$8 sps:$4 sm:$0xff]  }
 0x574   : > { %4663 = vmatpush1.bf16.msra.mxu1 %v9468_v39  ;;  %v9546_v39 = vld [vmem:[%s12222_s3 + $0x360] ss:$8 sps:$4 sm:$0xff]  }
 0x575   : > { %4664 = vmatprep.subr.bf16.mxu1 %v9473_v11  ;;  %v9551_v11 = vld [vmem:[%s12222_s3 + $0x374] ss:$8 sps:$4 sm:$0xff]  }
 0x578   : > { %4665 = vmatpush1.bf16.msra.mxu1 %v9471_v14  ;;  %v9549_v14 = vld [vmem:[%s12222_s3 + $0x370] ss:$8 sps:$4 sm:$0xff]  }
 0x579   : > { %4666 = vmatprep.subr.bf16.mxu1 %v9476_v16  ;;  %v9554_v16 = vld [vmem:[%s12222_s3 + $0x384] ss:$8 sps:$4 sm:$0xff]  }
 0x57c   : > { %4667 = vmatpush1.bf16.msra.mxu1 %v9474_v43  ;;  %v9552_v43 = vld [vmem:[%s12222_s3 + $0x380] ss:$8 sps:$4 sm:$0xff]  }
 0x57d   : > { %4668 = vmatprep.subr.bf16.mxu1 %v9479_v15  ;;  %v9557_v15 = vld [vmem:[%s12222_s3 + $0x394] ss:$8 sps:$4 sm:$0xff]  }
 0x580   : > { %4669 = vmatpush1.bf16.msra.mxu1 %v9477_v18  ;;  %v9555_v18 = vld [vmem:[%s12222_s3 + $0x390] ss:$8 sps:$4 sm:$0xff]  }
 0x581   : > { %4809 = vmatprep.subr.bf16.mxu1 %v9482_v34  ;;  %v9560_v34 = vld [vmem:[%s12222_s3 + $0x3a4] ss:$8 sps:$4 sm:$0xff]  }
 0x583   : > { %8277 = vmatmul.mubr.msk.bf16.vlgmr.msra.gmra.mrb[0].mxu1 %vm10906_vm15, %v8276_v58  ;;  %v9489_v58 = vld [vmem:[%s12222_s3 + $0x230] ss:$8 sps:$4 sm:$0xff]  }
 0x584   : > { %4810 = vmatpush1.bf16.msra.mxu1 %v9480_v26  ;;  %4841 = vmatprep.mubr.bf16.mxu1 %v9677_v3  ;;  %v9558_v26 = vld [vmem:[%s12222_s3 + $0x3a0] ss:$8 sps:$4 sm:$0xff]  }
 0x585   : > { %4811 = vmatprep.subr.bf16.mxu1 %v9485_v23  ;;  %v9566_v23 = vld [vmem:[%s12222_s3 + $0x3c4] ss:$8 sps:$4 sm:$0xff]  }
 0x588   : > { %4812 = vmatpush1.bf16.msra.mxu1 %v9483_v42  ;;  %v9564_v42 = vld [vmem:[%s12222_s3 + $0x3c0] ss:$8 sps:$4 sm:$0xff]  }
 0x589   : > { %4813 = vmatprep.subr.bf16.mxu1 %v9488_v2  ;;  %v9569_v2 = vld [vmem:[%s12222_s3 + $0x3d4] ss:$8 sps:$4 sm:$0xff]  }
 0x58c   : > { %4814 = vmatpush1.bf16.msra.mxu1 %v9486_v5  ;;  %v9567_v5 = vld [vmem:[%s12222_s3 + $0x3d0] ss:$8 sps:$4 sm:$0xff]  }
 0x58d   : > { %4815 = vmatprep.subr.bf16.mxu1 %v9491_v38  ;;  %v9572_v38 = vld [vmem:[%s12222_s3 + $0x3e4] ss:$8 sps:$4 sm:$0xff]  }
 0x590   : > { %4816 = vmatpush1.bf16.msra.mxu1 %v9489_v58  ;;  %v9570_v58 = vld [vmem:[%s12222_s3 + $0x3e0] ss:$8 sps:$4 sm:$0xff]  }
 0x591   : > { %4817 = vmatprep.subr.bf16.mxu1 %v9494_v28  ;;  %v9575_v28 = vld [vmem:[%s12222_s3 + $0x3f4] ss:$8 sps:$4 sm:$0xff]  }
 0x594   : > { %4818 = vmatpush1.bf16.msra.mxu1 %v9492_v32  ;;  %v9573_v32 = vld [vmem:[%s12222_s3 + $0x3f0] ss:$8 sps:$4 sm:$0xff]  }
 0x595   : > { %4819 = vmatprep.subr.bf16.mxu1 %v9497_v33  ;;  %v9578_v33 = vld [vmem:[%s12222_s3 + $0x404] ss:$8 sps:$4 sm:$0xff]  }
 0x598   : > { %4820 = vmatpush1.bf16.msra.mxu1 %v9495_v37  ;;  %v9576_v37 = vld [vmem:[%s12222_s3 + $0x400] ss:$8 sps:$4 sm:$0xff]  }
 0x599   : > { %4821 = vmatprep.subr.bf16.mxu1 %v9500_v25  ;;  %v9581_v25 = vld [vmem:[%s12222_s3 + $0x414] ss:$8 sps:$4 sm:$0xff]  }
 0x59c   : > { %4822 = vmatpush1.bf16.msra.mxu1 %v9498_v40  ;;  %v9579_v40 = vld [vmem:[%s12222_s3 + $0x410] ss:$8 sps:$4 sm:$0xff]  }
 0x59d   : > { %4823 = vmatprep.subr.bf16.mxu1 %v9503_v46  ;;  %v9584_v46 = vld [vmem:[%s12222_s3 + $0x424] ss:$8 sps:$4 sm:$0xff]  }
 0x5a0   : > { %4824 = vmatpush1.bf16.msra.mxu1 %v9501_v45  ;;  %v9582_v45 = vld [vmem:[%s12222_s3 + $0x420] ss:$8 sps:$4 sm:$0xff]  }
 0x5a1   : > { %4963 = vmatprep.subr.bf16.mxu1 %v9506_v62  ;;  %v9590_v62 = vld [vmem:[%s12222_s3 + $0x444] ss:$8 sps:$4 sm:$0xff]  }
 0x5a3   : > { %4842 = vmatmul.mubr.bf16.vlgmr.msra.gmra.mrb[0].mxu1 %v10853_v13  ;;  %v9515_v13 = vld [vmem:[%s12222_s3 + $0x2b4] ss:$8 sps:$4 sm:$0xff]  }
 0x5a4   : > { %4964 = vmatpush1.bf16.msra.mxu1 %v9504_v51  ;;  %4995 = vmatprep.mubr.bf16.mxu1 %v9677_v3  ;;  %v9588_v51 = vld [vmem:[%s12222_s3 + $0x440] ss:$8 sps:$4 sm:$0xff]  }
 0x5a5   : > { %4965 = vmatprep.subr.bf16.mxu1 %v9509_v0  ;;  %v9593_v0 = vld [vmem:[%s12222_s3 + $0x454] ss:$8 sps:$4 sm:$0xff]  }
 0x5a8   : > { %4966 = vmatpush1.bf16.msra.mxu1 %v9507_v61  ;;  %v9591_v61 = vld [vmem:[%s12222_s3 + $0x450] ss:$8 sps:$4 sm:$0xff]  }
 0x5a9   : > { %4967 = vmatprep.subr.bf16.mxu1 %v9512_v54  ;;  %v9596_v54 = vld [vmem:[%s12222_s3 + $0x464] ss:$8 sps:$4 sm:$0xff]  }
 0x5ac   : > { %4968 = vmatpush1.bf16.msra.mxu1 %v9510_v1  ;;  %v9594_v1 = vld [vmem:[%s12222_s3 + $0x460] ss:$8 sps:$4 sm:$0xff]  }
 0x5ad   : > { %4969 = vmatprep.subr.bf16.mxu1 %v9515_v13  ;;  %v9599_v13 = vld [vmem:[%s12222_s3 + $0x474] ss:$8 sps:$4 sm:$0xff]  }
 0x5b0   : > { %4970 = vmatpush1.bf16.msra.mxu1 %v9513_v4  ;;  %v9597_v4 = vld [vmem:[%s12222_s3 + $0x470] ss:$8 sps:$4 sm:$0xff]  }
 0x5b1   : > { %4971 = vmatprep.subr.bf16.mxu1 %v9518_v10  ;;  %v5583_v10 = vld [vmem:[%s12224_s5] sm:$0xff] }
 0x5b4   : > { %4972 = vmatpush1.bf16.msra.mxu1 %v9516_v48  ;;  %v5587_v48 = vld [vmem:[%s12224_s5 + $0x20] sm:$0xff] }
 0x5b5   : > { %4973 = vmatprep.subr.bf16.mxu1 %v9521_v52  ;;  %v5591_v52 = vld [vmem:[%s12224_s5 + $0x40] sm:$0xff] }
 0x5b6   : > { %v8456_v49 = vcombine.high %v5591_v52, %v5595_v27 }
 0x5b8   : > { %4974 = vmatpush1.bf16.msra.mxu1 %v9519_v56  ;;  %v8447_v56 = vcombine.low %v5583_v10, %v5587_v48 }
 0x5b9   : > { %4975 = vmatprep.subr.bf16.mxu1 %v9524_v36  ;;  %v8448_v36 = vcombine.high %v5583_v10, %v5587_v48 }
 0x5bc   : > { %4976 = vmatpush1.bf16.msra.mxu1 %v9522_v47  ;;  %v8455_v47 = vcombine.low %v5591_v52, %v5595_v27 }
 0x5bd   : > { %4977 = vmatprep.subr.bf16.mxu1 %v9527_v50 }
 0x5c0   : > { %4978 = vmatpush1.bf16.msra.mxu1 %v9525_v8  ;;  %v5607_v8 = vld [vmem:[%s12224_s5 + $0xc0] sm:$0xff] }
 0x5c1   : > { %5110 = vmatprep.subr.bf16.mxu1 %v9530_v60  ;;  %v5611_v60 = vld [vmem:[%s12224_s5 + $0xe0] sm:$0xff] }
 0x5c3   : > { %8344 = vmatmul.mubr.msk.bf16.vlgmr.msra.gmra.mrb[0].mxu1 %vm10962_vm6, %v8343_v29  ;;  %v9537_v29 = vld [vmem:[%s12222_s3 + $0x330] ss:$8 sps:$4 sm:$0xff]  }
 0x5c4   : > { %5111 = vmatpush1.bf16.msra.mxu1 %v9528_v9  ;;  %5142 = vmatprep.mubr.bf16.mxu1 %v9677_v3 }
 0x5c5   : > { %5112 = vmatprep.subr.bf16.mxu1 %v9533_v63  ;;  %v8472_v63 = vcombine.high %v5607_v8, %v5611_v60 }
 0x5c8   : > { %5113 = vmatpush1.bf16.msra.mxu1 %v9531_v30  ;;  %v5615_v30 = vld [vmem:[%s12224_s5 + $0x100] sm:$0xff] }
 0x5c9   : > { %5114 = vmatprep.subr.bf16.mxu1 %v9536_v20  ;;  %v5619_v20 = vld [vmem:[%s12224_s5 + $0x120] sm:$0xff] }
 0x5cc   : > { %5115 = vmatpush1.bf16.msra.mxu1 %v9534_v59  ;;  %v8471_v59 = vcombine.low %v5607_v8, %v5611_v60 }
 0x5cd   : > { %5116 = vmatprep.subr.bf16.mxu1 %v9539_v17  ;;  %v8480_v17 = vcombine.high %v5615_v30, %v5619_v20 }
 0x5d0   : > { %5117 = vmatpush1.bf16.msra.mxu1 %v9537_v29  ;;  %v5623_v29 = vld [vmem:[%s12224_s5 + $0x140] sm:$0xff] }
 0x5d1   : > { %5118 = vmatprep.subr.bf16.mxu1 %v9542_v6  ;;  %v5627_v6 = vld [vmem:[%s12224_s5 + $0x160] sm:$0xff] }
 0x5d4   : > { %5119 = vmatpush1.bf16.msra.mxu1 %v9540_v57  ;;  %v8479_v57 = vcombine.low %v5615_v30, %v5619_v20 }
 0x5d5   : > { %5120 = vmatprep.subr.bf16.mxu1 %v9545_v21  ;;  %v8488_v21 = vcombine.high %v5623_v29, %v5627_v6 }
 0x5d8   : > { %5121 = vmatpush1.bf16.msra.mxu1 %v9543_v35  ;;  %v5631_v35 = vld [vmem:[%s12224_s5 + $0x180] sm:$0xff] }
 0x5d9   : > { %5122 = vmatprep.subr.bf16.mxu1 %v9548_v7  ;;  %v5635_v7 = vld [vmem:[%s12224_s5 + $0x1a0] sm:$0xff] }
 0x5dc   : > { %5123 = vmatpush1.bf16.msra.mxu1 %v9546_v39  ;;  %v8487_v39 = vcombine.low %v5623_v29, %v5627_v6 }
 0x5dd   : > { %5124 = vmatprep.subr.bf16.mxu1 %v9551_v11  ;;  %v8496_v11 = vcombine.high %v5631_v35, %v5635_v7 }
 0x5e0   : > { %5125 = vmatpush1.bf16.msra.mxu1 %v9549_v14  ;;  %v5639_v14 = vld [vmem:[%s12224_s5 + $0x1c0] sm:$0xff] }
 0x5e1   : > { %5269 = vmatprep.subr.bf16.mxu1 %v9554_v16  ;;  %v5643_v16 = vld [vmem:[%s12224_s5 + $0x1e0] sm:$0xff] }
 0x5e3   : > { %8379 = vmatmul.mubr.msk.bf16.vlgmr.msra.gmra.mrb[0].mxu1 %vm10906_vm15, %v10812_v55  ;;  %v9563_v55 = vld [vmem:[%s12222_s3 + $0x3b4] ss:$8 sps:$4 sm:$0xff]  }
 0x5e4   : > { %5270 = vmatpush1.bf16.msra.mxu1 %v9552_v43  ;;  %5301 = vmatprep.mubr.bf16.mxu1 %v9677_v3  ;;  %v8495_v43 = vcombine.low %v5631_v35, %v5635_v7 }
 0x5e5   : > { %5271 = vmatprep.subr.bf16.mxu1 %v9557_v15  ;;  %v8504_v15 = vcombine.high %v5639_v14, %v5643_v16 }
 0x5e8   : > { %5272 = vmatpush1.bf16.msra.mxu1 %v9555_v18  ;;  %v5647_v18 = vld [vmem:[%s12224_s5 + $0x200] sm:$0xff] }
 0x5e9   : > { %5273 = vmatprep.subr.bf16.mxu1 %v9560_v34  ;;  %v5651_v34 = vld [vmem:[%s12224_s5 + $0x220] sm:$0xff] }
 0x5ec   : > { %5274 = vmatpush1.bf16.msra.mxu1 %v9558_v26  ;;  %v8503_v26 = vcombine.low %v5639_v14, %v5643_v16  ;;  %v5695_v14 = vld [vmem:[%s12224_s5 + $0x380] sm:$0xff] }
 0x5ed   : > { %5275 = vmatprep.subr.bf16.mxu1 %v9563_v55  ;;  %v8512_v55 = vcombine.high %v5647_v18, %v5651_v34  ;;  %v5699_v16 = vld [vmem:[%s12224_s5 + $0x3a0] sm:$0xff] }
 0x5f0   : > { %5276 = vmatpush1.bf16.msra.mxu1 %v9561_v24  ;;  %v5655_v24 = vld [vmem:[%s12224_s5 + $0x240] sm:$0xff] }
 0x5f1   : > { %5277 = vmatprep.subr.bf16.mxu1 %v9566_v23  ;;  %v5659_v23 = vld [vmem:[%s12224_s5 + $0x260] sm:$0xff] }
 0x5f4   : > { %5278 = vmatpush1.bf16.msra.mxu1 %v9564_v42  ;;  %v8511_v42 = vcombine.low %v5647_v18, %v5651_v34  ;;  %v8559_v34 = vcombine.low %v5695_v14, %v5699_v16 }
 0x5f5   : > { %5279 = vmatprep.subr.bf16.mxu1 %v9569_v2  ;;  %v8520_v2 = vcombine.high %v5655_v24, %v5659_v23 }
 0x5f8   : > { %5280 = vmatpush1.bf16.msra.mxu1 %v9567_v5  ;;  %v5663_v5 = vld [vmem:[%s12224_s5 + $0x280] sm:$0xff] }
 0x5f9   : > { %5281 = vmatprep.subr.bf16.mxu1 %v9572_v38  ;;  %v5667_v38 = vld [vmem:[%s12224_s5 + $0x2a0] sm:$0xff] }
 0x5fc   : > { %5282 = vmatpush1.bf16.msra.mxu1 %v9570_v58  ;;  %v8519_v58 = vcombine.low %v5655_v24, %v5659_v23 }
 0x5fd   : > { %5283 = vmatprep.subr.bf16.mxu1 %v9575_v28  ;;  %v8528_v28 = vcombine.high %v5663_v5, %v5667_v38 }
 0x600   : > { %5284 = vmatpush1.bf16.msra.mxu1 %v9573_v32  ;;  %v5671_v32 = vld [vmem:[%s12224_s5 + $0x2c0] sm:$0xff] }
 0x601   : > { %5420 = vmatprep.subr.bf16.mxu1 %v9578_v33  ;;  %v5675_v33 = vld [vmem:[%s12224_s5 + $0x2e0] sm:$0xff] }
 0x603   : > { %5302 = vmatmul.mubr.bf16.vlgmr.msra.gmra.mrb[0].mxu1 %v10866_v12  ;;  %v9587_v12 = vld [vmem:[%s12222_s3 + $0x434] ss:$8 sps:$4 sm:$0xff]  }
 0x604   : > { %5421 = vmatpush1.bf16.msra.mxu1 %v9576_v37  ;;  %5452 = vmatprep.mubr.bf16.mxu1 %v9677_v3  ;;  %v9585_v3 = vld [vmem:[%s12222_s3 + $0x430] ss:$8 sps:$4 sm:$0xff]   ;;  %v8527_v37 = vcombine.low %v5663_v5, %v5667_v38 }
 0x605   : > { %5422 = vmatprep.subr.bf16.mxu1 %v9581_v25  ;;  %v8536_v25 = vcombine.high %v5671_v32, %v5675_v33 }
 0x608   : > { %5423 = vmatpush1.bf16.msra.mxu1 %v9579_v40  ;;  %v5679_v40 = vld [vmem:[%s12224_s5 + $0x300] sm:$0xff] }
 0x609   : > { %5424 = vmatprep.subr.bf16.mxu1 %v9584_v46  ;;  %v5683_v46 = vld [vmem:[%s12224_s5 + $0x320] sm:$0xff] }
 0x60c   : > { %5425 = vmatpush1.bf16.msra.mxu1 %v9582_v45  ;;  %v8535_v45 = vcombine.low %v5671_v32, %v5675_v33 }
 0x60d   : > { %5426 = vmatprep.subr.bf16.mxu1 %v9587_v12  ;;  %v8544_v12 = vcombine.high %v5679_v40, %v5683_v46 }
 0x610   : > { %5427 = vmatpush1.bf16.msra.mxu1 %v9585_v3  ;;  %v8543_v3 = vcombine.low %v5679_v40, %v5683_v46  ;;  %v5711_v46 = vld [vmem:[%s12224_s5 + $0x400] sm:$0xff] }
 0x611   : > { %5428 = vmatprep.subr.bf16.mxu1 %v9590_v62  ;;  %v5467_v62 = vld [vmem:[%s12223_s4] sm:$0x3] }
 0x614   : > { %5429 = vmatpush1.bf16.msra.mxu1 %v9588_v51  ;;  %v5472_v51 = vrot.slane %v5467_v62, %v10678_v31 }
 0x615   : > { %5430 = vmatprep.subr.bf16.mxu1 %v9593_v0  ;;  %v5476_v0 = vrot.slane %v5467_v62, %v10684_v44 }
 0x618   : > { %5431 = vmatpush1.bf16.msra.mxu1 %v9591_v61 }
 0x619   : > { %5432 = vmatprep.subr.bf16.mxu1 %v9596_v54 }
 0x61c   : > { %5433 = vmatpush1.bf16.msra.mxu1 %v9594_v1 }
 0x61d   : > { %5434 = vmatprep.subr.bf16.mxu1 %v9599_v13 }
 0x620   : > { %5435 = vmatpush1.bf16.msra.mxu1 %v9597_v4 }
 0x621   : > { %7161 = vmatprep.subr.bf16.mxu1 %v8448_v36 }
 0x623   : > { %8446 = vmatmul.mubr.msk.bf16.vlgmr.msra.gmra.mrb[0].mxu1 %vm10962_vm6, %v8445_v41  ;;  %v5599_v41 = vld [vmem:[%s12224_s5 + $0x80] sm:$0xff] }
 0x624   : > { %7162 = vmatpush1.bf16.msra.mxu1 %v8447_v56  ;;  %v8464_v50 = vcombine.high %v5599_v41, %v5603_v19  ;;  %v8463_v9 = vcombine.low %v5599_v41, %v5603_v19 }
 0x625   : > { %7163 = vmatprep.subr.bf16.mxu1 %v8456_v49 }
 0x628   : > { %7164 = vmatpush1.bf16.msra.mxu1 %v8455_v47 }
 0x629   : > { %7165 = vmatprep.subr.bf16.mxu1 %v8464_v50 }
 0x62c   : > { %7166 = vmatpush1.bf16.msra.mxu1 %v8463_v9  ;;  %v5687_v9 = vld [vmem:[%s12224_s5 + $0x340] sm:$0xff] }
 0x62d   : > { %7167 = vmatprep.subr.bf16.mxu1 %v8472_v63  ;;  %v5691_v63 = vld [vmem:[%s12224_s5 + $0x360] sm:$0xff] }
 0x630   : > { %7168 = vmatpush1.bf16.msra.mxu1 %v8471_v59  ;;  %v8551_v59 = vcombine.low %v5687_v9, %v5691_v63 }
 0x631   : > { %7169 = vmatprep.subr.bf16.mxu1 %v8480_v17  ;;  %v8552_v17 = vcombine.high %v5687_v9, %v5691_v63 }
 0x634   : > { %7170 = vmatpush1.bf16.msra.mxu1 %v8479_v57 }
 0x635   : > { %7171 = vmatprep.subr.bf16.mxu1 %v8488_v21 }
 0x638   : > { %7172 = vmatpush1.bf16.msra.mxu1 %v8487_v39 }
 0x639   : > { %7173 = vmatprep.subr.bf16.mxu1 %v8496_v11 }
 0x63c   : > { %7174 = vmatpush1.bf16.msra.mxu1 %v8495_v43  ;;  %v5703_v43 = vld [vmem:[%s12224_s5 + $0x3c0] sm:$0xff] }
 0x63d   : > { %7175 = vmatprep.subr.bf16.mxu1 %v8504_v15 }
 0x640   : > { %7176 = vmatpush1.bf16.msra.mxu1 %v8503_v26  ;;  %v8560_v26 = vcombine.high %v5695_v14, %v5699_v16  ;;  %v5751_v14 = vld [vmem:[%s12224_s5 + $0x540] sm:$0xff] }
 0x641   : > { %7177 = vmatprep.subr.bf16.mxu1 %v8512_v55  ;;  %v5707_v55 = vld [vmem:[%s12224_s5 + $0x3e0] sm:$0xff] }
 0x642   : > { %v5755_v16 = vld [vmem:[%s12224_s5 + $0x560] sm:$0xff] }
 0x644   : > { %7178 = vmatpush1.bf16.msra.mxu1 %v8511_v42  ;;  %v8568_v42 = vcombine.high %v5703_v43, %v5707_v55 }
 0x645   : > { %7179 = vmatprep.subr.bf16.mxu1 %v8520_v2 }
 0x648   : > { %7180 = vmatpush1.bf16.msra.mxu1 %v8519_v58 }
 0x649   : > { %7181 = vmatprep.subr.bf16.mxu1 %v8528_v28  ;;  %v8567_v28 = vcombine.low %v5703_v43, %v5707_v55 }
 0x64c   : > { %7182 = vmatpush1.bf16.msra.mxu1 %v8527_v37 }
 0x64d   : > { %7183 = vmatprep.subr.bf16.mxu1 %v8536_v25 }
 0x650   : > { %7184 = vmatpush1.bf16.msra.mxu1 %v8535_v45  ;;  %v5715_v45 = vld [vmem:[%s12224_s5 + $0x420] sm:$0xff] }
 0x651   : > { %7185 = vmatprep.subr.bf16.mxu1 %v8544_v12  ;;  %v8576_v62 = vcombine.high %v5711_v46, %v5715_v45 }
 0x654   : > { %7186 = vmatpush1.bf16.msra.mxu1 %v8543_v3  ;;  %v8575_v3 = vcombine.low %v5711_v46, %v5715_v45  ;;  %v5795_v46 = vld [vmem:[%s12224_s5 + $0x6a0] sm:$0xff] }
 0x655   : > { %7187 = vmatprep.subr.bf16.mxu1 %v8552_v17 }
 0x658   : > { %7188 = vmatpush1.bf16.msra.mxu1 %v8551_v59 }
 0x659   : > { %7189 = vmatprep.subr.bf16.mxu1 %v8560_v26  ;;  %v8615_v26 = vcombine.low %v5751_v14, %v5755_v16 }
 0x65c   : > { %7190 = vmatpush1.bf16.msra.mxu1 %v8559_v34  ;;  %v5763_v34 = vld [vmem:[%s12224_s5 + $0x5a0] sm:$0xff] }
 0x65d   : > { %7191 = vmatprep.subr.bf16.mxu1 %v8568_v42 }
 0x660   : > { %7192 = vmatpush1.bf16.msra.mxu1 %v8567_v28 }
 0x661   : > { %7202 = vmatprep.subr.bf16.mxu1 %v8576_v62  ;;  %v5803_v62 = vld [vmem:[%s12224_s5 + $0x6e0] sm:$0xff] }
 0x6f6   : > { %v5454_v61 = vpop.f32.mrb[0].mxu1 }
 0x6f7   : > { %v5479_v54 = vadd.f32 %v5472_v51, %v5454_v61  ;;  %v5456_v1 = vpop.f32.mrb[1].mxu1 }
 0x6f8   : > { %v5480_v13 = vadd.f32 %v5476_v0, %v5456_v1  ;;  %v5458_v4 = vpop.f32.mrb[2].mxu1 }
 0x6f9   : > { %v5483_v10 = vmax.f32 %v5479_v54, 0.0  ;;  %v5481_v48 = vadd.f32 %v5472_v51, %v5458_v4  ;;  %v5460_v52 = vpop.f32.mrb[3].mxu1  ;;  %v9681_v51 = vmov 1935823168  }
 0x6fa   : > { %v5484_v56 = vmax.f32 %v5480_v13, 0.0  ;;  %v5482_v36 = vadd.f32 %v5476_v0, %v5460_v52  ;;  %v5552_v0 = vunpack.c.l.s4 %v9681_v51  ;;  %v5565_v52 = vsub.s32 2, %v10675_v22 }
 0x6fb   : > { %v5485_v27 = vmax.f32 %v5481_v48, 0.0  ;;  %v5489_v41 = vrot.slane %v5483_v10, 4 }
 0x6fc   : > { %v5486_v49 = vmax.f32 %v5482_v36, 0.0  ;;  %v5490_v47 = vrot.slane %v5484_v56, 4  ;;  %v5553_v61 = vunpack.c.0.s8 %v5552_v0 }
 0x6fd   : > { %v5497_v19 = vrot.slane %v5485_v27, 4  ;;  %v5493_v30 = vmax.f32 %v5483_v10, %v5489_v41 }
 0x6fe   : > { %v5498_v50 = vrot.slane %v5486_v49, 4  ;;  %v5494_v29 = vmax.f32 %v5484_v56, %v5490_v47  ;;  %v5556_v4 = vsub.s32 %v5553_v61, %v10675_v22  ;;  %v5719_v47 = vld [vmem:[%s12224_s5 + $0x440] sm:$0xff] }
 0x6ff   : > { %v5501_v8 = vmax.f32 %v5483_v10, %v5497_v19  ;;  %v5807_v61 = vld [vmem:[%s12224_s5 + $0x700] sm:$0xff] }
 0x700   : > { %v5502_v60 = vmax.f32 %v5484_v56, %v5498_v50  ;;  %v5573_v56 = vsub.s32 6, %v10675_v22  ;;  %v5723_v50 = vld [vmem:[%s12224_s5 + $0x460] sm:$0xff] }
 0x701   : > { %v5503_v20 = vmax.f32 %v5501_v8, %v5485_v27  ;;  %v8584_v9 = vcombine.high %v5719_v47, %v5723_v50  ;;  %v8583_v59 = vcombine.low %v5719_v47, %v5723_v50  ;;  %v5831_v50 = vld [vmem:[%s12224_s5 + $0x7c0] sm:$0xff] }
 0x702   : > { %v5504_v6 = vmax.f32 %v5502_v60, %v5486_v49 }
 0x703   : > { %v5505_v57 = vsel %vm3941_vm4, %v5493_v30, %v5503_v20  ;;  %v5727_v30 = vld [vmem:[%s12224_s5 + $0x480] sm:$0xff] }
 0x704   : > { %v5509_v21 = vrot.slane %v5505_v57, 1  ;;  %v5506_v35 = vsel %vm3941_vm4, %v5494_v29, %v5504_v6  ;;  %v5515_v11 = vrot.slane %v5505_v57, 2  ;;  %v5731_v20 = vld [vmem:[%s12224_s5 + $0x4a0] sm:$0xff] }
 0x705   : > { %v5510_v7 = vrot.slane %v5506_v35, 1  ;;  %v5516_v18 = vrot.slane %v5506_v35, 2  ;;  %v8592_v17 = vcombine.high %v5727_v30, %v5731_v20  ;;  %v5735_v29 = vld [vmem:[%s12224_s5 + $0x4c0] sm:$0xff] }
 0x706   : > { %v5513_v39 = vmax.f32 %v5505_v57, %v5509_v21  ;;  %v5739_v6 = vld [vmem:[%s12224_s5 + $0x4e0] sm:$0xff]  ;;  %v8591_v57 = vcombine.low %v5727_v30, %v5731_v20 }
 0x707   : > { %v5514_v15 = vmax.f32 %v5506_v35, %v5510_v7  ;;  %v8600_v21 = vcombine.high %v5735_v29, %v5739_v6  ;;  %v5743_v35 = vld [vmem:[%s12224_s5 + $0x500] sm:$0xff] }
 0x708   : > { %v5519_v24 = vmax.f32 %v5513_v39, %v5515_v11  ;;  %v5523_v23 = vrot.slane %v5513_v39, 2  ;;  %v5747_v7 = vld [vmem:[%s12224_s5 + $0x520] sm:$0xff] }
 0x709   : > { %v5520_v2 = vmax.f32 %v5514_v15, %v5516_v18  ;;  %v5524_v5 = vrot.slane %v5514_v15, 2  ;;  %v8608_v11 = vcombine.high %v5743_v35, %v5747_v7  ;;  %v8607_v43 = vcombine.low %v5743_v35, %v5747_v7  ;;  %v5759_v18 = vld [vmem:[%s12224_s5 + $0x580] sm:$0xff]  ;;  %v5592_v35 = vld [vmem:[%s12224_s5 + $0x48] sm:$0xff] }
 0x70a   : > { %v5529_v38 = vrot.slane %v5519_v24, 2  ;;  %v5533_v58 = vsel %vm3933_vm2, %v5513_v39, %v5519_v24  ;;  %v8599_v39 = vcombine.low %v5735_v29, %v5739_v6  ;;  %v8624_v55 = vcombine.high %v5759_v18, %v5763_v34  ;;  %v5767_v24 = vld [vmem:[%s12224_s5 + $0x5c0] sm:$0xff]  ;;  %v5588_v29 = vld [vmem:[%s12224_s5 + $0x28] sm:$0xff] }
 0x70b   : > { %v5535_v32 = vsel %vm391_vm0, %v5533_v58, %v5523_v23  ;;  %v5530_v33 = vrot.slane %v5520_v2, 2  ;;  %v5534_v37 = vsel %vm3933_vm2, %v5514_v15, %v5520_v2  ;;  %v8616_v15 = vcombine.high %v5751_v14, %v5755_v16  ;;  %v5771_v23 = vld [vmem:[%s12224_s5 + $0x5e0] sm:$0xff]  ;;  %v5596_v7 = vld [vmem:[%s12224_s5 + $0x68] sm:$0xff] }
 0x70c   : > { %v5537_v25 = vsel %vm3938_vm3, %v5535_v32, %v5529_v38  ;;  %v5536_v40 = vsel %vm391_vm0, %v5534_v37, %v5524_v5  ;;  %v8623_v42 = vcombine.low %v5759_v18, %v5763_v34  ;;  %v8632_v2 = vcombine.high %v5767_v24, %v5771_v23  ;;  %v5775_v5 = vld [vmem:[%s12224_s5 + $0x600] sm:$0xff]  ;;  %v5600_v16 = vld [vmem:[%s12224_s5 + $0x88] sm:$0xff] }
 0x70d   : > { %5540 = vrot.lane.b32.xlu1 %v5537_v25, %s9679_s21  ;;  %v5538_v12 = vsel %vm3938_vm3, %v5536_v40, %v5530_v33  ;;  %v5779_v38 = vld [vmem:[%s12224_s5 + $0x620] sm:$0xff]  ;;  %v8631_v58 = vcombine.low %v5767_v24, %v5771_v23  ;;  %v8458_v14 = vcombine.high %v5592_v35, %v5596_v7  ;;  %v5608_v18 = vld [vmem:[%s12224_s5 + $0xc8] sm:$0xff]  ;;  %vm9682_vm0 = vmmov 0  }
 0x70e   : > { %5545 = vrot.lane.b32.xlu0 %v5538_v12, %s9679_s21  ;;  %v8640_v28 = vcombine.high %v5775_v5, %v5779_v38  ;;  %v5783_v32 = vld [vmem:[%s12224_s5 + $0x640] sm:$0xff]  ;;  %v8639_v37 = vcombine.low %v5775_v5, %v5779_v38  ;;  %v5612_v34 = vld [vmem:[%s12224_s5 + $0xe8] sm:$0xff]  ;;  %8739 = vmatprep.mubr.msk.bf16.mxu0 %vm9682_vm0, %v9680_v53 }
 0x70f   : > { %v5787_v33 = vld [vmem:[%s12224_s5 + $0x660] sm:$0xff]  ;;  %v5616_v24 = vld [vmem:[%s12224_s5 + $0x108] sm:$0xff] }
 0x710   : > { %v5791_v40 = vld [vmem:[%s12224_s5 + $0x680] sm:$0xff]  ;;  %v8647_v45 = vcombine.low %v5783_v32, %v5787_v33  ;;  %v5620_v23 = vld [vmem:[%s12224_s5 + $0x128] sm:$0xff] }
 0x711   : > { %v8655_v51 = vcombine.low %v5791_v40, %v5795_v46  ;;  %v5624_v5 = vld [vmem:[%s12224_s5 + $0x148] sm:$0xff] }
 0x712   : > { %v5628_v38 = vld [vmem:[%s12224_s5 + $0x168] sm:$0xff] }
 0x77f   : > { %v5541_v54 = vpop.permute.xlu1 %5540 }
 0x780   : > { %v5546_v1 = vpop.permute.xlu0 %5545  ;;  %v5543_v10 = vmax.f32 %v5537_v25, %v5541_v54  ;;  %v5811_v54 = vld [vmem:[%s12224_s5 + $0x720] sm:$0xff] }
 0x781   : > { %v5548_v13 = vmax.f32 %v5537_v25, %v5546_v1  ;;  %v8648_v25 = vcombine.high %v5783_v32, %v5787_v33  ;;  %v5632_v32 = vld [vmem:[%s12224_s5 + $0x188] sm:$0xff] }
 0x782   : > { %v5636_v33 = vld [vmem:[%s12224_s5 + $0x1a8] sm:$0xff] }
 0x783   : > { %v5549_v48 = vmax.f32 %v5548_v13, %v5538_v12  ;;  %v8656_v12 = vcombine.high %v5791_v40, %v5795_v46  ;;  %v8672_v13 = vcombine.high %v5807_v61, %v5811_v54  ;;  %v5640_v40 = vld [vmem:[%s12224_s5 + $0x1c8] sm:$0xff] }
 0x784   : > { %v5644_v46 = vld [vmem:[%s12224_s5 + $0x1e8] sm:$0xff] }
 0x785   : > { %v5550_v36 = vsel %vm4026_vm9, %v5543_v10, %v5549_v48  ;;  %v5819_v10 = vld [vmem:[%s12224_s5 + $0x760] sm:$0xff]  ;;  %v8671_v48 = vcombine.low %v5807_v61, %v5811_v54  ;;  %v5656_v61 = vld [vmem:[%s12224_s5 + $0x248] sm:$0xff] }
 0x786   : > { %v11403_v27 = vrot.slane %v5550_v36, %v5556_v4  ;;  %v5815_v4 = vld [vmem:[%s12224_s5 + $0x740] sm:$0xff]  ;;  %v5660_v54 = vld [vmem:[%s12224_s5 + $0x268] sm:$0xff] }
 0x787   : > { %v8680_v36 = vcombine.high %v5815_v4, %v5819_v10 }
 0x788   : > { %v5566_v49 = vrot.slane %v11403_v27, %v5565_v52  ;;  %v5562_v41 = vrot.slane %v11403_v27, %v10678_v31  ;;  %v5574_v19 = vrot.slane %v11403_v27, %v5573_v56 }
 0x78a   : > { %v11419_v8 = vpack.c.bf16 %v5566_v49, %v5566_v49  ;;  %v11421_v60 = vpack.c.bf16 %v5562_v41, %v5562_v41  ;;  %v11424_v63 = vpack.c.bf16 %v5574_v19, %v5574_v19  ;;  %v5823_v49 = vld [vmem:[%s12224_s5 + $0x780] sm:$0xff]  ;;  %v8679_v19 = vcombine.low %v5815_v4, %v5819_v10  ;;  %v5664_v4 = vld [vmem:[%s12224_s5 + $0x288] sm:$0xff] }
 0x78b   : > { %v5827_v41 = vld [vmem:[%s12224_s5 + $0x7a0] sm:$0xff]  ;;  %v5668_v10 = vld [vmem:[%s12224_s5 + $0x2a8] sm:$0xff] }
 0x78c   : > { %7193 = vmatprep.mubr.bf16.mxu1 %v11419_v8  ;;  %v8688_v47 = vcombine.high %v5823_v49, %v5827_v41  ;;  %v8687_v30 = vcombine.low %v5823_v49, %v5827_v41  ;;  %v5672_v49 = vld [vmem:[%s12224_s5 + $0x2c8] sm:$0xff] }
 0x78d   : > { %7194 = vmatmul.mubr.bf16.vlgmr.msra.gmra.mrb[4].mxu1 %v11421_v60  ;;  %v5676_v41 = vld [vmem:[%s12224_s5 + $0x2e8] sm:$0xff] }
 0x78e   : > { %7203 = vmatpush1.bf16.msra.mxu1 %v8575_v3  ;;  %7234 = vmatprep.mubr.bf16.mxu1 %v11424_v63  ;;  %v5799_v3 = vld [vmem:[%s12224_s5 + $0x6c0] sm:$0xff] }
 0x78f   : > { %7204 = vmatprep.subr.bf16.mxu1 %v8584_v9  ;;  %v8664_v0 = vcombine.high %v5799_v3, %v5803_v62  ;;  %v8663_v1 = vcombine.low %v5799_v3, %v5803_v62  ;;  %v5835_v9 = vld [vmem:[%s12224_s5 + $0x7e0] sm:$0xff]  ;;  %v5648_v3 = vld [vmem:[%s12224_s5 + $0x208] sm:$0xff] }
 0x790   : > { %v8696_v20 = vcombine.high %v5831_v50, %v5835_v9  ;;  %v8695_v6 = vcombine.low %v5831_v50, %v5835_v9  ;;  %v5652_v62 = vld [vmem:[%s12224_s5 + $0x228] sm:$0xff] }
 0x791   : > { %v5680_v50 = vld [vmem:[%s12224_s5 + $0x308] sm:$0xff] }
 0x792   : > { %7205 = vmatpush1.bf16.msra.mxu1 %v8583_v59  ;;  %v5569_v59 = vsub.s32 4, %v10675_v22  ;;  %v5684_v9 = vld [vmem:[%s12224_s5 + $0x328] sm:$0xff] }
 0x793   : > { %7206 = vmatprep.subr.bf16.mxu1 %v8592_v17  ;;  %v5584_v17 = vld [vmem:[%s12224_s5 + $0x8] sm:$0xff] }
 0x796   : > { %7207 = vmatpush1.bf16.msra.mxu1 %v8591_v57  ;;  %v5570_v57 = vrot.slane %v11403_v27, %v5569_v59  ;;  %v5604_v27 = vld [vmem:[%s12224_s5 + $0xa8] sm:$0xff] }
 0x797   : > { %7208 = vmatprep.subr.bf16.mxu1 %v8600_v21  ;;  %v8450_v21 = vcombine.high %v5584_v17, %v5588_v29 }
 0x79a   : > { %7209 = vmatpush1.bf16.msra.mxu1 %v8599_v39  ;;  %v8449_v39 = vcombine.low %v5584_v17, %v5588_v29  ;;  %v5688_v17 = vld [vmem:[%s12224_s5 + $0x348] sm:$0xff] }
 0x79b   : > { %7210 = vmatprep.subr.bf16.mxu1 %v8608_v11  ;;  %v11528_v11 = vpack.c.bf16 %v5570_v57, %v5570_v57  ;;  %v5692_v29 = vld [vmem:[%s12224_s5 + $0x368] sm:$0xff] }
 0x79c   : > { %v8554_v57 = vcombine.high %v5688_v17, %v5692_v29 }
 0x79e   : > { %7211 = vmatpush1.bf16.msra.mxu1 %v8607_v43  ;;  %v8457_v43 = vcombine.low %v5592_v35, %v5596_v7  ;;  %v5700_v35 = vld [vmem:[%s12224_s5 + $0x3a8] sm:$0xff]  ;;  %v8553_v7 = vcombine.low %v5688_v17, %v5692_v29 }
 0x79f   : > { %7212 = vmatprep.subr.bf16.mxu1 %v8616_v15  ;;  %v8466_v15 = vcombine.high %v5600_v16, %v5604_v27  ;;  %v5796_v17 = vld [vmem:[%s12224_s5 + $0x6a8] sm:$0xff] }
 0x7a2   : > { %7213 = vmatpush1.bf16.msra.mxu1 %v8615_v26  ;;  %v8465_v26 = vcombine.low %v5600_v16, %v5604_v27  ;;  %v5708_v16 = vld [vmem:[%s12224_s5 + $0x3e8] sm:$0xff] }
 0x7a3   : > { %7214 = vmatprep.subr.bf16.mxu1 %v8624_v55  ;;  %v8474_v55 = vcombine.high %v5608_v18, %v5612_v34 }
 0x7a6   : > { %7215 = vmatpush1.bf16.msra.mxu1 %v8623_v42  ;;  %v8473_v42 = vcombine.low %v5608_v18, %v5612_v34  ;;  %v5716_v18 = vld [vmem:[%s12224_s5 + $0x428] sm:$0xff] }
 0x7a7   : > { %7216 = vmatprep.subr.bf16.mxu1 %v8632_v2  ;;  %v8482_v2 = vcombine.high %v5616_v24, %v5620_v23 }
 0x7aa   : > { %7217 = vmatpush1.bf16.msra.mxu1 %v8631_v58  ;;  %v8481_v58 = vcombine.low %v5616_v24, %v5620_v23  ;;  %v5724_v24 = vld [vmem:[%s12224_s5 + $0x468] sm:$0xff] }
 0x7ab   : > { %7218 = vmatprep.subr.bf16.mxu1 %v8640_v28  ;;  %v8490_v28 = vcombine.high %v5624_v5, %v5628_v38 }
 0x7ae   : > { %7219 = vmatpush1.bf16.msra.mxu1 %v8639_v37  ;;  %v8489_v37 = vcombine.low %v5624_v5, %v5628_v38  ;;  %v5732_v5 = vld [vmem:[%s12224_s5 + $0x4a8] sm:$0xff] }
 0x7af   : > { %7220 = vmatprep.subr.bf16.mxu1 %v8648_v25  ;;  %v8498_v25 = vcombine.high %v5632_v32, %v5636_v33 }
 0x7b2   : > { %7221 = vmatpush1.bf16.msra.mxu1 %v8647_v45  ;;  %v8497_v45 = vcombine.low %v5632_v32, %v5636_v33  ;;  %v5740_v32 = vld [vmem:[%s12224_s5 + $0x4e8] sm:$0xff] }
 0x7b3   : > { %7222 = vmatprep.subr.bf16.mxu1 %v8656_v12  ;;  %v8506_v12 = vcombine.high %v5640_v40, %v5644_v46 }
 0x7b6   : > { %7223 = vmatpush1.bf16.msra.mxu1 %v8655_v51  ;;  %v8505_v51 = vcombine.low %v5640_v40, %v5644_v46  ;;  %v5748_v40 = vld [vmem:[%s12224_s5 + $0x528] sm:$0xff] }
 0x7b7   : > { %7224 = vmatprep.subr.bf16.mxu1 %v8664_v0  ;;  %v8514_v0 = vcombine.high %v5648_v3, %v5652_v62 }
 0x7ba   : > { %7225 = vmatpush1.bf16.msra.mxu1 %v8663_v1  ;;  %v8513_v1 = vcombine.low %v5648_v3, %v5652_v62  ;;  %v5756_v3 = vld [vmem:[%s12224_s5 + $0x568] sm:$0xff] }
 0x7bb   : > { %7226 = vmatprep.subr.bf16.mxu1 %v8672_v13  ;;  %v8522_v13 = vcombine.high %v5656_v61, %v5660_v54 }
 0x7be   : > { %7227 = vmatpush1.bf16.msra.mxu1 %v8671_v48  ;;  %v8521_v48 = vcombine.low %v5656_v61, %v5660_v54  ;;  %v5764_v61 = vld [vmem:[%s12224_s5 + $0x5a8] sm:$0xff] }
 0x7bf   : > { %7228 = vmatprep.subr.bf16.mxu1 %v8680_v36  ;;  %v8530_v36 = vcombine.high %v5664_v4, %v5668_v10 }
 0x7c2   : > { %7229 = vmatpush1.bf16.msra.mxu1 %v8679_v19  ;;  %v8529_v19 = vcombine.low %v5664_v4, %v5668_v10  ;;  %v5772_v4 = vld [vmem:[%s12224_s5 + $0x5e8] sm:$0xff] }
 0x7c3   : > { %7230 = vmatprep.subr.bf16.mxu1 %v8688_v47  ;;  %v8538_v47 = vcombine.high %v5672_v49, %v5676_v41 }
 0x7c6   : > { %7231 = vmatpush1.bf16.msra.mxu1 %v8687_v30  ;;  %v8537_v30 = vcombine.low %v5672_v49, %v5676_v41  ;;  %v5780_v49 = vld [vmem:[%s12224_s5 + $0x628] sm:$0xff] }
 0x7c7   : > { %7232 = vmatprep.subr.bf16.mxu1 %v8696_v20  ;;  %v8546_v20 = vcombine.high %v5680_v50, %v5684_v9 }
 0x7ca   : > { %7233 = vmatpush1.bf16.msra.mxu1 %v8695_v6  ;;  %v8545_v6 = vcombine.low %v5680_v50, %v5684_v9  ;;  %v5788_v50 = vld [vmem:[%s12224_s5 + $0x668] sm:$0xff] }
 0x7cb   : > { %7243 = vmatprep.subr.bf16.mxu1 %v8450_v21  ;;  %v5696_v21 = vld [vmem:[%s12224_s5 + $0x388] sm:$0xff] }
 0x7cc   : > { %v8561_v27 = vcombine.low %v5696_v21, %v5700_v35 }
 0x7cd   : > { %7235 = vmatmul.mubr.bf16.vlgmr.msra.gmra.mrb[4].mxu1 %v11528_v11 }
 0x7ce   : > { %7244 = vmatpush1.bf16.msra.mxu1 %v8449_v39  ;;  %7275 = vmatprep.mubr.bf16.mxu1 %v11419_v8  ;;  %v8562_v39 = vcombine.high %v5696_v21, %v5700_v35  ;;  %v5804_v21 = vld [vmem:[%s12224_s5 + $0x6e8] sm:$0xff] }
 0x7cf   : > { %7245 = vmatprep.subr.bf16.mxu1 %v8458_v14  ;;  %v5704_v14 = vld [vmem:[%s12224_s5 + $0x3c8] sm:$0xff] }
 0x7d0   : > { %v8569_v34 = vcombine.low %v5704_v14, %v5708_v16 }
 0x7d2   : > { %7246 = vmatpush1.bf16.msra.mxu1 %v8457_v43  ;;  %v8570_v43 = vcombine.high %v5704_v14, %v5708_v16  ;;  %v5812_v14 = vld [vmem:[%s12224_s5 + $0x728] sm:$0xff] }
 0x7d3   : > { %7247 = vmatprep.subr.bf16.mxu1 %v8466_v15  ;;  %v5712_v15 = vld [vmem:[%s12224_s5 + $0x408] sm:$0xff] }
 0x7d4   : > { %v8577_v23 = vcombine.low %v5712_v15, %v5716_v18 }
 0x7d6   : > { %7248 = vmatpush1.bf16.msra.mxu1 %v8465_v26  ;;  %v8578_v26 = vcombine.high %v5712_v15, %v5716_v18  ;;  %v5820_v15 = vld [vmem:[%s12224_s5 + $0x768] sm:$0xff] }
 0x7d7   : > { %7249 = vmatprep.subr.bf16.mxu1 %v8474_v55  ;;  %v5720_v55 = vld [vmem:[%s12224_s5 + $0x448] sm:$0xff] }
 0x7d8   : > { %v8585_v38 = vcombine.low %v5720_v55, %v5724_v24 }
 0x7da   : > { %7250 = vmatpush1.bf16.msra.mxu1 %v8473_v42  ;;  %v8586_v42 = vcombine.high %v5720_v55, %v5724_v24  ;;  %v5828_v55 = vld [vmem:[%s12224_s5 + $0x7a8] sm:$0xff] }
 0x7db   : > { %7251 = vmatprep.subr.bf16.mxu1 %v8482_v2  ;;  %v5728_v2 = vld [vmem:[%s12224_s5 + $0x488] sm:$0xff] }
 0x7dc   : > { %v8593_v33 = vcombine.low %v5728_v2, %v5732_v5 }
 0x7de   : > { %7252 = vmatpush1.bf16.msra.mxu1 %v8481_v58  ;;  %v8594_v58 = vcombine.high %v5728_v2, %v5732_v5  ;;  %v5836_v2 = vld [vmem:[%s12224_s5 + $0x7e8] sm:$0xff] }
 0x7df   : > { %7253 = vmatprep.subr.bf16.mxu1 %v8490_v28  ;;  %v5736_v28 = vld [vmem:[%s12224_s5 + $0x4c8] sm:$0xff] }
 0x7e0   : > { %v8601_v46 = vcombine.low %v5736_v28, %v5740_v32 }
 0x7e2   : > { %7254 = vmatpush1.bf16.msra.mxu1 %v8489_v37  ;;  %v8602_v37 = vcombine.high %v5736_v28, %v5740_v32  ;;  %v5589_v28 = vld [vmem:[%s12224_s5 + $0x30] sm:$0xff] }
 0x7e3   : > { %7255 = vmatprep.subr.bf16.mxu1 %v8498_v25  ;;  %v5744_v25 = vld [vmem:[%s12224_s5 + $0x508] sm:$0xff] }
 0x7e4   : > { %v8609_v62 = vcombine.low %v5744_v25, %v5748_v40 }
 0x7e6   : > { %7256 = vmatpush1.bf16.msra.mxu1 %v8497_v45  ;;  %v8610_v45 = vcombine.high %v5744_v25, %v5748_v40  ;;  %v5597_v25 = vld [vmem:[%s12224_s5 + $0x70] sm:$0xff] }
 0x7e7   : > { %7257 = vmatprep.subr.bf16.mxu1 %v8506_v12  ;;  %v5752_v12 = vld [vmem:[%s12224_s5 + $0x548] sm:$0xff] }
 0x7e8   : > { %v8617_v54 = vcombine.low %v5752_v12, %v5756_v3 }
 0x7ea   : > { %7258 = vmatpush1.bf16.msra.mxu1 %v8505_v51  ;;  %v8618_v51 = vcombine.high %v5752_v12, %v5756_v3  ;;  %v5605_v12 = vld [vmem:[%s12224_s5 + $0xb0] sm:$0xff] }
 0x7eb   : > { %7259 = vmatprep.subr.bf16.mxu1 %v8514_v0  ;;  %v5760_v0 = vld [vmem:[%s12224_s5 + $0x588] sm:$0xff] }
 0x7ec   : > { %v8625_v10 = vcombine.low %v5760_v0, %v5764_v61 }
 0x7ee   : > { %7260 = vmatpush1.bf16.msra.mxu1 %v8513_v1  ;;  %v8626_v1 = vcombine.high %v5760_v0, %v5764_v61  ;;  %v5613_v0 = vld [vmem:[%s12224_s5 + $0xf0] sm:$0xff] }
 0x7ef   : > { %7261 = vmatprep.subr.bf16.mxu1 %v8522_v13  ;;  %v5768_v13 = vld [vmem:[%s12224_s5 + $0x5c8] sm:$0xff] }
 0x7f0   : > { %v8633_v41 = vcombine.low %v5768_v13, %v5772_v4 }
 0x7f2   : > { %7262 = vmatpush1.bf16.msra.mxu1 %v8521_v48  ;;  %v8634_v48 = vcombine.high %v5768_v13, %v5772_v4  ;;  %v5621_v13 = vld [vmem:[%s12224_s5 + $0x130] sm:$0xff] }
 0x7f3   : > { %7263 = vmatprep.subr.bf16.mxu1 %v8530_v36  ;;  %v5776_v36 = vld [vmem:[%s12224_s5 + $0x608] sm:$0xff] }
 0x7f4   : > { %v8641_v9 = vcombine.low %v5776_v36, %v5780_v49 }
 0x7f6   : > { %7264 = vmatpush1.bf16.msra.mxu1 %v8529_v19  ;;  %v8642_v19 = vcombine.high %v5776_v36, %v5780_v49  ;;  %v5629_v36 = vld [vmem:[%s12224_s5 + $0x170] sm:$0xff] }
 0x7f7   : > { %7265 = vmatprep.subr.bf16.mxu1 %v8538_v47  ;;  %v5784_v47 = vld [vmem:[%s12224_s5 + $0x648] sm:$0xff] }
 0x7f8   : > { %v8649_v29 = vcombine.low %v5784_v47, %v5788_v50 }
 0x7fa   : > { %7266 = vmatpush1.bf16.msra.mxu1 %v8537_v30  ;;  %v8650_v30 = vcombine.high %v5784_v47, %v5788_v50  ;;  %v5637_v47 = vld [vmem:[%s12224_s5 + $0x1b0] sm:$0xff] }
 0x7fb   : > { %7267 = vmatprep.subr.bf16.mxu1 %v8546_v20  ;;  %v5792_v20 = vld [vmem:[%s12224_s5 + $0x688] sm:$0xff] }
 0x7fc   : > { %v8657_v35 = vcombine.low %v5792_v20, %v5796_v17 }
 0x7fe   : > { %7268 = vmatpush1.bf16.msra.mxu1 %v8545_v6  ;;  %v8658_v6 = vcombine.high %v5792_v20, %v5796_v17  ;;  %v5645_v20 = vld [vmem:[%s12224_s5 + $0x1f0] sm:$0xff] }
 0x7ff   : > { %7269 = vmatprep.subr.bf16.mxu1 %v8554_v57  ;;  %v5800_v57 = vld [vmem:[%s12224_s5 + $0x6c8] sm:$0xff] }
 0x800   : > { %v8665_v16 = vcombine.low %v5800_v57, %v5804_v21 }
 0x802   : > { %7270 = vmatpush1.bf16.msra.mxu1 %v8553_v7  ;;  %v8666_v7 = vcombine.high %v5800_v57, %v5804_v21  ;;  %v5653_v57 = vld [vmem:[%s12224_s5 + $0x230] sm:$0xff] }
 0x803   : > { %7271 = vmatprep.subr.bf16.mxu1 %v8562_v39  ;;  %v5808_v39 = vld [vmem:[%s12224_s5 + $0x708] sm:$0xff] }
 0x804   : > { %v8673_v18 = vcombine.low %v5808_v39, %v5812_v14 }
 0x806   : > { %7272 = vmatpush1.bf16.msra.mxu1 %v8561_v27  ;;  %v8674_v27 = vcombine.high %v5808_v39, %v5812_v14  ;;  %v5661_v39 = vld [vmem:[%s12224_s5 + $0x270] sm:$0xff] }
 0x807   : > { %7273 = vmatprep.subr.bf16.mxu1 %v8570_v43  ;;  %v5816_v43 = vld [vmem:[%s12224_s5 + $0x748] sm:$0xff] }
 0x808   : > { %v8681_v24 = vcombine.low %v5816_v43, %v5820_v15 }
 0x80a   : > { %7274 = vmatpush1.bf16.msra.mxu1 %v8569_v34  ;;  %v8682_v34 = vcombine.high %v5816_v43, %v5820_v15  ;;  %v5669_v43 = vld [vmem:[%s12224_s5 + $0x2b0] sm:$0xff] }
 0x80b   : > { %7284 = vmatprep.subr.bf16.mxu1 %v8578_v26  ;;  %v5824_v26 = vld [vmem:[%s12224_s5 + $0x788] sm:$0xff] }
 0x80c   : > { %v8689_v5 = vcombine.low %v5824_v26, %v5828_v55 }
 0x80d   : > { %7276 = vmatmul.mubr.bf16.vlgmr.msra.gmra.mrb[8].mxu1 %v11421_v60 }
 0x80e   : > { %7285 = vmatpush1.bf16.msra.mxu1 %v8577_v23  ;;  %7316 = vmatprep.mubr.bf16.mxu1 %v11424_v63  ;;  %v8690_v23 = vcombine.high %v5824_v26, %v5828_v55  ;;  %v5677_v26 = vld [vmem:[%s12224_s5 + $0x2f0] sm:$0xff] }
 0x80f   : > { %7286 = vmatprep.subr.bf16.mxu1 %v8586_v42  ;;  %v5832_v42 = vld [vmem:[%s12224_s5 + $0x7c8] sm:$0xff] }
 0x810   : > { %v8697_v32 = vcombine.low %v5832_v42, %v5836_v2 }
 0x812   : > { %7287 = vmatpush1.bf16.msra.mxu1 %v8585_v38  ;;  %v8698_v38 = vcombine.high %v5832_v42, %v5836_v2  ;;  %v5685_v42 = vld [vmem:[%s12224_s5 + $0x330] sm:$0xff] }
 0x813   : > { %7288 = vmatprep.subr.bf16.mxu1 %v8594_v58  ;;  %v5585_v58 = vld [vmem:[%s12224_s5 + $0x10] sm:$0xff] }
 0x814   : > { %v8451_v40 = vcombine.low %v5585_v58, %v5589_v28 }
 0x816   : > { %7289 = vmatpush1.bf16.msra.mxu1 %v8593_v33  ;;  %v8452_v33 = vcombine.high %v5585_v58, %v5589_v28  ;;  %v5693_v58 = vld [vmem:[%s12224_s5 + $0x370] sm:$0xff] }
 0x817   : > { %7290 = vmatprep.subr.bf16.mxu1 %v8602_v37  ;;  %v5593_v37 = vld [vmem:[%s12224_s5 + $0x50] sm:$0xff] }
 0x818   : > { %v8459_v3 = vcombine.low %v5593_v37, %v5597_v25 }
 0x81a   : > { %7291 = vmatpush1.bf16.msra.mxu1 %v8601_v46  ;;  %v8460_v46 = vcombine.high %v5593_v37, %v5597_v25  ;;  %v5701_v37 = vld [vmem:[%s12224_s5 + $0x3b0] sm:$0xff] }
 0x81b   : > { %7292 = vmatprep.subr.bf16.mxu1 %v8610_v45  ;;  %v5601_v45 = vld [vmem:[%s12224_s5 + $0x90] sm:$0xff] }
 0x81c   : > { %v8467_v61 = vcombine.low %v5601_v45, %v5605_v12 }
 0x81e   : > { %7293 = vmatpush1.bf16.msra.mxu1 %v8609_v62  ;;  %v8468_v62 = vcombine.high %v5601_v45, %v5605_v12  ;;  %v5709_v45 = vld [vmem:[%s12224_s5 + $0x3f0] sm:$0xff] }
 0x81f   : > { %7294 = vmatprep.subr.bf16.mxu1 %v8618_v51  ;;  %v5609_v51 = vld [vmem:[%s12224_s5 + $0xd0] sm:$0xff] }
 0x820   : > { %v8475_v4 = vcombine.low %v5609_v51, %v5613_v0 }
 0x822   : > { %7295 = vmatpush1.bf16.msra.mxu1 %v8617_v54  ;;  %v8476_v54 = vcombine.high %v5609_v51, %v5613_v0  ;;  %v5717_v51 = vld [vmem:[%s12224_s5 + $0x430] sm:$0xff] }
 0x823   : > { %7296 = vmatprep.subr.bf16.mxu1 %v8626_v1  ;;  %v5617_v1 = vld [vmem:[%s12224_s5 + $0x110] sm:$0xff] }
 0x824   : > { %v8483_v49 = vcombine.low %v5617_v1, %v5621_v13 }
 0x826   : > { %7297 = vmatpush1.bf16.msra.mxu1 %v8625_v10  ;;  %v8484_v10 = vcombine.high %v5617_v1, %v5621_v13  ;;  %v5725_v1 = vld [vmem:[%s12224_s5 + $0x470] sm:$0xff] }
 0x827   : > { %7298 = vmatprep.subr.bf16.mxu1 %v8634_v48  ;;  %v5625_v48 = vld [vmem:[%s12224_s5 + $0x150] sm:$0xff] }
 0x828   : > { %v8491_v50 = vcombine.low %v5625_v48, %v5629_v36 }
 0x82a   : > { %7299 = vmatpush1.bf16.msra.mxu1 %v8633_v41  ;;  %v8492_v41 = vcombine.high %v5625_v48, %v5629_v36  ;;  %v5733_v48 = vld [vmem:[%s12224_s5 + $0x4b0] sm:$0xff] }
 0x82b   : > { %7300 = vmatprep.subr.bf16.mxu1 %v8642_v19  ;;  %v5633_v19 = vld [vmem:[%s12224_s5 + $0x190] sm:$0xff] }
 0x82c   : > { %v8499_v17 = vcombine.low %v5633_v19, %v5637_v47 }
 0x82e   : > { %7301 = vmatpush1.bf16.msra.mxu1 %v8641_v9  ;;  %v8500_v9 = vcombine.high %v5633_v19, %v5637_v47  ;;  %v5741_v19 = vld [vmem:[%s12224_s5 + $0x4f0] sm:$0xff] }
 0x82f   : > { %7302 = vmatprep.subr.bf16.mxu1 %v8650_v30  ;;  %v5641_v30 = vld [vmem:[%s12224_s5 + $0x1d0] sm:$0xff] }
 0x830   : > { %v8507_v21 = vcombine.low %v5641_v30, %v5645_v20 }
 0x832   : > { %7303 = vmatpush1.bf16.msra.mxu1 %v8649_v29  ;;  %v8508_v29 = vcombine.high %v5641_v30, %v5645_v20  ;;  %v5749_v30 = vld [vmem:[%s12224_s5 + $0x530] sm:$0xff] }
 0x833   : > { %7304 = vmatprep.subr.bf16.mxu1 %v8658_v6  ;;  %v5649_v6 = vld [vmem:[%s12224_s5 + $0x210] sm:$0xff] }
 0x834   : > { %v8515_v14 = vcombine.low %v5649_v6, %v5653_v57 }
 0x836   : > { %7305 = vmatpush1.bf16.msra.mxu1 %v8657_v35  ;;  %v8516_v35 = vcombine.high %v5649_v6, %v5653_v57  ;;  %v5757_v6 = vld [vmem:[%s12224_s5 + $0x570] sm:$0xff] }
 0x837   : > { %7306 = vmatprep.subr.bf16.mxu1 %v8666_v7  ;;  %v5657_v7 = vld [vmem:[%s12224_s5 + $0x250] sm:$0xff] }
 0x838   : > { %v8523_v15 = vcombine.low %v5657_v7, %v5661_v39 }
 0x83a   : > { %7307 = vmatpush1.bf16.msra.mxu1 %v8665_v16  ;;  %v8524_v16 = vcombine.high %v5657_v7, %v5661_v39  ;;  %v5761_v7 = vld [vmem:[%s12224_s5 + $0x590] sm:$0xff] }
 0x83b   : > { %7308 = vmatprep.subr.bf16.mxu1 %v8674_v27  ;;  %v5665_v27 = vld [vmem:[%s12224_s5 + $0x290] sm:$0xff] }
 0x83c   : > { %v8531_v55 = vcombine.low %v5665_v27, %v5669_v43  ;;  %v5765_v39 = vld [vmem:[%s12224_s5 + $0x5b0] sm:$0xff] }
 0x83e   : > { %7309 = vmatpush1.bf16.msra.mxu1 %v8673_v18  ;;  %v8532_v18 = vcombine.high %v5665_v27, %v5669_v43  ;;  %v8628_v43 = vcombine.high %v5761_v7, %v5765_v39 }
 0x83f   : > { %7310 = vmatprep.subr.bf16.mxu1 %v8682_v34  ;;  %v5673_v34 = vld [vmem:[%s12224_s5 + $0x2d0] sm:$0xff] }
 0x840   : > { %v8539_v2 = vcombine.low %v5673_v34, %v5677_v26 }
 0x842   : > { %7311 = vmatpush1.bf16.msra.mxu1 %v8681_v24  ;;  %v8540_v24 = vcombine.high %v5673_v34, %v5677_v26  ;;  %v5773_v34 = vld [vmem:[%s12224_s5 + $0x5f0] sm:$0xff] }
 0x843   : > { %7312 = vmatprep.subr.bf16.mxu1 %v8690_v23  ;;  %v5681_v23 = vld [vmem:[%s12224_s5 + $0x310] sm:$0xff] }
 0x844   : > { %v8547_v28 = vcombine.low %v5681_v23, %v5685_v42 }
 0x846   : > { %7313 = vmatpush1.bf16.msra.mxu1 %v8689_v5  ;;  %v8548_v5 = vcombine.high %v5681_v23, %v5685_v42  ;;  %v8627_v23 = vcombine.low %v5761_v7, %v5765_v39  ;;  %v5594_v39 = vld [vmem:[%s12224_s5 + $0x58] sm:$0xff] }
 0x847   : > { %7314 = vmatprep.subr.bf16.mxu1 %v8698_v38  ;;  %v5689_v38 = vld [vmem:[%s12224_s5 + $0x350] sm:$0xff] }
 0x848   : > { %v8555_v25 = vcombine.low %v5689_v38, %v5693_v58 }
 0x84a   : > { %7315 = vmatpush1.bf16.msra.mxu1 %v8697_v32  ;;  %v8556_v32 = vcombine.high %v5689_v38, %v5693_v58  ;;  %v5777_v38 = vld [vmem:[%s12224_s5 + $0x610] sm:$0xff] }
 0x84b   : > { %7325 = vmatprep.subr.bf16.mxu1 %v8452_v33  ;;  %v5697_v33 = vld [vmem:[%s12224_s5 + $0x390] sm:$0xff] }
 0x84c   : > { %v8563_v12 = vcombine.low %v5697_v33, %v5701_v37  ;;  %v5781_v58 = vld [vmem:[%s12224_s5 + $0x630] sm:$0xff] }
 0x84d   : > { %7317 = vmatmul.mubr.bf16.vlgmr.msra.gmra.mrb[8].mxu1 %v11528_v11 }
 0x84e   : > { %7326 = vmatpush1.bf16.msra.mxu1 %v8451_v40  ;;  %7357 = vmatprep.mubr.bf16.mxu1 %v11419_v8  ;;  %v8564_v40 = vcombine.high %v5697_v33, %v5701_v37  ;;  %v8644_v33 = vcombine.high %v5777_v38, %v5781_v58  ;;  %v5785_v37 = vld [vmem:[%s12224_s5 + $0x650] sm:$0xff] }
 0x84f   : > { %7327 = vmatprep.subr.bf16.mxu1 %v8460_v46  ;;  %v5705_v46 = vld [vmem:[%s12224_s5 + $0x3d0] sm:$0xff] }
 0x850   : > { %v8571_v0 = vcombine.low %v5705_v46, %v5709_v45 }
 0x852   : > { %7328 = vmatpush1.bf16.msra.mxu1 %v8459_v3  ;;  %v8572_v3 = vcombine.high %v5705_v46, %v5709_v45  ;;  %v5793_v45 = vld [vmem:[%s12224_s5 + $0x690] sm:$0xff] }
 0x853   : > { %7329 = vmatprep.subr.bf16.mxu1 %v8468_v62  ;;  %v5713_v62 = vld [vmem:[%s12224_s5 + $0x410] sm:$0xff] }
 0x854   : > { %v8579_v13 = vcombine.low %v5713_v62, %v5717_v51 }
 0x856   : > { %7330 = vmatpush1.bf16.msra.mxu1 %v8467_v61  ;;  %v8580_v61 = vcombine.high %v5713_v62, %v5717_v51  ;;  %v5801_v51 = vld [vmem:[%s12224_s5 + $0x6d0] sm:$0xff] }
 0x857   : > { %7331 = vmatprep.subr.bf16.mxu1 %v8476_v54  ;;  %v5721_v54 = vld [vmem:[%s12224_s5 + $0x450] sm:$0xff] }
 0x858   : > { %v8587_v36 = vcombine.low %v5721_v54, %v5725_v1 }
 0x85a   : > { %7332 = vmatpush1.bf16.msra.mxu1 %v8475_v4  ;;  %v8588_v4 = vcombine.high %v5721_v54, %v5725_v1  ;;  %v5809_v1 = vld [vmem:[%s12224_s5 + $0x710] sm:$0xff] }
 0x85b   : > { %7333 = vmatprep.subr.bf16.mxu1 %v8484_v10  ;;  %v5729_v10 = vld [vmem:[%s12224_s5 + $0x490] sm:$0xff] }
 0x85c   : > { %v8595_v47 = vcombine.low %v5729_v10, %v5733_v48 }
 0x85e   : > { %7334 = vmatpush1.bf16.msra.mxu1 %v8483_v49  ;;  %v8596_v49 = vcombine.high %v5729_v10, %v5733_v48  ;;  %v5817_v48 = vld [vmem:[%s12224_s5 + $0x750] sm:$0xff] }
 0x85f   : > { %7335 = vmatprep.subr.bf16.mxu1 %v8492_v41  ;;  %v5737_v41 = vld [vmem:[%s12224_s5 + $0x4d0] sm:$0xff] }
 0x860   : > { %v8603_v20 = vcombine.low %v5737_v41, %v5741_v19 }
 0x862   : > { %7336 = vmatpush1.bf16.msra.mxu1 %v8491_v50  ;;  %v8604_v50 = vcombine.high %v5737_v41, %v5741_v19  ;;  %v5825_v19 = vld [vmem:[%s12224_s5 + $0x790] sm:$0xff] }
 0x863   : > { %7337 = vmatprep.subr.bf16.mxu1 %v8500_v9  ;;  %v5745_v9 = vld [vmem:[%s12224_s5 + $0x510] sm:$0xff] }
 0x864   : > { %v8611_v57 = vcombine.low %v5745_v9, %v5749_v30 }
 0x866   : > { %7338 = vmatpush1.bf16.msra.mxu1 %v8499_v17  ;;  %v8612_v17 = vcombine.high %v5745_v9, %v5749_v30  ;;  %v5833_v30 = vld [vmem:[%s12224_s5 + $0x7d0] sm:$0xff] }
 0x867   : > { %7339 = vmatprep.subr.bf16.mxu1 %v8508_v29  ;;  %v5753_v29 = vld [vmem:[%s12224_s5 + $0x550] sm:$0xff] }
 0x868   : > { %v8619_v27 = vcombine.low %v5753_v29, %v5757_v6 }
 0x86a   : > { %7340 = vmatpush1.bf16.msra.mxu1 %v8507_v21  ;;  %v11853_v21 = vld [vmem:[%s12225_s6] sm:$0xff] }
 0x86b   : > { %7341 = vmatprep.subr.bf16.mxu1 %v8516_v35  ;;  %v8620_v35 = vcombine.high %v5753_v29, %v5757_v6  ;;  %v5586_v6 = vld [vmem:[%s12224_s5 + $0x18] sm:$0xff] }
 0x86e   : > { %7342 = vmatpush1.bf16.msra.mxu1 %v8515_v14  ;;  %v7124_v14 = vrot.slane %v11853_v21, %v10678_v31 }
 0x86f   : > { %7343 = vmatprep.subr.bf16.mxu1 %v8524_v16  ;;  %v7128_v16 = vrot.slane %v11853_v21, %v10684_v44 }
 0x872   : > { %7344 = vmatpush1.bf16.msra.mxu1 %v8523_v15 }
 0x873   : > { %7345 = vmatprep.subr.bf16.mxu1 %v8532_v18  ;;  %v5769_v18 = vld [vmem:[%s12224_s5 + $0x5d0] sm:$0xff] }
 0x876   : > { %7346 = vmatpush1.bf16.msra.mxu1 %v8531_v55 }
 0x877   : > { %7347 = vmatprep.subr.bf16.mxu1 %v8540_v24 }
 0x87a   : > { %7348 = vmatpush1.bf16.msra.mxu1 %v8539_v2  ;;  %v8636_v2 = vcombine.high %v5769_v18, %v5773_v34 }
 0x87b   : > { %7349 = vmatprep.subr.bf16.mxu1 %v8548_v5 }
 0x87e   : > { %7350 = vmatpush1.bf16.msra.mxu1 %v8547_v28 }
 0x87f   : > { %7351 = vmatprep.subr.bf16.mxu1 %v8556_v32  ;;  %v8635_v32 = vcombine.low %v5769_v18, %v5773_v34 }
 0x882   : > { %7352 = vmatpush1.bf16.msra.mxu1 %v8555_v25  ;;  %v5789_v25 = vld [vmem:[%s12224_s5 + $0x670] sm:$0xff] }
 0x883   : > { %7353 = vmatprep.subr.bf16.mxu1 %v8564_v40  ;;  %v8643_v40 = vcombine.low %v5777_v38, %v5781_v58  ;;  %v8652_v46 = vcombine.high %v5785_v37, %v5789_v25 }
 0x886   : > { %7354 = vmatpush1.bf16.msra.mxu1 %v8563_v12  ;;  %v5797_v12 = vld [vmem:[%s12224_s5 + $0x6b0] sm:$0xff] }
 0x887   : > { %7355 = vmatprep.subr.bf16.mxu1 %v8572_v3  ;;  %v8651_v3 = vcombine.low %v5785_v37, %v5789_v25  ;;  %v8660_v62 = vcombine.high %v5793_v45, %v5797_v12 }
 0x88a   : > { %7356 = vmatpush1.bf16.msra.mxu1 %v8571_v0  ;;  %v5805_v0 = vld [vmem:[%s12224_s5 + $0x6f0] sm:$0xff] }
 0x88b   : > { %7366 = vmatprep.subr.bf16.mxu1 %v8580_v61  ;;  %v8659_v61 = vcombine.low %v5793_v45, %v5797_v12  ;;  %v8668_v54 = vcombine.high %v5801_v51, %v5805_v0 }
 0x88d   : > { %7358 = vmatmul.mubr.bf16.vlgmr.msra.gmra.mrb[12].mxu1 %v11421_v60 }
 0x88e   : > { %7367 = vmatpush1.bf16.msra.mxu1 %v8579_v13  ;;  %7398 = vmatprep.mubr.bf16.mxu1 %v11424_v63  ;;  %v5813_v13 = vld [vmem:[%s12224_s5 + $0x730] sm:$0xff] }
 0x88f   : > { %7368 = vmatprep.subr.bf16.mxu1 %v8588_v4  ;;  %v8667_v4 = vcombine.low %v5801_v51, %v5805_v0  ;;  %v8676_v10 = vcombine.high %v5809_v1, %v5813_v13 }
 0x892   : > { %7369 = vmatpush1.bf16.msra.mxu1 %v8587_v36  ;;  %v5821_v36 = vld [vmem:[%s12224_s5 + $0x770] sm:$0xff] }
 0x893   : > { %7370 = vmatprep.subr.bf16.mxu1 %v8596_v49  ;;  %v8675_v49 = vcombine.low %v5809_v1, %v5813_v13  ;;  %v8684_v41 = vcombine.high %v5817_v48, %v5821_v36 }
 0x896   : > { %7371 = vmatpush1.bf16.msra.mxu1 %v8595_v47  ;;  %v5829_v47 = vld [vmem:[%s12224_s5 + $0x7b0] sm:$0xff] }
 0x897   : > { %7372 = vmatprep.subr.bf16.mxu1 %v8604_v50  ;;  %v8683_v50 = vcombine.low %v5817_v48, %v5821_v36  ;;  %v8692_v9 = vcombine.high %v5825_v19, %v5829_v47 }
 0x89a   : > { %7373 = vmatpush1.bf16.msra.mxu1 %v8603_v20  ;;  %v5837_v20 = vld [vmem:[%s12224_s5 + $0x7f0] sm:$0xff] }
 0x89b   : > { %7374 = vmatprep.subr.bf16.mxu1 %v8612_v17  ;;  %v8691_v17 = vcombine.low %v5825_v19, %v5829_v47  ;;  %v8700_v29 = vcombine.high %v5833_v30, %v5837_v20 }
 0x89e   : > { %7375 = vmatpush1.bf16.msra.mxu1 %v8611_v57  ;;  %v5590_v57 = vld [vmem:[%s12224_s5 + $0x38] sm:$0xff] }
 0x89f   : > { %7376 = vmatprep.subr.bf16.mxu1 %v8620_v35  ;;  %v8699_v35 = vcombine.low %v5833_v30, %v5837_v20  ;;  %v8454_v7 = vcombine.high %v5586_v6, %v5590_v57 }
 0x8a0   : > { %v7236_v15 = vpop.f32.mrb[4].mxu1 }
 0x8a1   : > { %v8743_v26 = vadd.f32 %v7236_v15, %v7124_v14  ;;  %v7238_v55 = vpop.f32.mrb[5].mxu1  ;;  %v5598_v14 = vld [vmem:[%s12224_s5 + $0x78] sm:$0xff] }
 0x8a2   : > { %v8744_v24 = vadd.f32 %v7238_v55, %v7128_v16  ;;  %v7240_v31 = vpop.f32.mrb[6].mxu1  ;;  %7377 = vmatpush1.bf16.msra.mxu1 %v8619_v27  ;;  %v8453_v16 = vcombine.low %v5586_v6, %v5590_v57  ;;  %v8462_v27 = vcombine.high %v5594_v39, %v5598_v14  ;;  %v5606_v15 = vld [vmem:[%s12224_s5 + $0xb8] sm:$0xff]  ;;  %v8461_v18 = vcombine.low %v5594_v39, %v5598_v14 }
 0x8a3   : > { %v7489_v42 = vmax.f32 %v8743_v26, 0.0  ;;  %v7241_v44 = vpop.f32.mrb[7].mxu1  ;;  %7378 = vmatprep.subr.bf16.mxu1 %v8628_v43  ;;  %v5602_v43 = vld [vmem:[%s12224_s5 + $0x98] sm:$0xff] }
 0x8a4   : > { %v7490_v5 = vmax.f32 %v8744_v24, 0.0  ;;  %v8470_v34 = vcombine.high %v5602_v43, %v5606_v15  ;;  %v5610_v26 = vld [vmem:[%s12224_s5 + $0xd8] sm:$0xff]  ;;  %v8469_v24 = vcombine.low %v5602_v43, %v5606_v15 }
 0x8a5   : > { %v5614_v55 = vld [vmem:[%s12224_s5 + $0xf8] sm:$0xff] }
 0x8a6   : > { %v11877_v28 = vmax.f32 %v7489_v42, %v7490_v5  ;;  %7379 = vmatpush1.bf16.msra.mxu1 %v8627_v23  ;;  %v8478_v31 = vcombine.high %v5610_v26, %v5614_v55  ;;  %v5618_v23 = vld [vmem:[%s12224_s5 + $0x118] sm:$0xff]  ;;  %v8477_v42 = vcombine.low %v5610_v26, %v5614_v55 }
 0x8a7   : > { %7380 = vmatprep.subr.bf16.mxu1 %v8636_v2  ;;  %v5626_v2 = vld [vmem:[%s12224_s5 + $0x158] sm:$0xff] }
 0x8a8   : > { %v5630_v5 = vld [vmem:[%s12224_s5 + $0x178] sm:$0xff] }
 0x8a9   : > { %v8494_v58 = vcombine.high %v5626_v2, %v5630_v5  ;;  %v8493_v37 = vcombine.low %v5626_v2, %v5630_v5 }
 0x8aa   : > { %7381 = vmatpush1.bf16.msra.mxu1 %v8635_v32  ;;  %v5634_v32 = vld [vmem:[%s12224_s5 + $0x198] sm:$0xff] }
 0x8ab   : > { %7382 = vmatprep.subr.bf16.mxu1 %v8644_v33  ;;  %v5638_v33 = vld [vmem:[%s12224_s5 + $0x1b8] sm:$0xff] }
 0x8ac   : > { %v8502_v25 = vcombine.high %v5634_v32, %v5638_v33  ;;  %v8501_v45 = vcombine.low %v5634_v32, %v5638_v33 }
 0x8ae   : > { %7383 = vmatpush1.bf16.msra.mxu1 %v8643_v40  ;;  %v5642_v40 = vld [vmem:[%s12224_s5 + $0x1d8] sm:$0xff] }
 0x8af   : > { %7384 = vmatprep.subr.bf16.mxu1 %v8652_v46  ;;  %v5646_v46 = vld [vmem:[%s12224_s5 + $0x1f8] sm:$0xff] }
 0x8b0   : > { %v8510_v12 = vcombine.high %v5642_v40, %v5646_v46  ;;  %v8509_v51 = vcombine.low %v5642_v40, %v5646_v46  ;;  %v5754_v40 = vld [vmem:[%s12224_s5 + $0x558] sm:$0xff] }
 0x8b1   : > { %v5758_v46 = vld [vmem:[%s12224_s5 + $0x578] sm:$0xff] }
 0x8b2   : > { %7385 = vmatpush1.bf16.msra.mxu1 %v8651_v3  ;;  %v5650_v3 = vld [vmem:[%s12224_s5 + $0x218] sm:$0xff] }
 0x8b3   : > { %7386 = vmatprep.subr.bf16.mxu1 %v8660_v62  ;;  %v5654_v62 = vld [vmem:[%s12224_s5 + $0x238] sm:$0xff] }
 0x8b4   : > { %v8518_v0 = vcombine.high %v5650_v3, %v5654_v62  ;;  %v8517_v1 = vcombine.low %v5650_v3, %v5654_v62  ;;  %v8622_v3 = vcombine.high %v5754_v40, %v5758_v46  ;;  %v5762_v62 = vld [vmem:[%s12224_s5 + $0x598] sm:$0xff] }
 0x8b6   : > { %7387 = vmatpush1.bf16.msra.mxu1 %v8659_v61  ;;  %v5658_v61 = vld [vmem:[%s12224_s5 + $0x258] sm:$0xff] }
 0x8b7   : > { %7388 = vmatprep.subr.bf16.mxu1 %v8668_v54  ;;  %v5662_v54 = vld [vmem:[%s12224_s5 + $0x278] sm:$0xff] }
 0x8b8   : > { %v8526_v13 = vcombine.high %v5658_v61, %v5662_v54  ;;  %v8525_v48 = vcombine.low %v5658_v61, %v5662_v54  ;;  %v8621_v54 = vcombine.low %v5754_v40, %v5758_v46  ;;  %v5834_v40 = vld [vmem:[%s12224_s5 + $0x7d8] sm:$0xff] }
 0x8b9   : > { %v5838_v46 = vld [vmem:[%s12224_s5 + $0x7f8] sm:$0xff] }
 0x8ba   : > { %7389 = vmatpush1.bf16.msra.mxu1 %v8667_v4  ;;  %v5666_v4 = vld [vmem:[%s12224_s5 + $0x298] sm:$0xff] }
 0x8bb   : > { %7390 = vmatprep.subr.bf16.mxu1 %v8676_v10  ;;  %v5670_v10 = vld [vmem:[%s12224_s5 + $0x2b8] sm:$0xff] }
 0x8bc   : > { %v8534_v36 = vcombine.high %v5666_v4, %v5670_v10  ;;  %v8533_v19 = vcombine.low %v5666_v4, %v5670_v10  ;;  %v5770_v4 = vld [vmem:[%s12224_s5 + $0x5d8] sm:$0xff] }
 0x8bd   : > { %v5774_v10 = vld [vmem:[%s12224_s5 + $0x5f8] sm:$0xff] }
 0x8be   : > { %7391 = vmatpush1.bf16.msra.mxu1 %v8675_v49  ;;  %v5674_v49 = vld [vmem:[%s12224_s5 + $0x2d8] sm:$0xff] }
 0x8bf   : > { %7392 = vmatprep.subr.bf16.mxu1 %v8684_v41  ;;  %v5678_v41 = vld [vmem:[%s12224_s5 + $0x2f8] sm:$0xff] }
 0x8c0   : > { %v8542_v47 = vcombine.high %v5674_v49, %v5678_v41  ;;  %v8541_v30 = vcombine.low %v5674_v49, %v5678_v41 }
 0x8c2   : > { %7393 = vmatpush1.bf16.msra.mxu1 %v8683_v50  ;;  %v5682_v50 = vld [vmem:[%s12224_s5 + $0x318] sm:$0xff] }
 0x8c3   : > { %7394 = vmatprep.subr.bf16.mxu1 %v8692_v9  ;;  %v5686_v9 = vld [vmem:[%s12224_s5 + $0x338] sm:$0xff] }
 0x8c4   : > { %v8550_v20 = vcombine.high %v5682_v50, %v5686_v9  ;;  %v8549_v6 = vcombine.low %v5682_v50, %v5686_v9  ;;  %v8638_v50 = vcombine.high %v5770_v4, %v5774_v10 }
 0x8c6   : > { %7395 = vmatpush1.bf16.msra.mxu1 %v8691_v17  ;;  %v5690_v17 = vld [vmem:[%s12224_s5 + $0x358] sm:$0xff] }
 0x8c7   : > { %7396 = vmatprep.subr.bf16.mxu1 %v8700_v29  ;;  %v5694_v29 = vld [vmem:[%s12224_s5 + $0x378] sm:$0xff] }
 0x8c8   : > { %v8558_v57 = vcombine.high %v5690_v17, %v5694_v29  ;;  %v8557_v39 = vcombine.low %v5690_v17, %v5694_v29  ;;  %v8637_v29 = vcombine.low %v5770_v4, %v5774_v10  ;;  %v9605_v10 = vld [vmem:[%s12226_s7 + $0x28] sm:$0xff]  }
 0x8ca   : > { %7397 = vmatpush1.bf16.msra.mxu1 %v8699_v35  ;;  %v5698_v35 = vld [vmem:[%s12224_s5 + $0x398] sm:$0xff] }
 0x8cb   : > { %7407 = vmatprep.subr.bf16.mxu1 %v8454_v7  ;;  %v5702_v7 = vld [vmem:[%s12224_s5 + $0x3b8] sm:$0xff] }
 0x8cc   : > { %v8566_v14 = vcombine.high %v5698_v35, %v5702_v7  ;;  %v8565_v43 = vcombine.low %v5698_v35, %v5702_v7  ;;  %v9600_v35 = vld [vmem:[%s12226_s7] sm:$0xff]   ;;  %v5786_v7 = vld [vmem:[%s12224_s5 + $0x658] sm:$0xff] }
 0x8cd   : > { %7399 = vmatmul.mubr.bf16.vlgmr.msra.gmra.mrb[12].mxu1 %v11528_v11  ;;  %8724 = vmatpush3.bf16.msra.mxu0 %v9600_v35 }
 0x8ce   : > { %7408 = vmatpush1.bf16.msra.mxu1 %v8453_v16  ;;  %7439 = vmatprep.mubr.bf16.mxu1 %v11419_v8  ;;  %v5622_v8 = vld [vmem:[%s12224_s5 + $0x138] sm:$0xff] }
 0x8cf   : > { %7409 = vmatprep.subr.bf16.mxu1 %v8462_v27  ;;  %v8486_v44 = vcombine.high %v5618_v23, %v5622_v8  ;;  %v8485_v38 = vcombine.low %v5618_v23, %v5622_v8  ;;  %v5706_v16 = vld [vmem:[%s12224_s5 + $0x3d8] sm:$0xff]  ;;  %8725 = vmatprep.subr.bf16.mxu0 %v9680_v53 }
 0x8d0   : > { %v5710_v27 = vld [vmem:[%s12224_s5 + $0x3f8] sm:$0xff] }
 0x8d1   : > { %v8574_v15 = vcombine.high %v5706_v16, %v5710_v27  ;;  %v8573_v26 = vcombine.low %v5706_v16, %v5710_v27  ;;  %v5794_v27 = vld [vmem:[%s12224_s5 + $0x698] sm:$0xff] }
 0x8d2   : > { %7410 = vmatpush1.bf16.msra.mxu1 %v8461_v18  ;;  %v5714_v18 = vld [vmem:[%s12224_s5 + $0x418] sm:$0xff] }
 0x8d3   : > { %7411 = vmatprep.subr.bf16.mxu1 %v8470_v34  ;;  %v5718_v34 = vld [vmem:[%s12224_s5 + $0x438] sm:$0xff] }
 0x8d4   : > { %v8582_v55 = vcombine.high %v5714_v18, %v5718_v34  ;;  %v8581_v23 = vcombine.low %v5714_v18, %v5718_v34 }
 0x8d6   : > { %7412 = vmatpush1.bf16.msra.mxu1 %v8469_v24  ;;  %v5722_v24 = vld [vmem:[%s12224_s5 + $0x458] sm:$0xff] }
 0x8d7   : > { %7413 = vmatprep.subr.bf16.mxu1 %v8478_v31  ;;  %v5726_v31 = vld [vmem:[%s12224_s5 + $0x478] sm:$0xff] }
 0x8d8   : > { %v8590_v8 = vcombine.high %v5722_v24, %v5726_v31  ;;  %v8589_v2 = vcombine.low %v5722_v24, %v5726_v31  ;;  %v9603_v24 = vld [vmem:[%s12226_s7 + $0x18] sm:$0xff]  }
 0x8da   : > { %7414 = vmatpush1.bf16.msra.mxu1 %v8477_v42  ;;  %v5730_v42 = vld [vmem:[%s12224_s5 + $0x498] sm:$0xff] }
 0x8db   : > { %7415 = vmatprep.subr.bf16.mxu1 %v8486_v44  ;;  %v5734_v44 = vld [vmem:[%s12224_s5 + $0x4b8] sm:$0xff] }
 0x8dc   : > { %v8598_v5 = vcombine.high %v5730_v42, %v5734_v44  ;;  %v8597_v32 = vcombine.low %v5730_v42, %v5734_v44  ;;  %v5814_v42 = vld [vmem:[%s12224_s5 + $0x738] sm:$0xff]  ;;  %v9604_v44 = vld [vmem:[%s12226_s7 + $0x20] sm:$0xff]  }
 0x8de   : > { %7416 = vmatpush1.bf16.msra.mxu1 %v8485_v38  ;;  %v5738_v38 = vld [vmem:[%s12224_s5 + $0x4d8] sm:$0xff] }
 0x8df   : > { %7417 = vmatprep.subr.bf16.mxu1 %v8494_v58  ;;  %v5742_v58 = vld [vmem:[%s12224_s5 + $0x4f8] sm:$0xff] }
 0x8e0   : > { %v8606_v33 = vcombine.high %v5738_v38, %v5742_v58 }
 0x8e2   : > { %7418 = vmatpush1.bf16.msra.mxu1 %v8493_v37  ;;  %v8605_v37 = vcombine.low %v5738_v38, %v5742_v58  ;;  %v5818_v38 = vld [vmem:[%s12224_s5 + $0x758] sm:$0xff] }
 0x8e3   : > { %7419 = vmatprep.subr.bf16.mxu1 %v8502_v25  ;;  %v5822_v58 = vld [vmem:[%s12224_s5 + $0x778] sm:$0xff] }
 0x8e6   : > { %7420 = vmatpush1.bf16.msra.mxu1 %v8501_v45 }
 0x8e7   : > { %7421 = vmatprep.subr.bf16.mxu1 %v8510_v12  ;;  %v7135_v12 = vsub.s32 3, %v10675_v22 }
 0x8e9   : > { %v7136_v61 = vrot.slane %v11853_v21, %v7135_v12  ;;  %v8702_v12 = vcombine.high %v5834_v40, %v5838_v46 }
 0x8ea   : > { %7422 = vmatpush1.bf16.msra.mxu1 %v8509_v51  ;;  %v5766_v51 = vld [vmem:[%s12224_s5 + $0x5b8] sm:$0xff] }
 0x8eb   : > { %7423 = vmatprep.subr.bf16.mxu1 %v8518_v0  ;;  %v7132_v0 = vrot.slane %v11853_v21, %v5565_v52  ;;  %v8629_v52 = vcombine.low %v5762_v62, %v5766_v51 }
 0x8ee   : > { %7424 = vmatpush1.bf16.msra.mxu1 %v8517_v1  ;;  %v8630_v1 = vcombine.high %v5762_v62, %v5766_v51  ;;  %v7143_v62 = vsub.s32 5, %v10675_v22  ;;  %v7140_v51 = vrot.slane %v11853_v21, %v5569_v59  ;;  %v9606_v59 = vld [vmem:[%s12226_s7 + $0x30] sm:$0xff]  }
 0x8ef   : > { %7425 = vmatprep.subr.bf16.mxu1 %v8526_v13 }
 0x8f2   : > { %7426 = vmatpush1.bf16.msra.mxu1 %v8525_v48 }
 0x8f3   : > { %7427 = vmatprep.subr.bf16.mxu1 %v8534_v36 }
 0x8f6   : > { %7428 = vmatpush1.bf16.msra.mxu1 %v8533_v19 }
 0x8f7   : > { %7429 = vmatprep.subr.bf16.mxu1 %v8542_v47 }
 0x8fa   : > { %7430 = vmatpush1.bf16.msra.mxu1 %v8541_v30  ;;  %v5778_v30 = vld [vmem:[%s12224_s5 + $0x618] sm:$0xff] }
 0x8fb   : > { %7431 = vmatprep.subr.bf16.mxu1 %v8550_v20  ;;  %v5782_v20 = vld [vmem:[%s12224_s5 + $0x638] sm:$0xff] }
 0x8fe   : > { %7432 = vmatpush1.bf16.msra.mxu1 %v8549_v6 }
 0x8ff   : > { %7433 = vmatprep.subr.bf16.mxu1 %v8558_v57  ;;  %v8646_v57 = vcombine.high %v5778_v30, %v5782_v20 }
 0x902   : > { %7434 = vmatpush1.bf16.msra.mxu1 %v8557_v39  ;;  %v5790_v39 = vld [vmem:[%s12224_s5 + $0x678] sm:$0xff] }
 0x903   : > { %7435 = vmatprep.subr.bf16.mxu1 %v8566_v14  ;;  %v8645_v14 = vcombine.low %v5778_v30, %v5782_v20  ;;  %v8654_v16 = vcombine.high %v5786_v7, %v5790_v39  ;;  %v8653_v18 = vcombine.low %v5786_v7, %v5790_v39 }
 0x906   : > { %7436 = vmatpush1.bf16.msra.mxu1 %v8565_v43  ;;  %v5798_v43 = vld [vmem:[%s12224_s5 + $0x6b8] sm:$0xff] }
 0x907   : > { %7437 = vmatprep.subr.bf16.mxu1 %v8574_v15  ;;  %v9602_v15 = vld [vmem:[%s12226_s7 + $0x10] sm:$0xff]   ;;  %v8662_v34 = vcombine.high %v5794_v27, %v5798_v43  ;;  %v8661_v31 = vcombine.low %v5794_v27, %v5798_v43 }
 0x90a   : > { %7438 = vmatpush1.bf16.msra.mxu1 %v8573_v26  ;;  %v5802_v26 = vld [vmem:[%s12224_s5 + $0x6d8] sm:$0xff] }
 0x90b   : > { %7448 = vmatprep.subr.bf16.mxu1 %v8582_v55  ;;  %v5806_v55 = vld [vmem:[%s12224_s5 + $0x6f8] sm:$0xff] }
 0x90d   : > { %7440 = vmatmul.mubr.bf16.vlgmr.msra.gmra.mrb[16].mxu1 %v11421_v60  ;;  %v5746_v60 = vld [vmem:[%s12224_s5 + $0x518] sm:$0xff] }
 0x90e   : > { %7449 = vmatpush1.bf16.msra.mxu1 %v8581_v23  ;;  %7480 = vmatprep.mubr.bf16.mxu1 %v11424_v63  ;;  %v5750_v63 = vld [vmem:[%s12224_s5 + $0x538] sm:$0xff]  ;;  %v8670_v23 = vcombine.high %v5802_v26, %v5806_v55 }
 0x90f   : > { %7450 = vmatprep.subr.bf16.mxu1 %v8590_v8  ;;  %v8614_v25 = vcombine.high %v5746_v60, %v5750_v63  ;;  %v8613_v45 = vcombine.low %v5746_v60, %v5750_v63  ;;  %v5810_v8 = vld [vmem:[%s12224_s5 + $0x718] sm:$0xff] }
 0x910   : > { %v5826_v60 = vld [vmem:[%s12224_s5 + $0x798] sm:$0xff] }
 0x911   : > { %v5830_v63 = vld [vmem:[%s12224_s5 + $0x7b8] sm:$0xff] }
 0x912   : > { %7451 = vmatpush1.bf16.msra.mxu1 %v8589_v2  ;;  %v8669_v2 = vcombine.low %v5802_v26, %v5806_v55 }
 0x913   : > { %7452 = vmatprep.subr.bf16.mxu1 %v8598_v5  ;;  %v8678_v5 = vcombine.high %v5810_v8, %v5814_v42 }
 0x916   : > { %7453 = vmatpush1.bf16.msra.mxu1 %v8597_v32  ;;  %v8677_v32 = vcombine.low %v5810_v8, %v5814_v42 }
 0x917   : > { %7454 = vmatprep.subr.bf16.mxu1 %v8606_v33  ;;  %v8686_v33 = vcombine.high %v5818_v38, %v5822_v58 }
 0x91a   : > { %7455 = vmatpush1.bf16.msra.mxu1 %v8605_v37  ;;  %v8685_v37 = vcombine.low %v5818_v38, %v5822_v58 }
 0x91b   : > { %7456 = vmatprep.subr.bf16.mxu1 %v8614_v25  ;;  %v8694_v25 = vcombine.high %v5826_v60, %v5830_v63 }
 0x91e   : > { %7457 = vmatpush1.bf16.msra.mxu1 %v8613_v45  ;;  %v8693_v45 = vcombine.low %v5826_v60, %v5830_v63 }
 0x91f   : > { %7458 = vmatprep.subr.bf16.mxu1 %v8622_v3  ;;  %v8701_v3 = vcombine.low %v5834_v40, %v5838_v46 }
 0x920   : > { %v7318_v13 = vpop.f32.mrb[8].mxu1 }
 0x921   : > { %v8745_v48 = vadd.f32 %v7318_v13, %v7132_v0  ;;  %v7320_v36 = vpop.f32.mrb[9].mxu1  ;;  %v7144_v0 = vrot.slane %v11853_v21, %v7143_v62 }
 0x922   : > { %v8746_v49 = vadd.f32 %v7320_v36, %v7136_v61  ;;  %v7322_v41 = vpop.f32.mrb[10].mxu1  ;;  %7459 = vmatpush1.bf16.msra.mxu1 %v8621_v54 }
 0x923   : > { %v7491_v19 = vmax.f32 %v8745_v48, 0.0  ;;  %v7323_v47 = vpop.f32.mrb[11].mxu1  ;;  %7460 = vmatprep.subr.bf16.mxu1 %v8630_v1 }
 0x924   : > { %v7492_v9 = vmax.f32 %v8746_v49, 0.0  ;;  %v7148_v47 = vrot.slane %v11853_v21, %v5573_v56 }
 0x925   : > { %v7498_v17 = vmax.f32 %v11877_v28, %v7491_v19  ;;  %v9601_v28 = vld [vmem:[%s12226_s7 + $0x8] sm:$0xff]   ;;  %v7151_v19 = vsub.s32 7, %v10675_v22  ;;  %v7521_v22 = vld [vmem:[%s12227_s8] sm:$0x1] }
 0x926   : > { %7461 = vmatpush1.bf16.msra.mxu1 %v8629_v52  ;;  %8726 = vmatpush3.bf16.msra.mxu0 %v9601_v28  ;;  %v9607_v52 = vld [vmem:[%s12226_s7 + $0x38] sm:$0xff]  }
 0x927   : > { %v12081_v6 = vmax.f32 %v7498_v17, %v7492_v9  ;;  %7462 = vmatprep.subr.bf16.mxu1 %v8638_v50  ;;  %8727 = vmatprep.subr.bf16.mxu0 %v9680_v53  ;;  %v7152_v50 = vrot.slane %v11853_v21, %v7151_v19 }
 0x92a   : > { %7463 = vmatpush1.bf16.msra.mxu1 %v8637_v29  ;;  %8728 = vmatpush3.bf16.msra.mxu0 %v9602_v15 }
 0x92b   : > { %7464 = vmatprep.subr.bf16.mxu1 %v8646_v57  ;;  %8729 = vmatprep.subr.bf16.mxu0 %v9680_v53 }
 0x92e   : > { %7465 = vmatpush1.bf16.msra.mxu1 %v8645_v14  ;;  %8730 = vmatpush3.bf16.msra.mxu0 %v9603_v24 }
 0x92f   : > { %7466 = vmatprep.subr.bf16.mxu1 %v8654_v16  ;;  %8731 = vmatprep.subr.bf16.mxu0 %v9680_v53 }
 0x932   : > { %7467 = vmatpush1.bf16.msra.mxu1 %v8653_v18  ;;  %8732 = vmatpush3.bf16.msra.mxu0 %v9604_v44 }
 0x933   : > { %7468 = vmatprep.subr.bf16.mxu1 %v8662_v34  ;;  %8733 = vmatprep.subr.bf16.mxu0 %v9680_v53 }
 0x936   : > { %7469 = vmatpush1.bf16.msra.mxu1 %v8661_v31  ;;  %8734 = vmatpush3.bf16.msra.mxu0 %v9605_v10 }
 0x937   : > { %7470 = vmatprep.subr.bf16.mxu1 %v8670_v23  ;;  %8735 = vmatprep.subr.bf16.mxu0 %v9680_v53 }
 0x93a   : > { %7471 = vmatpush1.bf16.msra.mxu1 %v8669_v2  ;;  %8736 = vmatpush3.bf16.msra.mxu0 %v9606_v59 }
 0x93b   : > { %7472 = vmatprep.subr.bf16.mxu1 %v8678_v5  ;;  %8737 = vmatprep.subr.bf16.mxu0 %v9680_v53 }
 0x93e   : > { %7473 = vmatpush1.bf16.msra.mxu1 %v8677_v32  ;;  %8738 = vmatpush3.bf16.msra.mxu0 %v9607_v52 }
 0x93f   : > { %7474 = vmatprep.subr.bf16.mxu1 %v8686_v33 }
 0x942   : > { %7475 = vmatpush1.bf16.msra.mxu1 %v8685_v37 }
 0x943   : > { %7476 = vmatprep.subr.bf16.mxu1 %v8694_v25 }
 0x946   : > { %7477 = vmatpush1.bf16.msra.mxu1 %v8693_v45 }
 0x947   : > { %7478 = vmatprep.subr.bf16.mxu1 %v8702_v12 }
 0x94a   : > { %7479 = vmatpush1.bf16.msra.mxu1 %v8701_v3 }
 0x94d   : > { %7481 = vmatmul.mubr.bf16.vlgmr.msra.gmra.mrb[16].mxu1 %v11528_v11 }
 0x9a0   : > { %v7400_v61 = vpop.f32.mrb[12].mxu1 }
 0x9a1   : > { %v8747_v54 = vadd.f32 %v7400_v61, %v7140_v51  ;;  %v7402_v1 = vpop.f32.mrb[13].mxu1 }
 0x9a2   : > { %v8748_v13 = vadd.f32 %v7402_v1, %v7144_v0  ;;  %v7404_v4 = vpop.f32.mrb[14].mxu1 }
 0x9a3   : > { %v7493_v48 = vmax.f32 %v8747_v54, 0.0  ;;  %v7405_v36 = vpop.f32.mrb[15].mxu1 }
 0x9a4   : > { %v7494_v11 = vmax.f32 %v8748_v13, 0.0 }
 0x9a5   : > { %v7500_v49 = vmax.f32 %v12081_v6, %v7493_v48 }
 0x9a7   : > { %v7501_v41 = vmax.f32 %v7500_v49, %v7494_v11 }
 0xa20   : > { %v7482_v9 = vpop.f32.mrb[16].mxu1 }
 0xa21   : > { %v8749_v30 = vadd.f32 %v7482_v9, %v7148_v47  ;;  %v7484_v20 = vpop.f32.mrb[17].mxu1 }
 0xa22   : > { %v8750_v17 = vadd.f32 %v7484_v20, %v7152_v50  ;;  %v7486_v29 = vpop.f32.mrb[18].mxu1 }
 0xa23   : > { %v7495_v6 = vmax.f32 %v8749_v30, 0.0  ;;  %v7487_v57 = vpop.f32.mrb[19].mxu1 }
 0xa24   : > { %v7496_v35 = vmax.f32 %v8750_v17, 0.0 }
 0xa25   : > { %v7502_v53 = vmax.f32 %v7501_v41, %v7495_v6 }
 0xa27   : > { %v7503_v7 = vmax.f32 %v7502_v53, %v7496_v35 }
 0xa29   : > { %v7504_v39 = vpack.c.bf16 %v7503_v7, %v7503_v7 }
 0xa2b   : > { %8740 = vmatmul.mubr.bf16.vlgmr.msra.gmra.mrb[16].mxu0 %v7504_v39 }
 0xafe   : > { %v7604_v56 = vpop.f32.mrb[16].mxu0 }
 0xaff   : > { %v7605_v21 = vadd.f32 %v7604_v56, %v7521_v22  ;;  %v8741_v28 = vpop.f32.mrb[17].mxu0 }
 0xb00   : > { %v7607_v14 = vpop.f32.mrb[18].mxu0 }
 0xb01   : > { %7610 = vst [vmem:[%s324_s29] sm:$0x1] %v7605_v21  ;;  %v8742_v16 = vpop.f32.mrb[19].mxu0 }
 0xb02   : > { %9626 = shalt.err (!%p9623_p3)
}
 0xb03   : > { %s9627_s25 = scalar_lea.hbm %s12177_s17, 16  ;;  %s9631_s29 = scalar_lea.hbm %s12228_s9, 32 }
 0xb04   : > { %p9628_p4 = scmp.ne.s32.totalorder %s12177_s17, %s9627_s25  ;;  %p9632_p9 = scmp.lt.u32.totalorder %s12177_s17, %s12228_s9 }
 0xb05   : > { %p9633_p10 = scmp.lt.u32.totalorder %s9631_s29, %s9627_s25  ;;  %p9635_p12 = scmp.lt.u32.totalorder %s9627_s25, %s12177_s17 }
 0xb06   : > { %p9629_p7 = pnand %p9628_p4, %p9772_p5 }
 0xb07   : > { %p9634_p11 = por %p9633_p10, %p9632_p9 }
 0xb08   : > { %p9630_p8 = pneg %p9629_p7 }
 0xb09   : > { %p9636_p13 = por %p9635_p12, %p9634_p11 }
 0xb0b   : > { %p9637_p0 = pnand %p9636_p13, %p9630_p8 }
 0xb0d   : > { %9640 = shalt.err (!%p9637_p0)
}
 0xb0e   : > { %9184 = dma.vmem_to_hbm [thread:$0]  (%p9772_p5), %s12179_s14, 16, %s12177_s17, %s7612_s23  }
 0xb0f PF: > { %p9190_p1 = scmp.ge.s32.totalorder %s9675_s12, 2  ;;  %s7636_s13 = sand.u32 1, %s9663_s30  }
 0xb10   : > { %s7637_s22 = scalar_lea.sflag [#allocation3], %s7636_s13 }
 0xb11   : > { %p9187_p2 = pnand %p9190_p1, %p9776_p6 }
 0xb13   : > { %9658 = dma.done.wait (!%p9187_p2), %s7637_s22, 16  }
 0xb14   : > { %9660 = vsyncadd (!%p9187_p2), %s7637_s22, 4294967280  ;;  %p19_p3 = scmp.ge.s32.totalorder %s9759_s15, 4   ;;  %s12259_s30 = smov %s9667_s10 }
 0xb15   : > { %s12260_s10 = smov %s9671_s11  ;;  %s12261_s11 = smov %s9770_s18 }
 0xb16   : > { %s12262_s12 = smov %s9759_s15  ;;  %21 = sbr.rel (!%p19_p3) target bundleno = 3 (0x3), region = 132 }
 0xb1d   :  { %7641 = vsyncpa [#allocation3], 1 }
 0xb1e   :  { %7643 = vsyncpa [#allocation3 + $0x1], 1 }

</bundles_post_ra>
